<compile_context>
chip_gen: v6e
topology: v6e:2x2x1
jax: 0.10.0
libtpu: 0.0.40
codegen_flags: <defaults>
</compile_context>

<pallas_src>
import functools
import math

import jax
import jax.numpy as jnp
from jax.experimental import pallas as pl
from jax.experimental.pallas import tpu as pltpu


# ----------------------------- fused Pallas kernel -----------------------------

def _gru_block_kernel(x_ref, w_in_ref, b_in_ref, w_hh_ref, b_hn_ref, o_ref,
                      *, hid, seq_len):
    """One row-block of the GruBlock forward.

    x_ref    : (W, bB, Cin)      time-major input rows (f32)
    w_in_ref : (Cin, 6*hid) bf16 conv-folded [fwd r|z|n  bwd r|z|n] input weights
    b_in_ref : (1, 6*hid)   f32  folded biases (conv + b_ih + bh_r + bh_z)
    w_hh_ref : (hid, 6*hid) bf16 [fwd | bwd] recurrent weights, pre-transposed
    b_hn_ref : (1, 2*hid)   f32  [fwd bh_n | bwd bh_n]
    o_ref    : (bB, W*Cout)      output, column t*Cout + c  (Cout = 2*hid)
    """
    W = seq_len
    bB = x_ref.shape[1]
    Cin = x_ref.shape[2]
    H3 = 3 * hid

    # ---- conv1x1 + (fwd|bwd) input-gate projections for ALL timesteps: one MXU pass.
    x = x_ref[...].reshape(W * bB, Cin).astype(jnp.bfloat16)
    gi = jnp.dot(x, w_in_ref[...], preferred_element_type=jnp.float32) + b_in_ref[...]
    # gi row t*bB + b ; cols [0:3h] = fwd gates (r|z|n), [3h:6h] = bwd gates.

    whh = w_hh_ref[...]                                    # bf16, stays in vregs
    bhn = b_hn_ref[...]                                    # (1, 2*hid) f32
    # Hoist broadcasts out of the unrolled loop (JAX does not CSE broadcast_in_dim).
    bhn_f = jnp.broadcast_to(bhn[:, 0:hid], (bB, hid))
    bhn_b = jnp.broadcast_to(bhn[:, hid:2 * hid], (bB, hid))

    def half_cell(g_i, g_h, h_prev, b_n):
        # PyTorch GRU cell, gate order r, z, n (bh_r/bh_z already folded into g_i):
        r = jax.nn.sigmoid(g_i[:, 0:hid] + g_h[:, 0:hid])
        z = jax.nn.sigmoid(g_i[:, hid:2 * hid] + g_h[:, hid:2 * hid])
        n = jnp.tanh(g_i[:, 2 * hid:H3] + r * (g_h[:, 2 * hid:H3] + b_n))
        return n + z * (h_prev - n)          # == (1-z)*n + z*h_prev

    h_f = jnp.zeros((bB, hid), jnp.float32)
    h_b = jnp.zeros((bB, hid), jnp.float32)
    out_f = [None] * W
    out_b = [None] * W

    # ---- interleaved fwd/bwd recurrence, statically unrolled.
    # Both directions advance every iteration and share one MXU push per step.
    for i in range(W):
        tf = i
        tb = W - 1 - i
        h_cat = jnp.concatenate([h_f, h_b], axis=0).astype(jnp.bfloat16)   # (2bB, hid)
        gh = jnp.dot(h_cat, whh, preferred_element_type=jnp.float32)       # (2bB, 6h)
        h_f = half_cell(gi[tf * bB:(tf + 1) * bB, 0:H3],
                        gh[0:bB, 0:H3], h_f, bhn_f)
        h_b = half_cell(gi[tb * bB:(tb + 1) * bB, H3:2 * H3],
                        gh[bB:2 * bB, H3:2 * H3], h_b, bhn_b)
        out_f[tf] = h_f
        out_b[tb] = h_b

    # ---- single lane-dense output store: (bB, W*Cout) with column t*Cout + c.
    pieces = []
    for t in range(W):
        pieces.append(out_f[t])      # cols t*Cout       .. t*Cout + hid
        pieces.append(out_b[t])      # cols t*Cout + hid .. (t+1)*Cout
    o_ref[...] = jnp.concatenate(pieces, axis=-1).astype(o_ref.dtype)


# ----------------------------- weight prep (one-time, outside jit) -----------------------------

def prepare_params(p):
    """Fold the 1x1 conv and the additive bh_r/bh_z biases into the input-gate
    projection; concatenate fwd/bwd weights; pre-transpose; cast MXU operands
    to bf16. All linear-algebra identities -> numerically equivalent."""
    conv_w = p["conv_w"]
    Cout, Cin = conv_w.shape[:2]
    hid = Cout // 2

    wc = conv_w.reshape(Cout, Cin).T                                   # (Cin, Cout)
    w_ih_all = jnp.concatenate([p["w_ih_f"], p["w_ih_b"]], axis=0).T   # (Cout, 6*hid)
    b_ih_all = jnp.concatenate([p["b_ih_f"], p["b_ih_b"]])             # (6*hid,)
    # bh_r / bh_z add linearly before the sigmoid -> fold into the input bias;
    # only bh_n (multiplied by r) stays separate.
    bhh_rz = jnp.concatenate([
        p["b_hh_f"][:2 * hid], jnp.zeros((hid,), jnp.float32),
        p["b_hh_b"][:2 * hid], jnp.zeros((hid,), jnp.float32)])

    w_in = wc @ w_ih_all                                               # (Cin, 6*hid)
    b_in = p["conv_b"] @ w_ih_all + b_ih_all + bhh_rz                  # (6*hid,)
    w_hh = jnp.concatenate([p["w_hh_f"].T, p["w_hh_b"].T], axis=1)     # (hid, 6*hid)
    b_hn = jnp.concatenate([p["b_hh_f"][2 * hid:], p["b_hh_b"][2 * hid:]])  # (2*hid,)

    return dict(
        w_in=w_in.astype(jnp.bfloat16),
        b_in=b_in.reshape(1, 6 * hid).astype(jnp.float32),
        w_hh=w_hh.astype(jnp.bfloat16),
        b_hn=b_hn.reshape(1, 2 * hid).astype(jnp.float32),
    )


# ----------------------------- wrapper -----------------------------

def _pick_block_rows(B):
    # Collapse the grid when the block comfortably fits VMEM (single-TC
    # v5e/v6e pay ~0.35us per grid step and a bigger M amortizes the serial
    # recurrence); otherwise fall back to a multiple-of-8 divisor so block
    # shapes stay (8,128)-legal.
    if B <= 256:
        return B
    for cand in (256, 128, 64, 32, 16, 8):
        if B % cand == 0:
            return cand
    return B


def gru_block_forward(prep, x):
    N, Cin, H, W = x.shape
    Cout = prep["b_hn"].shape[1]
    hid = Cout // 2
    B = N * H

    # Layout plumbing stays in JAX: NCHW -> time-major (W, N*H, Cin).
    x_seq = x.transpose(0, 2, 3, 1).reshape(B, W, Cin).transpose(1, 0, 2)

    bB = _pick_block_rows(B)
    grid = (B // bB,)

    out = pl.pallas_call(
        functools.partial(_gru_block_kernel, hid=hid, seq_len=W),
        grid=grid,
        in_specs=[
            pl.BlockSpec((W, bB, Cin), lambda i: (0, i, 0)),
            pl.BlockSpec((Cin, 6 * hid), lambda i: (0, 0)),
            pl.BlockSpec((1, 6 * hid), lambda i: (0, 0)),
            pl.BlockSpec((hid, 6 * hid), lambda i: (0, 0)),
            pl.BlockSpec((1, 2 * hid), lambda i: (0, 0)),
        ],
        # Lane-dense output block: last dim W*Cout is a multiple of 128.
        out_specs=pl.BlockSpec((bB, W * Cout), lambda i: (i, 0)),
        out_shape=jax.ShapeDtypeStruct((B, W * Cout), x.dtype),
        compiler_params=pltpu.CompilerParams(
            dimension_semantics=("parallel",)),
    )(x_seq, prep["w_in"], prep["b_in"], prep["w_hh"], prep["b_hn"])

    # (B, W*Cout) -> (N, H, W, Cout) -> (N, Cout, H, W)
    return out.reshape(N, H, W, Cout).transpose(0, 3, 1, 2)


# ----------------------------- pure-JAX reference (for verification) -----------------------------

def gru_block_reference(p, x):
    N, Cin, H, W = x.shape
    Cout = p["conv_w"].shape[0]
    hid = Cout // 2
    wc = p["conv_w"].reshape(Cout, Cin)
    xc = jnp.einsum("nchw,oc->nohw", x, wc) + p["conv_b"][None, :, None, None]
    xs = xc.transpose(0, 2, 3, 1).reshape(N * H, W, Cout)

    def direction(xs_dir, w_ih, w_hh, b_ih, b_hh):
        def step(h, x_t):
            gi = x_t @ w_ih.T + b_ih
            gh = h @ w_hh.T + b_hh
            r = jax.nn.sigmoid(gi[:, :hid] + gh[:, :hid])
            z = jax.nn.sigmoid(gi[:, hid:2 * hid] + gh[:, hid:2 * hid])
            n = jnp.tanh(gi[:, 2 * hid:] + r * gh[:, 2 * hid:])
            h_new = (1.0 - z) * n + z * h
            return h_new, h_new
        h0 = jnp.zeros((xs_dir.shape[0], hid), xs_dir.dtype)
        _, hs = jax.lax.scan(step, h0, xs_dir.transpose(1, 0, 2))
        return hs.transpose(1, 0, 2)

    out_f = direction(xs, p["w_ih_f"], p["w_hh_f"], p["b_ih_f"], p["b_hh_f"])
    out_b = direction(xs[:, ::-1], p["w_ih_b"], p["w_hh_b"],
                      p["b_ih_b"], p["b_hh_b"])[:, ::-1]
    out = jnp.concatenate([out_f, out_b], axis=-1)
    return out.reshape(N, H, W, Cout).transpose(0, 3, 1, 2)


# ----------------------------- parameter init -----------------------------

def init_params(key, in_channels, out_channels):
    assert out_channels % 2 == 0
    hid = out_channels // 2
    ks = jax.random.split(key, 10)

    def uni(k, shape, bound):
        return jax.random.uniform(k, shape, jnp.float32, -bound, bound)

    kc = 1.0 / math.sqrt(in_channels)
    kg = 1.0 / math.sqrt(hid)
    return dict(
        conv_w=uni(ks[0], (out_channels, in_channels, 1, 1), kc),
        conv_b=uni(ks[1], (out_channels,), kc),
        w_ih_f=uni(ks[2], (3 * hid, out_channels), kg),
        w_hh_f=uni(ks[3], (3 * hid, hid), kg),
        b_ih_f=uni(ks[4], (3 * hid,), kg),
        b_hh_f=uni(ks[5], (3 * hid,), kg),
        w_ih_b=uni(ks[6], (3 * hid, out_channels), kg),
        w_hh_b=uni(ks[7], (3 * hid, hid), kg),
        b_ih_b=uni(ks[8], (3 * hid,), kg),
        b_hh_b=uni(ks[9], (3 * hid,), kg),
    )


# ----------------------------- main -----------------------------

if __name__ == "__main__":
    key = jax.random.PRNGKey(0)
    N, Cin, Cout = 2, 4, 32          # in_channels=4, out_channels=32 (hid=16)
    H, W = 8, 16                     # GRU runs over W with N*H=16 batch rows

    kp, kx = jax.random.split(key)
    raw_params = init_params(kp, Cin, Cout)
    prep = prepare_params(raw_params)      # one-time weight layout prep (outside jit)
    x = jax.random.normal(kx, (N, Cin, H, W), jnp.float32)

    fwd = jax.jit(gru_block_forward)
    y = fwd(prep, x)
    jax.block_until_ready(y)

    assert y.shape == (N, Cout, H, W), y.shape
    assert bool(jnp.all(jnp.isfinite(y)))

    # Verify against a pure-JAX f32 reference of the PyTorch semantics.
    # Tolerance is 2.5e-2 because the kernel feeds bf16 operands to the MXU
    # (f32 accumulation); the algebraic refactors (conv fold, bias folds,
    # interleaving) are exact.
    y_ref = jax.jit(gru_block_reference)(raw_params, x)
    jax.block_until_ready(y_ref)
    max_err = float(jnp.max(jnp.abs(y - y_ref)))
    assert max_err < 2.5e-2, f"max abs err vs reference: {max_err}"

    print("KERNEL_OK")
</pallas_src>

<mosaic_0001>
module attributes {stable_mosaic.version = 11 : i64} {
  func.func @_gru_block_kernel(%arg0: i32, %arg1: memref<16x16x4xf32, #tpu.memory_space<vmem>>, %arg2: memref<4x96xbf16, #tpu.memory_space<vmem>>, %arg3: memref<1x96xf32, #tpu.memory_space<vmem>>, %arg4: memref<16x96xbf16, #tpu.memory_space<vmem>>, %arg5: memref<1x32xf32, #tpu.memory_space<vmem>>, %arg6: memref<16x512xf32, #tpu.memory_space<vmem>>) attributes {dimension_semantics = [#tpu.dimension_semantics<parallel>], iteration_bounds = array<i64: 1>, scalar_prefetch = 0 : i64, scratch_operands = 0 : i64, tpu.core_type = #tpu.core_type<tc>, window_params = [{transform_indices = @transform_0, window_bounds = array<i64: 16, 16, 4>}, {pipeline_mode = #tpu.pipeline_mode<synchronous>, transform_indices = @transform_1, window_bounds = array<i64: 4, 96>}, {pipeline_mode = #tpu.pipeline_mode<synchronous>, transform_indices = @transform_2, window_bounds = array<i64: 1, 96>}, {pipeline_mode = #tpu.pipeline_mode<synchronous>, transform_indices = @transform_3, window_bounds = array<i64: 16, 96>}, {pipeline_mode = #tpu.pipeline_mode<synchronous>, transform_indices = @transform_4, window_bounds = array<i64: 1, 32>}, {transform_indices = @transform_5, window_bounds = array<i64: 16, 512>}]} {
    %c0 = arith.constant 0 : index
    %c0_0 = arith.constant 0 : index
    %c0_1 = arith.constant 0 : index
    %0 = vector.load %arg1[%c0, %c0_0, %c0_1] : memref<16x16x4xf32, #tpu.memory_space<vmem>>, vector<16x16x4xf32>
    %1 = vector.shape_cast %0 : vector<16x16x4xf32> to vector<256x4xf32>
    %2 = arith.truncf %1 : vector<256x4xf32> to vector<256x4xbf16>
    %c0_2 = arith.constant 0 : index
    %c0_3 = arith.constant 0 : index
    %3 = vector.load %arg2[%c0_2, %c0_3] : memref<4x96xbf16, #tpu.memory_space<vmem>>, vector<4x96xbf16>
    %cst = arith.constant dense<0.000000e+00> : vector<256x96xf32>
    %4 = tpu.matmul %2, %3, %cst {dimension_numbers = #tpu.dot_dimension_numbers<[1], [0], [0], [1], [0, 0, 1, 1], [], []>} : vector<256x4xbf16>, vector<4x96xbf16>, vector<256x96xf32> -> vector<256x96xf32>
    %c0_4 = arith.constant 0 : index
    %c0_5 = arith.constant 0 : index
    %5 = vector.load %arg3[%c0_4, %c0_5] : memref<1x96xf32, #tpu.memory_space<vmem>>, vector<1x96xf32>
    %6 = vector.broadcast %5 : vector<1x96xf32> to vector<256x96xf32>
    %7 = arith.addf %4, %6 : vector<256x96xf32>
    %c0_6 = arith.constant 0 : index
    %c0_7 = arith.constant 0 : index
    %8 = vector.load %arg4[%c0_6, %c0_7] : memref<16x96xbf16, #tpu.memory_space<vmem>>, vector<16x96xbf16>
    %c0_8 = arith.constant 0 : index
    %c0_9 = arith.constant 0 : index
    %9 = vector.load %arg5[%c0_8, %c0_9] : memref<1x32xf32, #tpu.memory_space<vmem>>, vector<1x32xf32>
    %10 = vector.extract_strided_slice %9 {offsets = [0, 0], sizes = [1, 16], strides = [1, 1]} : vector<1x32xf32> to vector<1x16xf32>
    %11 = vector.shape_cast %10 : vector<1x16xf32> to vector<1x16xf32>
    %12 = vector.broadcast %11 : vector<1x16xf32> to vector<16x16xf32>
    %13 = vector.extract_strided_slice %9 {offsets = [0, 16], sizes = [1, 16], strides = [1, 1]} : vector<1x32xf32> to vector<1x16xf32>
    %14 = vector.shape_cast %13 : vector<1x16xf32> to vector<1x16xf32>
    %15 = vector.broadcast %14 : vector<1x16xf32> to vector<16x16xf32>
    %cst_10 = arith.constant 0.000000e+00 : f32
    %16 = vector.broadcast %cst_10 : f32 to vector<16x16xf32>
    %cst_11 = arith.constant 0.000000e+00 : f32
    %17 = vector.broadcast %cst_11 : f32 to vector<16x16xf32>
    %18 = tpu.concatenate %16, %17 in 0 : vector<16x16xf32>, vector<16x16xf32> -> vector<32x16xf32>
    %19 = arith.truncf %18 : vector<32x16xf32> to vector<32x16xbf16>
    %cst_12 = arith.constant dense<0.000000e+00> : vector<32x96xf32>
    %20 = tpu.matmul %19, %8, %cst_12 {dimension_numbers = #tpu.dot_dimension_numbers<[1], [0], [0], [1], [0, 0, 1, 1], [], []>} : vector<32x16xbf16>, vector<16x96xbf16>, vector<32x96xf32> -> vector<32x96xf32>
    %21 = vector.extract_strided_slice %7 {offsets = [0, 0], sizes = [16, 48], strides = [1, 1]} : vector<256x96xf32> to vector<16x48xf32>
    %22 = vector.extract_strided_slice %20 {offsets = [0, 0], sizes = [16, 48], strides = [1, 1]} : vector<32x96xf32> to vector<16x48xf32>
    %23 = vector.extract_strided_slice %21 {offsets = [0, 0], sizes = [16, 16], strides = [1, 1]} : vector<16x48xf32> to vector<16x16xf32>
    %24 = vector.extract_strided_slice %22 {offsets = [0, 0], sizes = [16, 16], strides = [1, 1]} : vector<16x48xf32> to vector<16x16xf32>
    %25 = arith.addf %23, %24 : vector<16x16xf32>
    %26 = arith.negf %25 : vector<16x16xf32>
    %27 = math.exp %26 : vector<16x16xf32>
    %cst_13 = arith.constant 1.000000e+00 : f32
    %28 = vector.broadcast %cst_13 : f32 to vector<16x16xf32>
    %29 = arith.addf %28, %27 : vector<16x16xf32>
    %30 = arith.divf %28, %29 : vector<16x16xf32>
    %31 = vector.extract_strided_slice %21 {offsets = [0, 16], sizes = [16, 16], strides = [1, 1]} : vector<16x48xf32> to vector<16x16xf32>
    %32 = vector.extract_strided_slice %22 {offsets = [0, 16], sizes = [16, 16], strides = [1, 1]} : vector<16x48xf32> to vector<16x16xf32>
    %33 = arith.addf %31, %32 : vector<16x16xf32>
    %34 = arith.negf %33 : vector<16x16xf32>
    %35 = math.exp %34 : vector<16x16xf32>
    %cst_14 = arith.constant 1.000000e+00 : f32
    %36 = vector.broadcast %cst_14 : f32 to vector<16x16xf32>
    %37 = arith.addf %36, %35 : vector<16x16xf32>
    %38 = arith.divf %36, %37 : vector<16x16xf32>
    %39 = vector.extract_strided_slice %21 {offsets = [0, 32], sizes = [16, 16], strides = [1, 1]} : vector<16x48xf32> to vector<16x16xf32>
    %40 = vector.extract_strided_slice %22 {offsets = [0, 32], sizes = [16, 16], strides = [1, 1]} : vector<16x48xf32> to vector<16x16xf32>
    %41 = arith.addf %40, %12 : vector<16x16xf32>
    %42 = arith.mulf %30, %41 : vector<16x16xf32>
    %43 = arith.addf %39, %42 : vector<16x16xf32>
    %44 = math.tanh %43 : vector<16x16xf32>
    %45 = arith.subf %16, %44 : vector<16x16xf32>
    %46 = arith.mulf %38, %45 : vector<16x16xf32>
    %47 = arith.addf %44, %46 : vector<16x16xf32>
    %48 = vector.extract_strided_slice %7 {offsets = [240, 48], sizes = [16, 48], strides = [1, 1]} : vector<256x96xf32> to vector<16x48xf32>
    %49 = vector.extract_strided_slice %20 {offsets = [16, 48], sizes = [16, 48], strides = [1, 1]} : vector<32x96xf32> to vector<16x48xf32>
    %50 = vector.extract_strided_slice %48 {offsets = [0, 0], sizes = [16, 16], strides = [1, 1]} : vector<16x48xf32> to vector<16x16xf32>
    %51 = vector.extract_strided_slice %49 {offsets = [0, 0], sizes = [16, 16], strides = [1, 1]} : vector<16x48xf32> to vector<16x16xf32>
    %52 = arith.addf %50, %51 : vector<16x16xf32>
    %53 = arith.negf %52 : vector<16x16xf32>
    %54 = math.exp %53 : vector<16x16xf32>
    %cst_15 = arith.constant 1.000000e+00 : f32
    %55 = vector.broadcast %cst_15 : f32 to vector<16x16xf32>
    %56 = arith.addf %55, %54 : vector<16x16xf32>
    %57 = arith.divf %55, %56 : vector<16x16xf32>
    %58 = vector.extract_strided_slice %48 {offsets = [0, 16], sizes = [16, 16], strides = [1, 1]} : vector<16x48xf32> to vector<16x16xf32>
    %59 = vector.extract_strided_slice %49 {offsets = [0, 16], sizes = [16, 16], strides = [1, 1]} : vector<16x48xf32> to vector<16x16xf32>
    %60 = arith.addf %58, %59 : vector<16x16xf32>
    %61 = arith.negf %60 : vector<16x16xf32>
    %62 = math.exp %61 : vector<16x16xf32>
    %cst_16 = arith.constant 1.000000e+00 : f32
    %63 = vector.broadcast %cst_16 : f32 to vector<16x16xf32>
    %64 = arith.addf %63, %62 : vector<16x16xf32>
    %65 = arith.divf %63, %64 : vector<16x16xf32>
    %66 = vector.extract_strided_slice %48 {offsets = [0, 32], sizes = [16, 16], strides = [1, 1]} : vector<16x48xf32> to vector<16x16xf32>
    %67 = vector.extract_strided_slice %49 {offsets = [0, 32], sizes = [16, 16], strides = [1, 1]} : vector<16x48xf32> to vector<16x16xf32>
    %68 = arith.addf %67, %15 : vector<16x16xf32>
    %69 = arith.mulf %57, %68 : vector<16x16xf32>
    %70 = arith.addf %66, %69 : vector<16x16xf32>
    %71 = math.tanh %70 : vector<16x16xf32>
    %72 = arith.subf %17, %71 : vector<16x16xf32>
    %73 = arith.mulf %65, %72 : vector<16x16xf32>
    %74 = arith.addf %71, %73 : vector<16x16xf32>
    %75 = tpu.concatenate %47, %74 in 0 : vector<16x16xf32>, vector<16x16xf32> -> vector<32x16xf32>
    %76 = arith.truncf %75 : vector<32x16xf32> to vector<32x16xbf16>
    %cst_17 = arith.constant dense<0.000000e+00> : vector<32x96xf32>
    %77 = tpu.matmul %76, %8, %cst_17 {dimension_numbers = #tpu.dot_dimension_numbers<[1], [0], [0], [1], [0, 0, 1, 1], [], []>} : vector<32x16xbf16>, vector<16x96xbf16>, vector<32x96xf32> -> vector<32x96xf32>
    %78 = vector.extract_strided_slice %7 {offsets = [16, 0], sizes = [16, 48], strides = [1, 1]} : vector<256x96xf32> to vector<16x48xf32>
    %79 = vector.extract_strided_slice %77 {offsets = [0, 0], sizes = [16, 48], strides = [1, 1]} : vector<32x96xf32> to vector<16x48xf32>
    %80 = vector.extract_strided_slice %78 {offsets = [0, 0], sizes = [16, 16], strides = [1, 1]} : vector<16x48xf32> to vector<16x16xf32>
    %81 = vector.extract_strided_slice %79 {offsets = [0, 0], sizes = [16, 16], strides = [1, 1]} : vector<16x48xf32> to vector<16x16xf32>
    %82 = arith.addf %80, %81 : vector<16x16xf32>
    %83 = arith.negf %82 : vector<16x16xf32>
    %84 = math.exp %83 : vector<16x16xf32>
    %cst_18 = arith.constant 1.000000e+00 : f32
    %85 = vector.broadcast %cst_18 : f32 to vector<16x16xf32>
    %86 = arith.addf %85, %84 : vector<16x16xf32>
    %87 = arith.divf %85, %86 : vector<16x16xf32>
    %88 = vector.extract_strided_slice %78 {offsets = [0, 16], sizes = [16, 16], strides = [1, 1]} : vector<16x48xf32> to vector<16x16xf32>
    %89 = vector.extract_strided_slice %79 {offsets = [0, 16], sizes = [16, 16], strides = [1, 1]} : vector<16x48xf32> to vector<16x16xf32>
    %90 = arith.addf %88, %89 : vector<16x16xf32>
    %91 = arith.negf %90 : vector<16x16xf32>
    %92 = math.exp %91 : vector<16x16xf32>
    %cst_19 = arith.constant 1.000000e+00 : f32
    %93 = vector.broadcast %cst_19 : f32 to vector<16x16xf32>
    %94 = arith.addf %93, %92 : vector<16x16xf32>
    %95 = arith.divf %93, %94 : vector<16x16xf32>
    %96 = vector.extract_strided_slice %78 {offsets = [0, 32], sizes = [16, 16], strides = [1, 1]} : vector<16x48xf32> to vector<16x16xf32>
    %97 = vector.extract_strided_slice %79 {offsets = [0, 32], sizes = [16, 16], strides = [1, 1]} : vector<16x48xf32> to vector<16x16xf32>
    %98 = arith.addf %97, %12 : vector<16x16xf32>
    %99 = arith.mulf %87, %98 : vector<16x16xf32>
    %100 = arith.addf %96, %99 : vector<16x16xf32>
    %101 = math.tanh %100 : vector<16x16xf32>
    %102 = arith.subf %47, %101 : vector<16x16xf32>
    %103 = arith.mulf %95, %102 : vector<16x16xf32>
    %104 = arith.addf %101, %103 : vector<16x16xf32>
    %105 = vector.extract_strided_slice %7 {offsets = [224, 48], sizes = [16, 48], strides = [1, 1]} : vector<256x96xf32> to vector<16x48xf32>
    %106 = vector.extract_strided_slice %77 {offsets = [16, 48], sizes = [16, 48], strides = [1, 1]} : vector<32x96xf32> to vector<16x48xf32>
    %107 = vector.extract_strided_slice %105 {offsets = [0, 0], sizes = [16, 16], strides = [1, 1]} : vector<16x48xf32> to vector<16x16xf32>
    %108 = vector.extract_strided_slice %106 {offsets = [0, 0], sizes = [16, 16], strides = [1, 1]} : vector<16x48xf32> to vector<16x16xf32>
    %109 = arith.addf %107, %108 : vector<16x16xf32>
    %110 = arith.negf %109 : vector<16x16xf32>
    %111 = math.exp %110 : vector<16x16xf32>
    %cst_20 = arith.constant 1.000000e+00 : f32
    %112 = vector.broadcast %cst_20 : f32 to vector<16x16xf32>
    %113 = arith.addf %112, %111 : vector<16x16xf32>
    %114 = arith.divf %112, %113 : vector<16x16xf32>
    %115 = vector.extract_strided_slice %105 {offsets = [0, 16], sizes = [16, 16], strides = [1, 1]} : vector<16x48xf32> to vector<16x16xf32>
    %116 = vector.extract_strided_slice %106 {offsets = [0, 16], sizes = [16, 16], strides = [1, 1]} : vector<16x48xf32> to vector<16x16xf32>
    %117 = arith.addf %115, %116 : vector<16x16xf32>
    %118 = arith.negf %117 : vector<16x16xf32>
    %119 = math.exp %118 : vector<16x16xf32>
    %cst_21 = arith.constant 1.000000e+00 : f32
    %120 = vector.broadcast %cst_21 : f32 to vector<16x16xf32>
    %121 = arith.addf %120, %119 : vector<16x16xf32>
    %122 = arith.divf %120, %121 : vector<16x16xf32>
    %123 = vector.extract_strided_slice %105 {offsets = [0, 32], sizes = [16, 16], strides = [1, 1]} : vector<16x48xf32> to vector<16x16xf32>
    %124 = vector.extract_strided_slice %106 {offsets = [0, 32], sizes = [16, 16], strides = [1, 1]} : vector<16x48xf32> to vector<16x16xf32>
    %125 = arith.addf %124, %15 : vector<16x16xf32>
    %126 = arith.mulf %114, %125 : vector<16x16xf32>
    %127 = arith.addf %123, %126 : vector<16x16xf32>
    %128 = math.tanh %127 : vector<16x16xf32>
    %129 = arith.subf %74, %128 : vector<16x16xf32>
    %130 = arith.mulf %122, %129 : vector<16x16xf32>
    %131 = arith.addf %128, %130 : vector<16x16xf32>
    %132 = tpu.concatenate %104, %131 in 0 : vector<16x16xf32>, vector<16x16xf32> -> vector<32x16xf32>
    %133 = arith.truncf %132 : vector<32x16xf32> to vector<32x16xbf16>
    %cst_22 = arith.constant dense<0.000000e+00> : vector<32x96xf32>
    %134 = tpu.matmul %133, %8, %cst_22 {dimension_numbers = #tpu.dot_dimension_numbers<[1], [0], [0], [1], [0, 0, 1, 1], [], []>} : vector<32x16xbf16>, vector<16x96xbf16>, vector<32x96xf32> -> vector<32x96xf32>
    %135 = vector.extract_strided_slice %7 {offsets = [32, 0], sizes = [16, 48], strides = [1, 1]} : vector<256x96xf32> to vector<16x48xf32>
    %136 = vector.extract_strided_slice %134 {offsets = [0, 0], sizes = [16, 48], strides = [1, 1]} : vector<32x96xf32> to vector<16x48xf32>
    %137 = vector.extract_strided_slice %135 {offsets = [0, 0], sizes = [16, 16], strides = [1, 1]} : vector<16x48xf32> to vector<16x16xf32>
    %138 = vector.extract_strided_slice %136 {offsets = [0, 0], sizes = [16, 16], strides = [1, 1]} : vector<16x48xf32> to vector<16x16xf32>
    %139 = arith.addf %137, %138 : vector<16x16xf32>
    %140 = arith.negf %139 : vector<16x16xf32>
    %141 = math.exp %140 : vector<16x16xf32>
    %cst_23 = arith.constant 1.000000e+00 : f32
    %142 = vector.broadcast %cst_23 : f32 to vector<16x16xf32>
    %143 = arith.addf %142, %141 : vector<16x16xf32>
    %144 = arith.divf %142, %143 : vector<16x16xf32>
    %145 = vector.extract_strided_slice %135 {offsets = [0, 16], sizes = [16, 16], strides = [1, 1]} : vector<16x48xf32> to vector<16x16xf32>
    %146 = vector.extract_strided_slice %136 {offsets = [0, 16], sizes = [16, 16], strides = [1, 1]} : vector<16x48xf32> to vector<16x16xf32>
    %147 = arith.addf %145, %146 : vector<16x16xf32>
    %148 = arith.negf %147 : vector<16x16xf32>
    %149 = math.exp %148 : vector<16x16xf32>
    %cst_24 = arith.constant 1.000000e+00 : f32
    %150 = vector.broadcast %cst_24 : f32 to vector<16x16xf32>
    %151 = arith.addf %150, %149 : vector<16x16xf32>
    %152 = arith.divf %150, %151 : vector<16x16xf32>
    %153 = vector.extract_strided_slice %135 {offsets = [0, 32], sizes = [16, 16], strides = [1, 1]} : vector<16x48xf32> to vector<16x16xf32>
    %154 = vector.extract_strided_slice %136 {offsets = [0, 32], sizes = [16, 16], strides = [1, 1]} : vector<16x48xf32> to vector<16x16xf32>
    %155 = arith.addf %154, %12 : vector<16x16xf32>
    %156 = arith.mulf %144, %155 : vector<16x16xf32>
    %157 = arith.addf %153, %156 : vector<16x16xf32>
    %158 = math.tanh %157 : vector<16x16xf32>
    %159 = arith.subf %104, %158 : vector<16x16xf32>
    %160 = arith.mulf %152, %159 : vector<16x16xf32>
    %161 = arith.addf %158, %160 : vector<16x16xf32>
    %162 = vector.extract_strided_slice %7 {offsets = [208, 48], sizes = [16, 48], strides = [1, 1]} : vector<256x96xf32> to vector<16x48xf32>
    %163 = vector.extract_strided_slice %134 {offsets = [16, 48], sizes = [16, 48], strides = [1, 1]} : vector<32x96xf32> to vector<16x48xf32>
    %164 = vector.extract_strided_slice %162 {offsets = [0, 0], sizes = [16, 16], strides = [1, 1]} : vector<16x48xf32> to vector<16x16xf32>
    %165 = vector.extract_strided_slice %163 {offsets = [0, 0], sizes = [16, 16], strides = [1, 1]} : vector<16x48xf32> to vector<16x16xf32>
    %166 = arith.addf %164, %165 : vector<16x16xf32>
    %167 = arith.negf %166 : vector<16x16xf32>
    %168 = math.exp %167 : vector<16x16xf32>
    %cst_25 = arith.constant 1.000000e+00 : f32
    %169 = vector.broadcast %cst_25 : f32 to vector<16x16xf32>
    %170 = arith.addf %169, %168 : vector<16x16xf32>
    %171 = arith.divf %169, %170 : vector<16x16xf32>
    %172 = vector.extract_strided_slice %162 {offsets = [0, 16], sizes = [16, 16], strides = [1, 1]} : vector<16x48xf32> to vector<16x16xf32>
    %173 = vector.extract_strided_slice %163 {offsets = [0, 16], sizes = [16, 16], strides = [1, 1]} : vector<16x48xf32> to vector<16x16xf32>
    %174 = arith.addf %172, %173 : vector<16x16xf32>
    %175 = arith.negf %174 : vector<16x16xf32>
    %176 = math.exp %175 : vector<16x16xf32>
    %cst_26 = arith.constant 1.000000e+00 : f32
    %177 = vector.broadcast %cst_26 : f32 to vector<16x16xf32>
    %178 = arith.addf %177, %176 : vector<16x16xf32>
    %179 = arith.divf %177, %178 : vector<16x16xf32>
    %180 = vector.extract_strided_slice %162 {offsets = [0, 32], sizes = [16, 16], strides = [1, 1]} : vector<16x48xf32> to vector<16x16xf32>
    %181 = vector.extract_strided_slice %163 {offsets = [0, 32], sizes = [16, 16], strides = [1, 1]} : vector<16x48xf32> to vector<16x16xf32>
    %182 = arith.addf %181, %15 : vector<16x16xf32>
    %183 = arith.mulf %171, %182 : vector<16x16xf32>
    %184 = arith.addf %180, %183 : vector<16x16xf32>
    %185 = math.tanh %184 : vector<16x16xf32>
    %186 = arith.subf %131, %185 : vector<16x16xf32>
    %187 = arith.mulf %179, %186 : vector<16x16xf32>
    %188 = arith.addf %185, %187 : vector<16x16xf32>
    %189 = tpu.concatenate %161, %188 in 0 : vector<16x16xf32>, vector<16x16xf32> -> vector<32x16xf32>
    %190 = arith.truncf %189 : vector<32x16xf32> to vector<32x16xbf16>
    %cst_27 = arith.constant dense<0.000000e+00> : vector<32x96xf32>
    %191 = tpu.matmul %190, %8, %cst_27 {dimension_numbers = #tpu.dot_dimension_numbers<[1], [0], [0], [1], [0, 0, 1, 1], [], []>} : vector<32x16xbf16>, vector<16x96xbf16>, vector<32x96xf32> -> vector<32x96xf32>
    %192 = vector.extract_strided_slice %7 {offsets = [48, 0], sizes = [16, 48], strides = [1, 1]} : vector<256x96xf32> to vector<16x48xf32>
    %193 = vector.extract_strided_slice %191 {offsets = [0, 0], sizes = [16, 48], strides = [1, 1]} : vector<32x96xf32> to vector<16x48xf32>
    %194 = vector.extract_strided_slice %192 {offsets = [0, 0], sizes = [16, 16], strides = [1, 1]} : vector<16x48xf32> to vector<16x16xf32>
    %195 = vector.extract_strided_slice %193 {offsets = [0, 0], sizes = [16, 16], strides = [1, 1]} : vector<16x48xf32> to vector<16x16xf32>
    %196 = arith.addf %194, %195 : vector<16x16xf32>
    %197 = arith.negf %196 : vector<16x16xf32>
    %198 = math.exp %197 : vector<16x16xf32>
    %cst_28 = arith.constant 1.000000e+00 : f32
    %199 = vector.broadcast %cst_28 : f32 to vector<16x16xf32>
    %200 = arith.addf %199, %198 : vector<16x16xf32>
    %201 = arith.divf %199, %200 : vector<16x16xf32>
    %202 = vector.extract_strided_slice %192 {offsets = [0, 16], sizes = [16, 16], strides = [1, 1]} : vector<16x48xf32> to vector<16x16xf32>
    %203 = vector.extract_strided_slice %193 {offsets = [0, 16], sizes = [16, 16], strides = [1, 1]} : vector<16x48xf32> to vector<16x16xf32>
    %204 = arith.addf %202, %203 : vector<16x16xf32>
    %205 = arith.negf %204 : vector<16x16xf32>
    %206 = math.exp %205 : vector<16x16xf32>
    %cst_29 = arith.constant 1.000000e+00 : f32
    %207 = vector.broadcast %cst_29 : f32 to vector<16x16xf32>
    %208 = arith.addf %207, %206 : vector<16x16xf32>
    %209 = arith.divf %207, %208 : vector<16x16xf32>
    %210 = vector.extract_strided_slice %192 {offsets = [0, 32], sizes = [16, 16], strides = [1, 1]} : vector<16x48xf32> to vector<16x16xf32>
    %211 = vector.extract_strided_slice %193 {offsets = [0, 32], sizes = [16, 16], strides = [1, 1]} : vector<16x48xf32> to vector<16x16xf32>
    %212 = arith.addf %211, %12 : vector<16x16xf32>
    %213 = arith.mulf %201, %212 : vector<16x16xf32>
    %214 = arith.addf %210, %213 : vector<16x16xf32>
    %215 = math.tanh %214 : vector<16x16xf32>
    %216 = arith.subf %161, %215 : vector<16x16xf32>
    %217 = arith.mulf %209, %216 : vector<16x16xf32>
    %218 = arith.addf %215, %217 : vector<16x16xf32>
    %219 = vector.extract_strided_slice %7 {offsets = [192, 48], sizes = [16, 48], strides = [1, 1]} : vector<256x96xf32> to vector<16x48xf32>
    %220 = vector.extract_strided_slice %191 {offsets = [16, 48], sizes = [16, 48], strides = [1, 1]} : vector<32x96xf32> to vector<16x48xf32>
    %221 = vector.extract_strided_slice %219 {offsets = [0, 0], sizes = [16, 16], strides = [1, 1]} : vector<16x48xf32> to vector<16x16xf32>
    %222 = vector.extract_strided_slice %220 {offsets = [0, 0], sizes = [16, 16], strides = [1, 1]} : vector<16x48xf32> to vector<16x16xf32>
    %223 = arith.addf %221, %222 : vector<16x16xf32>
    %224 = arith.negf %223 : vector<16x16xf32>
    %225 = math.exp %224 : vector<16x16xf32>
    %cst_30 = arith.constant 1.000000e+00 : f32
    %226 = vector.broadcast %cst_30 : f32 to vector<16x16xf32>
    %227 = arith.addf %226, %225 : vector<16x16xf32>
    %228 = arith.divf %226, %227 : vector<16x16xf32>
    %229 = vector.extract_strided_slice %219 {offsets = [0, 16], sizes = [16, 16], strides = [1, 1]} : vector<16x48xf32> to vector<16x16xf32>
    %230 = vector.extract_strided_slice %220 {offsets = [0, 16], sizes = [16, 16], strides = [1, 1]} : vector<16x48xf32> to vector<16x16xf32>
    %231 = arith.addf %229, %230 : vector<16x16xf32>
    %232 = arith.negf %231 : vector<16x16xf32>
    %233 = math.exp %232 : vector<16x16xf32>
    %cst_31 = arith.constant 1.000000e+00 : f32
    %234 = vector.broadcast %cst_31 : f32 to vector<16x16xf32>
    %235 = arith.addf %234, %233 : vector<16x16xf32>
    %236 = arith.divf %234, %235 : vector<16x16xf32>
    %237 = vector.extract_strided_slice %219 {offsets = [0, 32], sizes = [16, 16], strides = [1, 1]} : vector<16x48xf32> to vector<16x16xf32>
    %238 = vector.extract_strided_slice %220 {offsets = [0, 32], sizes = [16, 16], strides = [1, 1]} : vector<16x48xf32> to vector<16x16xf32>
    %239 = arith.addf %238, %15 : vector<16x16xf32>
    %240 = arith.mulf %228, %239 : vector<16x16xf32>
    %241 = arith.addf %237, %240 : vector<16x16xf32>
    %242 = math.tanh %241 : vector<16x16xf32>
    %243 = arith.subf %188, %242 : vector<16x16xf32>
    %244 = arith.mulf %236, %243 : vector<16x16xf32>
    %245 = arith.addf %242, %244 : vector<16x16xf32>
    %246 = tpu.concatenate %218, %245 in 0 : vector<16x16xf32>, vector<16x16xf32> -> vector<32x16xf32>
    %247 = arith.truncf %246 : vector<32x16xf32> to vector<32x16xbf16>
    %cst_32 = arith.constant dense<0.000000e+00> : vector<32x96xf32>
    %248 = tpu.matmul %247, %8, %cst_32 {dimension_numbers = #tpu.dot_dimension_numbers<[1], [0], [0], [1], [0, 0, 1, 1], [], []>} : vector<32x16xbf16>, vector<16x96xbf16>, vector<32x96xf32> -> vector<32x96xf32>
    %249 = vector.extract_strided_slice %7 {offsets = [64, 0], sizes = [16, 48], strides = [1, 1]} : vector<256x96xf32> to vector<16x48xf32>
    %250 = vector.extract_strided_slice %248 {offsets = [0, 0], sizes = [16, 48], strides = [1, 1]} : vector<32x96xf32> to vector<16x48xf32>
    %251 = vector.extract_strided_slice %249 {offsets = [0, 0], sizes = [16, 16], strides = [1, 1]} : vector<16x48xf32> to vector<16x16xf32>
    %252 = vector.extract_strided_slice %250 {offsets = [0, 0], sizes = [16, 16], strides = [1, 1]} : vector<16x48xf32> to vector<16x16xf32>
    %253 = arith.addf %251, %252 : vector<16x16xf32>
    %254 = arith.negf %253 : vector<16x16xf32>
    %255 = math.exp %254 : vector<16x16xf32>
    %cst_33 = arith.constant 1.000000e+00 : f32
    %256 = vector.broadcast %cst_33 : f32 to vector<16x16xf32>
    %257 = arith.addf %256, %255 : vector<16x16xf32>
    %258 = arith.divf %256, %257 : vector<16x16xf32>
    %259 = vector.extract_strided_slice %249 {offsets = [0, 16], sizes = [16, 16], strides = [1, 1]} : vector<16x48xf32> to vector<16x16xf32>
    %260 = vector.extract_strided_slice %250 {offsets = [0, 16], sizes = [16, 16], strides = [1, 1]} : vector<16x48xf32> to vector<16x16xf32>
    %261 = arith.addf %259, %260 : vector<16x16xf32>
    %262 = arith.negf %261 : vector<16x16xf32>
    %263 = math.exp %262 : vector<16x16xf32>
    %cst_34 = arith.constant 1.000000e+00 : f32
    %264 = vector.broadcast %cst_34 : f32 to vector<16x16xf32>
    %265 = arith.addf %264, %263 : vector<16x16xf32>
    %266 = arith.divf %264, %265 : vector<16x16xf32>
    %267 = vector.extract_strided_slice %249 {offsets = [0, 32], sizes = [16, 16], strides = [1, 1]} : vector<16x48xf32> to vector<16x16xf32>
    %268 = vector.extract_strided_slice %250 {offsets = [0, 32], sizes = [16, 16], strides = [1, 1]} : vector<16x48xf32> to vector<16x16xf32>
    %269 = arith.addf %268, %12 : vector<16x16xf32>
    %270 = arith.mulf %258, %269 : vector<16x16xf32>
    %271 = arith.addf %267, %270 : vector<16x16xf32>
    %272 = math.tanh %271 : vector<16x16xf32>
    %273 = arith.subf %218, %272 : vector<16x16xf32>
    %274 = arith.mulf %266, %273 : vector<16x16xf32>
    %275 = arith.addf %272, %274 : vector<16x16xf32>
    %276 = vector.extract_strided_slice %7 {offsets = [176, 48], sizes = [16, 48], strides = [1, 1]} : vector<256x96xf32> to vector<16x48xf32>
    %277 = vector.extract_strided_slice %248 {offsets = [16, 48], sizes = [16, 48], strides = [1, 1]} : vector<32x96xf32> to vector<16x48xf32>
    %278 = vector.extract_strided_slice %276 {offsets = [0, 0], sizes = [16, 16], strides = [1, 1]} : vector<16x48xf32> to vector<16x16xf32>
    %279 = vector.extract_strided_slice %277 {offsets = [0, 0], sizes = [16, 16], strides = [1, 1]} : vector<16x48xf32> to vector<16x16xf32>
    %280 = arith.addf %278, %279 : vector<16x16xf32>
    %281 = arith.negf %280 : vector<16x16xf32>
    %282 = math.exp %281 : vector<16x16xf32>
    %cst_35 = arith.constant 1.000000e+00 : f32
    %283 = vector.broadcast %cst_35 : f32 to vector<16x16xf32>
    %284 = arith.addf %283, %282 : vector<16x16xf32>
    %285 = arith.divf %283, %284 : vector<16x16xf32>
    %286 = vector.extract_strided_slice %276 {offsets = [0, 16], sizes = [16, 16], strides = [1, 1]} : vector<16x48xf32> to vector<16x16xf32>
    %287 = vector.extract_strided_slice %277 {offsets = [0, 16], sizes = [16, 16], strides = [1, 1]} : vector<16x48xf32> to vector<16x16xf32>
    %288 = arith.addf %286, %287 : vector<16x16xf32>
    %289 = arith.negf %288 : vector<16x16xf32>
    %290 = math.exp %289 : vector<16x16xf32>
    %cst_36 = arith.constant 1.000000e+00 : f32
    %291 = vector.broadcast %cst_36 : f32 to vector<16x16xf32>
    %292 = arith.addf %291, %290 : vector<16x16xf32>
    %293 = arith.divf %291, %292 : vector<16x16xf32>
    %294 = vector.extract_strided_slice %276 {offsets = [0, 32], sizes = [16, 16], strides = [1, 1]} : vector<16x48xf32> to vector<16x16xf32>
    %295 = vector.extract_strided_slice %277 {offsets = [0, 32], sizes = [16, 16], strides = [1, 1]} : vector<16x48xf32> to vector<16x16xf32>
    %296 = arith.addf %295, %15 : vector<16x16xf32>
    %297 = arith.mulf %285, %296 : vector<16x16xf32>
    %298 = arith.addf %294, %297 : vector<16x16xf32>
    %299 = math.tanh %298 : vector<16x16xf32>
    %300 = arith.subf %245, %299 : vector<16x16xf32>
    %301 = arith.mulf %293, %300 : vector<16x16xf32>
    %302 = arith.addf %299, %301 : vector<16x16xf32>
    %303 = tpu.concatenate %275, %302 in 0 : vector<16x16xf32>, vector<16x16xf32> -> vector<32x16xf32>
    %304 = arith.truncf %303 : vector<32x16xf32> to vector<32x16xbf16>
    %cst_37 = arith.constant dense<0.000000e+00> : vector<32x96xf32>
    %305 = tpu.matmul %304, %8, %cst_37 {dimension_numbers = #tpu.dot_dimension_numbers<[1], [0], [0], [1], [0, 0, 1, 1], [], []>} : vector<32x16xbf16>, vector<16x96xbf16>, vector<32x96xf32> -> vector<32x96xf32>
    %306 = vector.extract_strided_slice %7 {offsets = [80, 0], sizes = [16, 48], strides = [1, 1]} : vector<256x96xf32> to vector<16x48xf32>
    %307 = vector.extract_strided_slice %305 {offsets = [0, 0], sizes = [16, 48], strides = [1, 1]} : vector<32x96xf32> to vector<16x48xf32>
    %308 = vector.extract_strided_slice %306 {offsets = [0, 0], sizes = [16, 16], strides = [1, 1]} : vector<16x48xf32> to vector<16x16xf32>
    %309 = vector.extract_strided_slice %307 {offsets = [0, 0], sizes = [16, 16], strides = [1, 1]} : vector<16x48xf32> to vector<16x16xf32>
    %310 = arith.addf %308, %309 : vector<16x16xf32>
    %311 = arith.negf %310 : vector<16x16xf32>
    %312 = math.exp %311 : vector<16x16xf32>
    %cst_38 = arith.constant 1.000000e+00 : f32
    %313 = vector.broadcast %cst_38 : f32 to vector<16x16xf32>
    %314 = arith.addf %313, %312 : vector<16x16xf32>
    %315 = arith.divf %313, %314 : vector<16x16xf32>
    %316 = vector.extract_strided_slice %306 {offsets = [0, 16], sizes = [16, 16], strides = [1, 1]} : vector<16x48xf32> to vector<16x16xf32>
    %317 = vector.extract_strided_slice %307 {offsets = [0, 16], sizes = [16, 16], strides = [1, 1]} : vector<16x48xf32> to vector<16x16xf32>
    %318 = arith.addf %316, %317 : vector<16x16xf32>
    %319 = arith.negf %318 : vector<16x16xf32>
    %320 = math.exp %319 : vector<16x16xf32>
    %cst_39 = arith.constant 1.000000e+00 : f32
    %321 = vector.broadcast %cst_39 : f32 to vector<16x16xf32>
    %322 = arith.addf %321, %320 : vector<16x16xf32>
    %323 = arith.divf %321, %322 : vector<16x16xf32>
    %324 = vector.extract_strided_slice %306 {offsets = [0, 32], sizes = [16, 16], strides = [1, 1]} : vector<16x48xf32> to vector<16x16xf32>
    %325 = vector.extract_strided_slice %307 {offsets = [0, 32], sizes = [16, 16], strides = [1, 1]} : vector<16x48xf32> to vector<16x16xf32>
    %326 = arith.addf %325, %12 : vector<16x16xf32>
    %327 = arith.mulf %315, %326 : vector<16x16xf32>
    %328 = arith.addf %324, %327 : vector<16x16xf32>
    %329 = math.tanh %328 : vector<16x16xf32>
    %330 = arith.subf %275, %329 : vector<16x16xf32>
    %331 = arith.mulf %323, %330 : vector<16x16xf32>
    %332 = arith.addf %329, %331 : vector<16x16xf32>
    %333 = vector.extract_strided_slice %7 {offsets = [160, 48], sizes = [16, 48], strides = [1, 1]} : vector<256x96xf32> to vector<16x48xf32>
    %334 = vector.extract_strided_slice %305 {offsets = [16, 48], sizes = [16, 48], strides = [1, 1]} : vector<32x96xf32> to vector<16x48xf32>
    %335 = vector.extract_strided_slice %333 {offsets = [0, 0], sizes = [16, 16], strides = [1, 1]} : vector<16x48xf32> to vector<16x16xf32>
    %336 = vector.extract_strided_slice %334 {offsets = [0, 0], sizes = [16, 16], strides = [1, 1]} : vector<16x48xf32> to vector<16x16xf32>
    %337 = arith.addf %335, %336 : vector<16x16xf32>
    %338 = arith.negf %337 : vector<16x16xf32>
    %339 = math.exp %338 : vector<16x16xf32>
    %cst_40 = arith.constant 1.000000e+00 : f32
    %340 = vector.broadcast %cst_40 : f32 to vector<16x16xf32>
    %341 = arith.addf %340, %339 : vector<16x16xf32>
    %342 = arith.divf %340, %341 : vector<16x16xf32>
    %343 = vector.extract_strided_slice %333 {offsets = [0, 16], sizes = [16, 16], strides = [1, 1]} : vector<16x48xf32> to vector<16x16xf32>
    %344 = vector.extract_strided_slice %334 {offsets = [0, 16], sizes = [16, 16], strides = [1, 1]} : vector<16x48xf32> to vector<16x16xf32>
    %345 = arith.addf %343, %344 : vector<16x16xf32>
    %346 = arith.negf %345 : vector<16x16xf32>
    %347 = math.exp %346 : vector<16x16xf32>
    %cst_41 = arith.constant 1.000000e+00 : f32
    %348 = vector.broadcast %cst_41 : f32 to vector<16x16xf32>
    %349 = arith.addf %348, %347 : vector<16x16xf32>
    %350 = arith.divf %348, %349 : vector<16x16xf32>
    %351 = vector.extract_strided_slice %333 {offsets = [0, 32], sizes = [16, 16], strides = [1, 1]} : vector<16x48xf32> to vector<16x16xf32>
    %352 = vector.extract_strided_slice %334 {offsets = [0, 32], sizes = [16, 16], strides = [1, 1]} : vector<16x48xf32> to vector<16x16xf32>
    %353 = arith.addf %352, %15 : vector<16x16xf32>
    %354 = arith.mulf %342, %353 : vector<16x16xf32>
    %355 = arith.addf %351, %354 : vector<16x16xf32>
    %356 = math.tanh %355 : vector<16x16xf32>
    %357 = arith.subf %302, %356 : vector<16x16xf32>
    %358 = arith.mulf %350, %357 : vector<16x16xf32>
    %359 = arith.addf %356, %358 : vector<16x16xf32>
    %360 = tpu.concatenate %332, %359 in 0 : vector<16x16xf32>, vector<16x16xf32> -> vector<32x16xf32>
    %361 = arith.truncf %360 : vector<32x16xf32> to vector<32x16xbf16>
    %cst_42 = arith.constant dense<0.000000e+00> : vector<32x96xf32>
    %362 = tpu.matmul %361, %8, %cst_42 {dimension_numbers = #tpu.dot_dimension_numbers<[1], [0], [0], [1], [0, 0, 1, 1], [], []>} : vector<32x16xbf16>, vector<16x96xbf16>, vector<32x96xf32> -> vector<32x96xf32>
    %363 = vector.extract_strided_slice %7 {offsets = [96, 0], sizes = [16, 48], strides = [1, 1]} : vector<256x96xf32> to vector<16x48xf32>
    %364 = vector.extract_strided_slice %362 {offsets = [0, 0], sizes = [16, 48], strides = [1, 1]} : vector<32x96xf32> to vector<16x48xf32>
    %365 = vector.extract_strided_slice %363 {offsets = [0, 0], sizes = [16, 16], strides = [1, 1]} : vector<16x48xf32> to vector<16x16xf32>
    %366 = vector.extract_strided_slice %364 {offsets = [0, 0], sizes = [16, 16], strides = [1, 1]} : vector<16x48xf32> to vector<16x16xf32>
    %367 = arith.addf %365, %366 : vector<16x16xf32>
    %368 = arith.negf %367 : vector<16x16xf32>
    %369 = math.exp %368 : vector<16x16xf32>
    %cst_43 = arith.constant 1.000000e+00 : f32
    %370 = vector.broadcast %cst_43 : f32 to vector<16x16xf32>
    %371 = arith.addf %370, %369 : vector<16x16xf32>
    %372 = arith.divf %370, %371 : vector<16x16xf32>
    %373 = vector.extract_strided_slice %363 {offsets = [0, 16], sizes = [16, 16], strides = [1, 1]} : vector<16x48xf32> to vector<16x16xf32>
    %374 = vector.extract_strided_slice %364 {offsets = [0, 16], sizes = [16, 16], strides = [1, 1]} : vector<16x48xf32> to vector<16x16xf32>
    %375 = arith.addf %373, %374 : vector<16x16xf32>
    %376 = arith.negf %375 : vector<16x16xf32>
    %377 = math.exp %376 : vector<16x16xf32>
    %cst_44 = arith.constant 1.000000e+00 : f32
    %378 = vector.broadcast %cst_44 : f32 to vector<16x16xf32>
    %379 = arith.addf %378, %377 : vector<16x16xf32>
    %380 = arith.divf %378, %379 : vector<16x16xf32>
    %381 = vector.extract_strided_slice %363 {offsets = [0, 32], sizes = [16, 16], strides = [1, 1]} : vector<16x48xf32> to vector<16x16xf32>
    %382 = vector.extract_strided_slice %364 {offsets = [0, 32], sizes = [16, 16], strides = [1, 1]} : vector<16x48xf32> to vector<16x16xf32>
    %383 = arith.addf %382, %12 : vector<16x16xf32>
    %384 = arith.mulf %372, %383 : vector<16x16xf32>
    %385 = arith.addf %381, %384 : vector<16x16xf32>
    %386 = math.tanh %385 : vector<16x16xf32>
    %387 = arith.subf %332, %386 : vector<16x16xf32>
    %388 = arith.mulf %380, %387 : vector<16x16xf32>
    %389 = arith.addf %386, %388 : vector<16x16xf32>
    %390 = vector.extract_strided_slice %7 {offsets = [144, 48], sizes = [16, 48], strides = [1, 1]} : vector<256x96xf32> to vector<16x48xf32>
    %391 = vector.extract_strided_slice %362 {offsets = [16, 48], sizes = [16, 48], strides = [1, 1]} : vector<32x96xf32> to vector<16x48xf32>
    %392 = vector.extract_strided_slice %390 {offsets = [0, 0], sizes = [16, 16], strides = [1, 1]} : vector<16x48xf32> to vector<16x16xf32>
    %393 = vector.extract_strided_slice %391 {offsets = [0, 0], sizes = [16, 16], strides = [1, 1]} : vector<16x48xf32> to vector<16x16xf32>
    %394 = arith.addf %392, %393 : vector<16x16xf32>
    %395 = arith.negf %394 : vector<16x16xf32>
    %396 = math.exp %395 : vector<16x16xf32>
    %cst_45 = arith.constant 1.000000e+00 : f32
    %397 = vector.broadcast %cst_45 : f32 to vector<16x16xf32>
    %398 = arith.addf %397, %396 : vector<16x16xf32>
    %399 = arith.divf %397, %398 : vector<16x16xf32>
    %400 = vector.extract_strided_slice %390 {offsets = [0, 16], sizes = [16, 16], strides = [1, 1]} : vector<16x48xf32> to vector<16x16xf32>
    %401 = vector.extract_strided_slice %391 {offsets = [0, 16], sizes = [16, 16], strides = [1, 1]} : vector<16x48xf32> to vector<16x16xf32>
    %402 = arith.addf %400, %401 : vector<16x16xf32>
    %403 = arith.negf %402 : vector<16x16xf32>
    %404 = math.exp %403 : vector<16x16xf32>
    %cst_46 = arith.constant 1.000000e+00 : f32
    %405 = vector.broadcast %cst_46 : f32 to vector<16x16xf32>
    %406 = arith.addf %405, %404 : vector<16x16xf32>
    %407 = arith.divf %405, %406 : vector<16x16xf32>
    %408 = vector.extract_strided_slice %390 {offsets = [0, 32], sizes = [16, 16], strides = [1, 1]} : vector<16x48xf32> to vector<16x16xf32>
    %409 = vector.extract_strided_slice %391 {offsets = [0, 32], sizes = [16, 16], strides = [1, 1]} : vector<16x48xf32> to vector<16x16xf32>
    %410 = arith.addf %409, %15 : vector<16x16xf32>
    %411 = arith.mulf %399, %410 : vector<16x16xf32>
    %412 = arith.addf %408, %411 : vector<16x16xf32>
    %413 = math.tanh %412 : vector<16x16xf32>
    %414 = arith.subf %359, %413 : vector<16x16xf32>
    %415 = arith.mulf %407, %414 : vector<16x16xf32>
    %416 = arith.addf %413, %415 : vector<16x16xf32>
    %417 = tpu.concatenate %389, %416 in 0 : vector<16x16xf32>, vector<16x16xf32> -> vector<32x16xf32>
    %418 = arith.truncf %417 : vector<32x16xf32> to vector<32x16xbf16>
    %cst_47 = arith.constant dense<0.000000e+00> : vector<32x96xf32>
    %419 = tpu.matmul %418, %8, %cst_47 {dimension_numbers = #tpu.dot_dimension_numbers<[1], [0], [0], [1], [0, 0, 1, 1], [], []>} : vector<32x16xbf16>, vector<16x96xbf16>, vector<32x96xf32> -> vector<32x96xf32>
    %420 = vector.extract_strided_slice %7 {offsets = [112, 0], sizes = [16, 48], strides = [1, 1]} : vector<256x96xf32> to vector<16x48xf32>
    %421 = vector.extract_strided_slice %419 {offsets = [0, 0], sizes = [16, 48], strides = [1, 1]} : vector<32x96xf32> to vector<16x48xf32>
    %422 = vector.extract_strided_slice %420 {offsets = [0, 0], sizes = [16, 16], strides = [1, 1]} : vector<16x48xf32> to vector<16x16xf32>
    %423 = vector.extract_strided_slice %421 {offsets = [0, 0], sizes = [16, 16], strides = [1, 1]} : vector<16x48xf32> to vector<16x16xf32>
    %424 = arith.addf %422, %423 : vector<16x16xf32>
    %425 = arith.negf %424 : vector<16x16xf32>
    %426 = math.exp %425 : vector<16x16xf32>
    %cst_48 = arith.constant 1.000000e+00 : f32
    %427 = vector.broadcast %cst_48 : f32 to vector<16x16xf32>
    %428 = arith.addf %427, %426 : vector<16x16xf32>
    %429 = arith.divf %427, %428 : vector<16x16xf32>
    %430 = vector.extract_strided_slice %420 {offsets = [0, 16], sizes = [16, 16], strides = [1, 1]} : vector<16x48xf32> to vector<16x16xf32>
    %431 = vector.extract_strided_slice %421 {offsets = [0, 16], sizes = [16, 16], strides = [1, 1]} : vector<16x48xf32> to vector<16x16xf32>
    %432 = arith.addf %430, %431 : vector<16x16xf32>
    %433 = arith.negf %432 : vector<16x16xf32>
    %434 = math.exp %433 : vector<16x16xf32>
    %cst_49 = arith.constant 1.000000e+00 : f32
    %435 = vector.broadcast %cst_49 : f32 to vector<16x16xf32>
    %436 = arith.addf %435, %434 : vector<16x16xf32>
    %437 = arith.divf %435, %436 : vector<16x16xf32>
    %438 = vector.extract_strided_slice %420 {offsets = [0, 32], sizes = [16, 16], strides = [1, 1]} : vector<16x48xf32> to vector<16x16xf32>
    %439 = vector.extract_strided_slice %421 {offsets = [0, 32], sizes = [16, 16], strides = [1, 1]} : vector<16x48xf32> to vector<16x16xf32>
    %440 = arith.addf %439, %12 : vector<16x16xf32>
    %441 = arith.mulf %429, %440 : vector<16x16xf32>
    %442 = arith.addf %438, %441 : vector<16x16xf32>
    %443 = math.tanh %442 : vector<16x16xf32>
    %444 = arith.subf %389, %443 : vector<16x16xf32>
    %445 = arith.mulf %437, %444 : vector<16x16xf32>
    %446 = arith.addf %443, %445 : vector<16x16xf32>
    %447 = vector.extract_strided_slice %7 {offsets = [128, 48], sizes = [16, 48], strides = [1, 1]} : vector<256x96xf32> to vector<16x48xf32>
    %448 = vector.extract_strided_slice %419 {offsets = [16, 48], sizes = [16, 48], strides = [1, 1]} : vector<32x96xf32> to vector<16x48xf32>
    %449 = vector.extract_strided_slice %447 {offsets = [0, 0], sizes = [16, 16], strides = [1, 1]} : vector<16x48xf32> to vector<16x16xf32>
    %450 = vector.extract_strided_slice %448 {offsets = [0, 0], sizes = [16, 16], strides = [1, 1]} : vector<16x48xf32> to vector<16x16xf32>
    %451 = arith.addf %449, %450 : vector<16x16xf32>
    %452 = arith.negf %451 : vector<16x16xf32>
    %453 = math.exp %452 : vector<16x16xf32>
    %cst_50 = arith.constant 1.000000e+00 : f32
    %454 = vector.broadcast %cst_50 : f32 to vector<16x16xf32>
    %455 = arith.addf %454, %453 : vector<16x16xf32>
    %456 = arith.divf %454, %455 : vector<16x16xf32>
    %457 = vector.extract_strided_slice %447 {offsets = [0, 16], sizes = [16, 16], strides = [1, 1]} : vector<16x48xf32> to vector<16x16xf32>
    %458 = vector.extract_strided_slice %448 {offsets = [0, 16], sizes = [16, 16], strides = [1, 1]} : vector<16x48xf32> to vector<16x16xf32>
    %459 = arith.addf %457, %458 : vector<16x16xf32>
    %460 = arith.negf %459 : vector<16x16xf32>
    %461 = math.exp %460 : vector<16x16xf32>
    %cst_51 = arith.constant 1.000000e+00 : f32
    %462 = vector.broadcast %cst_51 : f32 to vector<16x16xf32>
    %463 = arith.addf %462, %461 : vector<16x16xf32>
    %464 = arith.divf %462, %463 : vector<16x16xf32>
    %465 = vector.extract_strided_slice %447 {offsets = [0, 32], sizes = [16, 16], strides = [1, 1]} : vector<16x48xf32> to vector<16x16xf32>
    %466 = vector.extract_strided_slice %448 {offsets = [0, 32], sizes = [16, 16], strides = [1, 1]} : vector<16x48xf32> to vector<16x16xf32>
    %467 = arith.addf %466, %15 : vector<16x16xf32>
    %468 = arith.mulf %456, %467 : vector<16x16xf32>
    %469 = arith.addf %465, %468 : vector<16x16xf32>
    %470 = math.tanh %469 : vector<16x16xf32>
    %471 = arith.subf %416, %470 : vector<16x16xf32>
    %472 = arith.mulf %464, %471 : vector<16x16xf32>
    %473 = arith.addf %470, %472 : vector<16x16xf32>
    %474 = tpu.concatenate %446, %473 in 0 : vector<16x16xf32>, vector<16x16xf32> -> vector<32x16xf32>
    %475 = arith.truncf %474 : vector<32x16xf32> to vector<32x16xbf16>
    %cst_52 = arith.constant dense<0.000000e+00> : vector<32x96xf32>
    %476 = tpu.matmul %475, %8, %cst_52 {dimension_numbers = #tpu.dot_dimension_numbers<[1], [0], [0], [1], [0, 0, 1, 1], [], []>} : vector<32x16xbf16>, vector<16x96xbf16>, vector<32x96xf32> -> vector<32x96xf32>
    %477 = vector.extract_strided_slice %7 {offsets = [128, 0], sizes = [16, 48], strides = [1, 1]} : vector<256x96xf32> to vector<16x48xf32>
    %478 = vector.extract_strided_slice %476 {offsets = [0, 0], sizes = [16, 48], strides = [1, 1]} : vector<32x96xf32> to vector<16x48xf32>
    %479 = vector.extract_strided_slice %477 {offsets = [0, 0], sizes = [16, 16], strides = [1, 1]} : vector<16x48xf32> to vector<16x16xf32>
    %480 = vector.extract_strided_slice %478 {offsets = [0, 0], sizes = [16, 16], strides = [1, 1]} : vector<16x48xf32> to vector<16x16xf32>
    %481 = arith.addf %479, %480 : vector<16x16xf32>
    %482 = arith.negf %481 : vector<16x16xf32>
    %483 = math.exp %482 : vector<16x16xf32>
    %cst_53 = arith.constant 1.000000e+00 : f32
    %484 = vector.broadcast %cst_53 : f32 to vector<16x16xf32>
    %485 = arith.addf %484, %483 : vector<16x16xf32>
    %486 = arith.divf %484, %485 : vector<16x16xf32>
    %487 = vector.extract_strided_slice %477 {offsets = [0, 16], sizes = [16, 16], strides = [1, 1]} : vector<16x48xf32> to vector<16x16xf32>
    %488 = vector.extract_strided_slice %478 {offsets = [0, 16], sizes = [16, 16], strides = [1, 1]} : vector<16x48xf32> to vector<16x16xf32>
    %489 = arith.addf %487, %488 : vector<16x16xf32>
    %490 = arith.negf %489 : vector<16x16xf32>
    %491 = math.exp %490 : vector<16x16xf32>
    %cst_54 = arith.constant 1.000000e+00 : f32
    %492 = vector.broadcast %cst_54 : f32 to vector<16x16xf32>
    %493 = arith.addf %492, %491 : vector<16x16xf32>
    %494 = arith.divf %492, %493 : vector<16x16xf32>
    %495 = vector.extract_strided_slice %477 {offsets = [0, 32], sizes = [16, 16], strides = [1, 1]} : vector<16x48xf32> to vector<16x16xf32>
    %496 = vector.extract_strided_slice %478 {offsets = [0, 32], sizes = [16, 16], strides = [1, 1]} : vector<16x48xf32> to vector<16x16xf32>
    %497 = arith.addf %496, %12 : vector<16x16xf32>
    %498 = arith.mulf %486, %497 : vector<16x16xf32>
    %499 = arith.addf %495, %498 : vector<16x16xf32>
    %500 = math.tanh %499 : vector<16x16xf32>
    %501 = arith.subf %446, %500 : vector<16x16xf32>
    %502 = arith.mulf %494, %501 : vector<16x16xf32>
    %503 = arith.addf %500, %502 : vector<16x16xf32>
    %504 = vector.extract_strided_slice %7 {offsets = [112, 48], sizes = [16, 48], strides = [1, 1]} : vector<256x96xf32> to vector<16x48xf32>
    %505 = vector.extract_strided_slice %476 {offsets = [16, 48], sizes = [16, 48], strides = [1, 1]} : vector<32x96xf32> to vector<16x48xf32>
    %506 = vector.extract_strided_slice %504 {offsets = [0, 0], sizes = [16, 16], strides = [1, 1]} : vector<16x48xf32> to vector<16x16xf32>
    %507 = vector.extract_strided_slice %505 {offsets = [0, 0], sizes = [16, 16], strides = [1, 1]} : vector<16x48xf32> to vector<16x16xf32>
    %508 = arith.addf %506, %507 : vector<16x16xf32>
    %509 = arith.negf %508 : vector<16x16xf32>
    %510 = math.exp %509 : vector<16x16xf32>
    %cst_55 = arith.constant 1.000000e+00 : f32
    %511 = vector.broadcast %cst_55 : f32 to vector<16x16xf32>
    %512 = arith.addf %511, %510 : vector<16x16xf32>
    %513 = arith.divf %511, %512 : vector<16x16xf32>
    %514 = vector.extract_strided_slice %504 {offsets = [0, 16], sizes = [16, 16], strides = [1, 1]} : vector<16x48xf32> to vector<16x16xf32>
    %515 = vector.extract_strided_slice %505 {offsets = [0, 16], sizes = [16, 16], strides = [1, 1]} : vector<16x48xf32> to vector<16x16xf32>
    %516 = arith.addf %514, %515 : vector<16x16xf32>
    %517 = arith.negf %516 : vector<16x16xf32>
    %518 = math.exp %517 : vector<16x16xf32>
    %cst_56 = arith.constant 1.000000e+00 : f32
    %519 = vector.broadcast %cst_56 : f32 to vector<16x16xf32>
    %520 = arith.addf %519, %518 : vector<16x16xf32>
    %521 = arith.divf %519, %520 : vector<16x16xf32>
    %522 = vector.extract_strided_slice %504 {offsets = [0, 32], sizes = [16, 16], strides = [1, 1]} : vector<16x48xf32> to vector<16x16xf32>
    %523 = vector.extract_strided_slice %505 {offsets = [0, 32], sizes = [16, 16], strides = [1, 1]} : vector<16x48xf32> to vector<16x16xf32>
    %524 = arith.addf %523, %15 : vector<16x16xf32>
    %525 = arith.mulf %513, %524 : vector<16x16xf32>
    %526 = arith.addf %522, %525 : vector<16x16xf32>
    %527 = math.tanh %526 : vector<16x16xf32>
    %528 = arith.subf %473, %527 : vector<16x16xf32>
    %529 = arith.mulf %521, %528 : vector<16x16xf32>
    %530 = arith.addf %527, %529 : vector<16x16xf32>
    %531 = tpu.concatenate %503, %530 in 0 : vector<16x16xf32>, vector<16x16xf32> -> vector<32x16xf32>
    %532 = arith.truncf %531 : vector<32x16xf32> to vector<32x16xbf16>
    %cst_57 = arith.constant dense<0.000000e+00> : vector<32x96xf32>
    %533 = tpu.matmul %532, %8, %cst_57 {dimension_numbers = #tpu.dot_dimension_numbers<[1], [0], [0], [1], [0, 0, 1, 1], [], []>} : vector<32x16xbf16>, vector<16x96xbf16>, vector<32x96xf32> -> vector<32x96xf32>
    %534 = vector.extract_strided_slice %7 {offsets = [144, 0], sizes = [16, 48], strides = [1, 1]} : vector<256x96xf32> to vector<16x48xf32>
    %535 = vector.extract_strided_slice %533 {offsets = [0, 0], sizes = [16, 48], strides = [1, 1]} : vector<32x96xf32> to vector<16x48xf32>
    %536 = vector.extract_strided_slice %534 {offsets = [0, 0], sizes = [16, 16], strides = [1, 1]} : vector<16x48xf32> to vector<16x16xf32>
    %537 = vector.extract_strided_slice %535 {offsets = [0, 0], sizes = [16, 16], strides = [1, 1]} : vector<16x48xf32> to vector<16x16xf32>
    %538 = arith.addf %536, %537 : vector<16x16xf32>
    %539 = arith.negf %538 : vector<16x16xf32>
    %540 = math.exp %539 : vector<16x16xf32>
    %cst_58 = arith.constant 1.000000e+00 : f32
    %541 = vector.broadcast %cst_58 : f32 to vector<16x16xf32>
    %542 = arith.addf %541, %540 : vector<16x16xf32>
    %543 = arith.divf %541, %542 : vector<16x16xf32>
    %544 = vector.extract_strided_slice %534 {offsets = [0, 16], sizes = [16, 16], strides = [1, 1]} : vector<16x48xf32> to vector<16x16xf32>
    %545 = vector.extract_strided_slice %535 {offsets = [0, 16], sizes = [16, 16], strides = [1, 1]} : vector<16x48xf32> to vector<16x16xf32>
    %546 = arith.addf %544, %545 : vector<16x16xf32>
    %547 = arith.negf %546 : vector<16x16xf32>
    %548 = math.exp %547 : vector<16x16xf32>
    %cst_59 = arith.constant 1.000000e+00 : f32
    %549 = vector.broadcast %cst_59 : f32 to vector<16x16xf32>
    %550 = arith.addf %549, %548 : vector<16x16xf32>
    %551 = arith.divf %549, %550 : vector<16x16xf32>
    %552 = vector.extract_strided_slice %534 {offsets = [0, 32], sizes = [16, 16], strides = [1, 1]} : vector<16x48xf32> to vector<16x16xf32>
    %553 = vector.extract_strided_slice %535 {offsets = [0, 32], sizes = [16, 16], strides = [1, 1]} : vector<16x48xf32> to vector<16x16xf32>
    %554 = arith.addf %553, %12 : vector<16x16xf32>
    %555 = arith.mulf %543, %554 : vector<16x16xf32>
    %556 = arith.addf %552, %555 : vector<16x16xf32>
    %557 = math.tanh %556 : vector<16x16xf32>
    %558 = arith.subf %503, %557 : vector<16x16xf32>
    %559 = arith.mulf %551, %558 : vector<16x16xf32>
    %560 = arith.addf %557, %559 : vector<16x16xf32>
    %561 = vector.extract_strided_slice %7 {offsets = [96, 48], sizes = [16, 48], strides = [1, 1]} : vector<256x96xf32> to vector<16x48xf32>
    %562 = vector.extract_strided_slice %533 {offsets = [16, 48], sizes = [16, 48], strides = [1, 1]} : vector<32x96xf32> to vector<16x48xf32>
    %563 = vector.extract_strided_slice %561 {offsets = [0, 0], sizes = [16, 16], strides = [1, 1]} : vector<16x48xf32> to vector<16x16xf32>
    %564 = vector.extract_strided_slice %562 {offsets = [0, 0], sizes = [16, 16], strides = [1, 1]} : vector<16x48xf32> to vector<16x16xf32>
    %565 = arith.addf %563, %564 : vector<16x16xf32>
    %566 = arith.negf %565 : vector<16x16xf32>
    %567 = math.exp %566 : vector<16x16xf32>
    %cst_60 = arith.constant 1.000000e+00 : f32
    %568 = vector.broadcast %cst_60 : f32 to vector<16x16xf32>
    %569 = arith.addf %568, %567 : vector<16x16xf32>
    %570 = arith.divf %568, %569 : vector<16x16xf32>
    %571 = vector.extract_strided_slice %561 {offsets = [0, 16], sizes = [16, 16], strides = [1, 1]} : vector<16x48xf32> to vector<16x16xf32>
    %572 = vector.extract_strided_slice %562 {offsets = [0, 16], sizes = [16, 16], strides = [1, 1]} : vector<16x48xf32> to vector<16x16xf32>
    %573 = arith.addf %571, %572 : vector<16x16xf32>
    %574 = arith.negf %573 : vector<16x16xf32>
    %575 = math.exp %574 : vector<16x16xf32>
    %cst_61 = arith.constant 1.000000e+00 : f32
    %576 = vector.broadcast %cst_61 : f32 to vector<16x16xf32>
    %577 = arith.addf %576, %575 : vector<16x16xf32>
    %578 = arith.divf %576, %577 : vector<16x16xf32>
    %579 = vector.extract_strided_slice %561 {offsets = [0, 32], sizes = [16, 16], strides = [1, 1]} : vector<16x48xf32> to vector<16x16xf32>
    %580 = vector.extract_strided_slice %562 {offsets = [0, 32], sizes = [16, 16], strides = [1, 1]} : vector<16x48xf32> to vector<16x16xf32>
    %581 = arith.addf %580, %15 : vector<16x16xf32>
    %582 = arith.mulf %570, %581 : vector<16x16xf32>
    %583 = arith.addf %579, %582 : vector<16x16xf32>
    %584 = math.tanh %583 : vector<16x16xf32>
    %585 = arith.subf %530, %584 : vector<16x16xf32>
    %586 = arith.mulf %578, %585 : vector<16x16xf32>
    %587 = arith.addf %584, %586 : vector<16x16xf32>
    %588 = tpu.concatenate %560, %587 in 0 : vector<16x16xf32>, vector<16x16xf32> -> vector<32x16xf32>
    %589 = arith.truncf %588 : vector<32x16xf32> to vector<32x16xbf16>
    %cst_62 = arith.constant dense<0.000000e+00> : vector<32x96xf32>
    %590 = tpu.matmul %589, %8, %cst_62 {dimension_numbers = #tpu.dot_dimension_numbers<[1], [0], [0], [1], [0, 0, 1, 1], [], []>} : vector<32x16xbf16>, vector<16x96xbf16>, vector<32x96xf32> -> vector<32x96xf32>
    %591 = vector.extract_strided_slice %7 {offsets = [160, 0], sizes = [16, 48], strides = [1, 1]} : vector<256x96xf32> to vector<16x48xf32>
    %592 = vector.extract_strided_slice %590 {offsets = [0, 0], sizes = [16, 48], strides = [1, 1]} : vector<32x96xf32> to vector<16x48xf32>
    %593 = vector.extract_strided_slice %591 {offsets = [0, 0], sizes = [16, 16], strides = [1, 1]} : vector<16x48xf32> to vector<16x16xf32>
    %594 = vector.extract_strided_slice %592 {offsets = [0, 0], sizes = [16, 16], strides = [1, 1]} : vector<16x48xf32> to vector<16x16xf32>
    %595 = arith.addf %593, %594 : vector<16x16xf32>
    %596 = arith.negf %595 : vector<16x16xf32>
    %597 = math.exp %596 : vector<16x16xf32>
    %cst_63 = arith.constant 1.000000e+00 : f32
    %598 = vector.broadcast %cst_63 : f32 to vector<16x16xf32>
    %599 = arith.addf %598, %597 : vector<16x16xf32>
    %600 = arith.divf %598, %599 : vector<16x16xf32>
    %601 = vector.extract_strided_slice %591 {offsets = [0, 16], sizes = [16, 16], strides = [1, 1]} : vector<16x48xf32> to vector<16x16xf32>
    %602 = vector.extract_strided_slice %592 {offsets = [0, 16], sizes = [16, 16], strides = [1, 1]} : vector<16x48xf32> to vector<16x16xf32>
    %603 = arith.addf %601, %602 : vector<16x16xf32>
    %604 = arith.negf %603 : vector<16x16xf32>
    %605 = math.exp %604 : vector<16x16xf32>
    %cst_64 = arith.constant 1.000000e+00 : f32
    %606 = vector.broadcast %cst_64 : f32 to vector<16x16xf32>
    %607 = arith.addf %606, %605 : vector<16x16xf32>
    %608 = arith.divf %606, %607 : vector<16x16xf32>
    %609 = vector.extract_strided_slice %591 {offsets = [0, 32], sizes = [16, 16], strides = [1, 1]} : vector<16x48xf32> to vector<16x16xf32>
    %610 = vector.extract_strided_slice %592 {offsets = [0, 32], sizes = [16, 16], strides = [1, 1]} : vector<16x48xf32> to vector<16x16xf32>
    %611 = arith.addf %610, %12 : vector<16x16xf32>
    %612 = arith.mulf %600, %611 : vector<16x16xf32>
    %613 = arith.addf %609, %612 : vector<16x16xf32>
    %614 = math.tanh %613 : vector<16x16xf32>
    %615 = arith.subf %560, %614 : vector<16x16xf32>
    %616 = arith.mulf %608, %615 : vector<16x16xf32>
    %617 = arith.addf %614, %616 : vector<16x16xf32>
    %618 = vector.extract_strided_slice %7 {offsets = [80, 48], sizes = [16, 48], strides = [1, 1]} : vector<256x96xf32> to vector<16x48xf32>
    %619 = vector.extract_strided_slice %590 {offsets = [16, 48], sizes = [16, 48], strides = [1, 1]} : vector<32x96xf32> to vector<16x48xf32>
    %620 = vector.extract_strided_slice %618 {offsets = [0, 0], sizes = [16, 16], strides = [1, 1]} : vector<16x48xf32> to vector<16x16xf32>
    %621 = vector.extract_strided_slice %619 {offsets = [0, 0], sizes = [16, 16], strides = [1, 1]} : vector<16x48xf32> to vector<16x16xf32>
    %622 = arith.addf %620, %621 : vector<16x16xf32>
    %623 = arith.negf %622 : vector<16x16xf32>
    %624 = math.exp %623 : vector<16x16xf32>
    %cst_65 = arith.constant 1.000000e+00 : f32
    %625 = vector.broadcast %cst_65 : f32 to vector<16x16xf32>
    %626 = arith.addf %625, %624 : vector<16x16xf32>
    %627 = arith.divf %625, %626 : vector<16x16xf32>
    %628 = vector.extract_strided_slice %618 {offsets = [0, 16], sizes = [16, 16], strides = [1, 1]} : vector<16x48xf32> to vector<16x16xf32>
    %629 = vector.extract_strided_slice %619 {offsets = [0, 16], sizes = [16, 16], strides = [1, 1]} : vector<16x48xf32> to vector<16x16xf32>
    %630 = arith.addf %628, %629 : vector<16x16xf32>
    %631 = arith.negf %630 : vector<16x16xf32>
    %632 = math.exp %631 : vector<16x16xf32>
    %cst_66 = arith.constant 1.000000e+00 : f32
    %633 = vector.broadcast %cst_66 : f32 to vector<16x16xf32>
    %634 = arith.addf %633, %632 : vector<16x16xf32>
    %635 = arith.divf %633, %634 : vector<16x16xf32>
    %636 = vector.extract_strided_slice %618 {offsets = [0, 32], sizes = [16, 16], strides = [1, 1]} : vector<16x48xf32> to vector<16x16xf32>
    %637 = vector.extract_strided_slice %619 {offsets = [0, 32], sizes = [16, 16], strides = [1, 1]} : vector<16x48xf32> to vector<16x16xf32>
    %638 = arith.addf %637, %15 : vector<16x16xf32>
    %639 = arith.mulf %627, %638 : vector<16x16xf32>
    %640 = arith.addf %636, %639 : vector<16x16xf32>
    %641 = math.tanh %640 : vector<16x16xf32>
    %642 = arith.subf %587, %641 : vector<16x16xf32>
    %643 = arith.mulf %635, %642 : vector<16x16xf32>
    %644 = arith.addf %641, %643 : vector<16x16xf32>
    %645 = tpu.concatenate %617, %644 in 0 : vector<16x16xf32>, vector<16x16xf32> -> vector<32x16xf32>
    %646 = arith.truncf %645 : vector<32x16xf32> to vector<32x16xbf16>
    %cst_67 = arith.constant dense<0.000000e+00> : vector<32x96xf32>
    %647 = tpu.matmul %646, %8, %cst_67 {dimension_numbers = #tpu.dot_dimension_numbers<[1], [0], [0], [1], [0, 0, 1, 1], [], []>} : vector<32x16xbf16>, vector<16x96xbf16>, vector<32x96xf32> -> vector<32x96xf32>
    %648 = vector.extract_strided_slice %7 {offsets = [176, 0], sizes = [16, 48], strides = [1, 1]} : vector<256x96xf32> to vector<16x48xf32>
    %649 = vector.extract_strided_slice %647 {offsets = [0, 0], sizes = [16, 48], strides = [1, 1]} : vector<32x96xf32> to vector<16x48xf32>
    %650 = vector.extract_strided_slice %648 {offsets = [0, 0], sizes = [16, 16], strides = [1, 1]} : vector<16x48xf32> to vector<16x16xf32>
    %651 = vector.extract_strided_slice %649 {offsets = [0, 0], sizes = [16, 16], strides = [1, 1]} : vector<16x48xf32> to vector<16x16xf32>
    %652 = arith.addf %650, %651 : vector<16x16xf32>
    %653 = arith.negf %652 : vector<16x16xf32>
    %654 = math.exp %653 : vector<16x16xf32>
    %cst_68 = arith.constant 1.000000e+00 : f32
    %655 = vector.broadcast %cst_68 : f32 to vector<16x16xf32>
    %656 = arith.addf %655, %654 : vector<16x16xf32>
    %657 = arith.divf %655, %656 : vector<16x16xf32>
    %658 = vector.extract_strided_slice %648 {offsets = [0, 16], sizes = [16, 16], strides = [1, 1]} : vector<16x48xf32> to vector<16x16xf32>
    %659 = vector.extract_strided_slice %649 {offsets = [0, 16], sizes = [16, 16], strides = [1, 1]} : vector<16x48xf32> to vector<16x16xf32>
    %660 = arith.addf %658, %659 : vector<16x16xf32>
    %661 = arith.negf %660 : vector<16x16xf32>
    %662 = math.exp %661 : vector<16x16xf32>
    %cst_69 = arith.constant 1.000000e+00 : f32
    %663 = vector.broadcast %cst_69 : f32 to vector<16x16xf32>
    %664 = arith.addf %663, %662 : vector<16x16xf32>
    %665 = arith.divf %663, %664 : vector<16x16xf32>
    %666 = vector.extract_strided_slice %648 {offsets = [0, 32], sizes = [16, 16], strides = [1, 1]} : vector<16x48xf32> to vector<16x16xf32>
    %667 = vector.extract_strided_slice %649 {offsets = [0, 32], sizes = [16, 16], strides = [1, 1]} : vector<16x48xf32> to vector<16x16xf32>
    %668 = arith.addf %667, %12 : vector<16x16xf32>
    %669 = arith.mulf %657, %668 : vector<16x16xf32>
    %670 = arith.addf %666, %669 : vector<16x16xf32>
    %671 = math.tanh %670 : vector<16x16xf32>
    %672 = arith.subf %617, %671 : vector<16x16xf32>
    %673 = arith.mulf %665, %672 : vector<16x16xf32>
    %674 = arith.addf %671, %673 : vector<16x16xf32>
    %675 = vector.extract_strided_slice %7 {offsets = [64, 48], sizes = [16, 48], strides = [1, 1]} : vector<256x96xf32> to vector<16x48xf32>
    %676 = vector.extract_strided_slice %647 {offsets = [16, 48], sizes = [16, 48], strides = [1, 1]} : vector<32x96xf32> to vector<16x48xf32>
    %677 = vector.extract_strided_slice %675 {offsets = [0, 0], sizes = [16, 16], strides = [1, 1]} : vector<16x48xf32> to vector<16x16xf32>
    %678 = vector.extract_strided_slice %676 {offsets = [0, 0], sizes = [16, 16], strides = [1, 1]} : vector<16x48xf32> to vector<16x16xf32>
    %679 = arith.addf %677, %678 : vector<16x16xf32>
    %680 = arith.negf %679 : vector<16x16xf32>
    %681 = math.exp %680 : vector<16x16xf32>
    %cst_70 = arith.constant 1.000000e+00 : f32
    %682 = vector.broadcast %cst_70 : f32 to vector<16x16xf32>
    %683 = arith.addf %682, %681 : vector<16x16xf32>
    %684 = arith.divf %682, %683 : vector<16x16xf32>
    %685 = vector.extract_strided_slice %675 {offsets = [0, 16], sizes = [16, 16], strides = [1, 1]} : vector<16x48xf32> to vector<16x16xf32>
    %686 = vector.extract_strided_slice %676 {offsets = [0, 16], sizes = [16, 16], strides = [1, 1]} : vector<16x48xf32> to vector<16x16xf32>
    %687 = arith.addf %685, %686 : vector<16x16xf32>
    %688 = arith.negf %687 : vector<16x16xf32>
    %689 = math.exp %688 : vector<16x16xf32>
    %cst_71 = arith.constant 1.000000e+00 : f32
    %690 = vector.broadcast %cst_71 : f32 to vector<16x16xf32>
    %691 = arith.addf %690, %689 : vector<16x16xf32>
    %692 = arith.divf %690, %691 : vector<16x16xf32>
    %693 = vector.extract_strided_slice %675 {offsets = [0, 32], sizes = [16, 16], strides = [1, 1]} : vector<16x48xf32> to vector<16x16xf32>
    %694 = vector.extract_strided_slice %676 {offsets = [0, 32], sizes = [16, 16], strides = [1, 1]} : vector<16x48xf32> to vector<16x16xf32>
    %695 = arith.addf %694, %15 : vector<16x16xf32>
    %696 = arith.mulf %684, %695 : vector<16x16xf32>
    %697 = arith.addf %693, %696 : vector<16x16xf32>
    %698 = math.tanh %697 : vector<16x16xf32>
    %699 = arith.subf %644, %698 : vector<16x16xf32>
    %700 = arith.mulf %692, %699 : vector<16x16xf32>
    %701 = arith.addf %698, %700 : vector<16x16xf32>
    %702 = tpu.concatenate %674, %701 in 0 : vector<16x16xf32>, vector<16x16xf32> -> vector<32x16xf32>
    %703 = arith.truncf %702 : vector<32x16xf32> to vector<32x16xbf16>
    %cst_72 = arith.constant dense<0.000000e+00> : vector<32x96xf32>
    %704 = tpu.matmul %703, %8, %cst_72 {dimension_numbers = #tpu.dot_dimension_numbers<[1], [0], [0], [1], [0, 0, 1, 1], [], []>} : vector<32x16xbf16>, vector<16x96xbf16>, vector<32x96xf32> -> vector<32x96xf32>
    %705 = vector.extract_strided_slice %7 {offsets = [192, 0], sizes = [16, 48], strides = [1, 1]} : vector<256x96xf32> to vector<16x48xf32>
    %706 = vector.extract_strided_slice %704 {offsets = [0, 0], sizes = [16, 48], strides = [1, 1]} : vector<32x96xf32> to vector<16x48xf32>
    %707 = vector.extract_strided_slice %705 {offsets = [0, 0], sizes = [16, 16], strides = [1, 1]} : vector<16x48xf32> to vector<16x16xf32>
    %708 = vector.extract_strided_slice %706 {offsets = [0, 0], sizes = [16, 16], strides = [1, 1]} : vector<16x48xf32> to vector<16x16xf32>
    %709 = arith.addf %707, %708 : vector<16x16xf32>
    %710 = arith.negf %709 : vector<16x16xf32>
    %711 = math.exp %710 : vector<16x16xf32>
    %cst_73 = arith.constant 1.000000e+00 : f32
    %712 = vector.broadcast %cst_73 : f32 to vector<16x16xf32>
    %713 = arith.addf %712, %711 : vector<16x16xf32>
    %714 = arith.divf %712, %713 : vector<16x16xf32>
    %715 = vector.extract_strided_slice %705 {offsets = [0, 16], sizes = [16, 16], strides = [1, 1]} : vector<16x48xf32> to vector<16x16xf32>
    %716 = vector.extract_strided_slice %706 {offsets = [0, 16], sizes = [16, 16], strides = [1, 1]} : vector<16x48xf32> to vector<16x16xf32>
    %717 = arith.addf %715, %716 : vector<16x16xf32>
    %718 = arith.negf %717 : vector<16x16xf32>
    %719 = math.exp %718 : vector<16x16xf32>
    %cst_74 = arith.constant 1.000000e+00 : f32
    %720 = vector.broadcast %cst_74 : f32 to vector<16x16xf32>
    %721 = arith.addf %720, %719 : vector<16x16xf32>
    %722 = arith.divf %720, %721 : vector<16x16xf32>
    %723 = vector.extract_strided_slice %705 {offsets = [0, 32], sizes = [16, 16], strides = [1, 1]} : vector<16x48xf32> to vector<16x16xf32>
    %724 = vector.extract_strided_slice %706 {offsets = [0, 32], sizes = [16, 16], strides = [1, 1]} : vector<16x48xf32> to vector<16x16xf32>
    %725 = arith.addf %724, %12 : vector<16x16xf32>
    %726 = arith.mulf %714, %725 : vector<16x16xf32>
    %727 = arith.addf %723, %726 : vector<16x16xf32>
    %728 = math.tanh %727 : vector<16x16xf32>
    %729 = arith.subf %674, %728 : vector<16x16xf32>
    %730 = arith.mulf %722, %729 : vector<16x16xf32>
    %731 = arith.addf %728, %730 : vector<16x16xf32>
    %732 = vector.extract_strided_slice %7 {offsets = [48, 48], sizes = [16, 48], strides = [1, 1]} : vector<256x96xf32> to vector<16x48xf32>
    %733 = vector.extract_strided_slice %704 {offsets = [16, 48], sizes = [16, 48], strides = [1, 1]} : vector<32x96xf32> to vector<16x48xf32>
    %734 = vector.extract_strided_slice %732 {offsets = [0, 0], sizes = [16, 16], strides = [1, 1]} : vector<16x48xf32> to vector<16x16xf32>
    %735 = vector.extract_strided_slice %733 {offsets = [0, 0], sizes = [16, 16], strides = [1, 1]} : vector<16x48xf32> to vector<16x16xf32>
    %736 = arith.addf %734, %735 : vector<16x16xf32>
    %737 = arith.negf %736 : vector<16x16xf32>
    %738 = math.exp %737 : vector<16x16xf32>
    %cst_75 = arith.constant 1.000000e+00 : f32
    %739 = vector.broadcast %cst_75 : f32 to vector<16x16xf32>
    %740 = arith.addf %739, %738 : vector<16x16xf32>
    %741 = arith.divf %739, %740 : vector<16x16xf32>
    %742 = vector.extract_strided_slice %732 {offsets = [0, 16], sizes = [16, 16], strides = [1, 1]} : vector<16x48xf32> to vector<16x16xf32>
    %743 = vector.extract_strided_slice %733 {offsets = [0, 16], sizes = [16, 16], strides = [1, 1]} : vector<16x48xf32> to vector<16x16xf32>
    %744 = arith.addf %742, %743 : vector<16x16xf32>
    %745 = arith.negf %744 : vector<16x16xf32>
    %746 = math.exp %745 : vector<16x16xf32>
    %cst_76 = arith.constant 1.000000e+00 : f32
    %747 = vector.broadcast %cst_76 : f32 to vector<16x16xf32>
    %748 = arith.addf %747, %746 : vector<16x16xf32>
    %749 = arith.divf %747, %748 : vector<16x16xf32>
    %750 = vector.extract_strided_slice %732 {offsets = [0, 32], sizes = [16, 16], strides = [1, 1]} : vector<16x48xf32> to vector<16x16xf32>
    %751 = vector.extract_strided_slice %733 {offsets = [0, 32], sizes = [16, 16], strides = [1, 1]} : vector<16x48xf32> to vector<16x16xf32>
    %752 = arith.addf %751, %15 : vector<16x16xf32>
    %753 = arith.mulf %741, %752 : vector<16x16xf32>
    %754 = arith.addf %750, %753 : vector<16x16xf32>
    %755 = math.tanh %754 : vector<16x16xf32>
    %756 = arith.subf %701, %755 : vector<16x16xf32>
    %757 = arith.mulf %749, %756 : vector<16x16xf32>
    %758 = arith.addf %755, %757 : vector<16x16xf32>
    %759 = tpu.concatenate %731, %758 in 0 : vector<16x16xf32>, vector<16x16xf32> -> vector<32x16xf32>
    %760 = arith.truncf %759 : vector<32x16xf32> to vector<32x16xbf16>
    %cst_77 = arith.constant dense<0.000000e+00> : vector<32x96xf32>
    %761 = tpu.matmul %760, %8, %cst_77 {dimension_numbers = #tpu.dot_dimension_numbers<[1], [0], [0], [1], [0, 0, 1, 1], [], []>} : vector<32x16xbf16>, vector<16x96xbf16>, vector<32x96xf32> -> vector<32x96xf32>
    %762 = vector.extract_strided_slice %7 {offsets = [208, 0], sizes = [16, 48], strides = [1, 1]} : vector<256x96xf32> to vector<16x48xf32>
    %763 = vector.extract_strided_slice %761 {offsets = [0, 0], sizes = [16, 48], strides = [1, 1]} : vector<32x96xf32> to vector<16x48xf32>
    %764 = vector.extract_strided_slice %762 {offsets = [0, 0], sizes = [16, 16], strides = [1, 1]} : vector<16x48xf32> to vector<16x16xf32>
    %765 = vector.extract_strided_slice %763 {offsets = [0, 0], sizes = [16, 16], strides = [1, 1]} : vector<16x48xf32> to vector<16x16xf32>
    %766 = arith.addf %764, %765 : vector<16x16xf32>
    %767 = arith.negf %766 : vector<16x16xf32>
    %768 = math.exp %767 : vector<16x16xf32>
    %cst_78 = arith.constant 1.000000e+00 : f32
    %769 = vector.broadcast %cst_78 : f32 to vector<16x16xf32>
    %770 = arith.addf %769, %768 : vector<16x16xf32>
    %771 = arith.divf %769, %770 : vector<16x16xf32>
    %772 = vector.extract_strided_slice %762 {offsets = [0, 16], sizes = [16, 16], strides = [1, 1]} : vector<16x48xf32> to vector<16x16xf32>
    %773 = vector.extract_strided_slice %763 {offsets = [0, 16], sizes = [16, 16], strides = [1, 1]} : vector<16x48xf32> to vector<16x16xf32>
    %774 = arith.addf %772, %773 : vector<16x16xf32>
    %775 = arith.negf %774 : vector<16x16xf32>
    %776 = math.exp %775 : vector<16x16xf32>
    %cst_79 = arith.constant 1.000000e+00 : f32
    %777 = vector.broadcast %cst_79 : f32 to vector<16x16xf32>
    %778 = arith.addf %777, %776 : vector<16x16xf32>
    %779 = arith.divf %777, %778 : vector<16x16xf32>
    %780 = vector.extract_strided_slice %762 {offsets = [0, 32], sizes = [16, 16], strides = [1, 1]} : vector<16x48xf32> to vector<16x16xf32>
    %781 = vector.extract_strided_slice %763 {offsets = [0, 32], sizes = [16, 16], strides = [1, 1]} : vector<16x48xf32> to vector<16x16xf32>
    %782 = arith.addf %781, %12 : vector<16x16xf32>
    %783 = arith.mulf %771, %782 : vector<16x16xf32>
    %784 = arith.addf %780, %783 : vector<16x16xf32>
    %785 = math.tanh %784 : vector<16x16xf32>
    %786 = arith.subf %731, %785 : vector<16x16xf32>
    %787 = arith.mulf %779, %786 : vector<16x16xf32>
    %788 = arith.addf %785, %787 : vector<16x16xf32>
    %789 = vector.extract_strided_slice %7 {offsets = [32, 48], sizes = [16, 48], strides = [1, 1]} : vector<256x96xf32> to vector<16x48xf32>
    %790 = vector.extract_strided_slice %761 {offsets = [16, 48], sizes = [16, 48], strides = [1, 1]} : vector<32x96xf32> to vector<16x48xf32>
    %791 = vector.extract_strided_slice %789 {offsets = [0, 0], sizes = [16, 16], strides = [1, 1]} : vector<16x48xf32> to vector<16x16xf32>
    %792 = vector.extract_strided_slice %790 {offsets = [0, 0], sizes = [16, 16], strides = [1, 1]} : vector<16x48xf32> to vector<16x16xf32>
    %793 = arith.addf %791, %792 : vector<16x16xf32>
    %794 = arith.negf %793 : vector<16x16xf32>
    %795 = math.exp %794 : vector<16x16xf32>
    %cst_80 = arith.constant 1.000000e+00 : f32
    %796 = vector.broadcast %cst_80 : f32 to vector<16x16xf32>
    %797 = arith.addf %796, %795 : vector<16x16xf32>
    %798 = arith.divf %796, %797 : vector<16x16xf32>
    %799 = vector.extract_strided_slice %789 {offsets = [0, 16], sizes = [16, 16], strides = [1, 1]} : vector<16x48xf32> to vector<16x16xf32>
    %800 = vector.extract_strided_slice %790 {offsets = [0, 16], sizes = [16, 16], strides = [1, 1]} : vector<16x48xf32> to vector<16x16xf32>
    %801 = arith.addf %799, %800 : vector<16x16xf32>
    %802 = arith.negf %801 : vector<16x16xf32>
    %803 = math.exp %802 : vector<16x16xf32>
    %cst_81 = arith.constant 1.000000e+00 : f32
    %804 = vector.broadcast %cst_81 : f32 to vector<16x16xf32>
    %805 = arith.addf %804, %803 : vector<16x16xf32>
    %806 = arith.divf %804, %805 : vector<16x16xf32>
    %807 = vector.extract_strided_slice %789 {offsets = [0, 32], sizes = [16, 16], strides = [1, 1]} : vector<16x48xf32> to vector<16x16xf32>
    %808 = vector.extract_strided_slice %790 {offsets = [0, 32], sizes = [16, 16], strides = [1, 1]} : vector<16x48xf32> to vector<16x16xf32>
    %809 = arith.addf %808, %15 : vector<16x16xf32>
    %810 = arith.mulf %798, %809 : vector<16x16xf32>
    %811 = arith.addf %807, %810 : vector<16x16xf32>
    %812 = math.tanh %811 : vector<16x16xf32>
    %813 = arith.subf %758, %812 : vector<16x16xf32>
    %814 = arith.mulf %806, %813 : vector<16x16xf32>
    %815 = arith.addf %812, %814 : vector<16x16xf32>
    %816 = tpu.concatenate %788, %815 in 0 : vector<16x16xf32>, vector<16x16xf32> -> vector<32x16xf32>
    %817 = arith.truncf %816 : vector<32x16xf32> to vector<32x16xbf16>
    %cst_82 = arith.constant dense<0.000000e+00> : vector<32x96xf32>
    %818 = tpu.matmul %817, %8, %cst_82 {dimension_numbers = #tpu.dot_dimension_numbers<[1], [0], [0], [1], [0, 0, 1, 1], [], []>} : vector<32x16xbf16>, vector<16x96xbf16>, vector<32x96xf32> -> vector<32x96xf32>
    %819 = vector.extract_strided_slice %7 {offsets = [224, 0], sizes = [16, 48], strides = [1, 1]} : vector<256x96xf32> to vector<16x48xf32>
    %820 = vector.extract_strided_slice %818 {offsets = [0, 0], sizes = [16, 48], strides = [1, 1]} : vector<32x96xf32> to vector<16x48xf32>
    %821 = vector.extract_strided_slice %819 {offsets = [0, 0], sizes = [16, 16], strides = [1, 1]} : vector<16x48xf32> to vector<16x16xf32>
    %822 = vector.extract_strided_slice %820 {offsets = [0, 0], sizes = [16, 16], strides = [1, 1]} : vector<16x48xf32> to vector<16x16xf32>
    %823 = arith.addf %821, %822 : vector<16x16xf32>
    %824 = arith.negf %823 : vector<16x16xf32>
    %825 = math.exp %824 : vector<16x16xf32>
    %cst_83 = arith.constant 1.000000e+00 : f32
    %826 = vector.broadcast %cst_83 : f32 to vector<16x16xf32>
    %827 = arith.addf %826, %825 : vector<16x16xf32>
    %828 = arith.divf %826, %827 : vector<16x16xf32>
    %829 = vector.extract_strided_slice %819 {offsets = [0, 16], sizes = [16, 16], strides = [1, 1]} : vector<16x48xf32> to vector<16x16xf32>
    %830 = vector.extract_strided_slice %820 {offsets = [0, 16], sizes = [16, 16], strides = [1, 1]} : vector<16x48xf32> to vector<16x16xf32>
    %831 = arith.addf %829, %830 : vector<16x16xf32>
    %832 = arith.negf %831 : vector<16x16xf32>
    %833 = math.exp %832 : vector<16x16xf32>
    %cst_84 = arith.constant 1.000000e+00 : f32
    %834 = vector.broadcast %cst_84 : f32 to vector<16x16xf32>
    %835 = arith.addf %834, %833 : vector<16x16xf32>
    %836 = arith.divf %834, %835 : vector<16x16xf32>
    %837 = vector.extract_strided_slice %819 {offsets = [0, 32], sizes = [16, 16], strides = [1, 1]} : vector<16x48xf32> to vector<16x16xf32>
    %838 = vector.extract_strided_slice %820 {offsets = [0, 32], sizes = [16, 16], strides = [1, 1]} : vector<16x48xf32> to vector<16x16xf32>
    %839 = arith.addf %838, %12 : vector<16x16xf32>
    %840 = arith.mulf %828, %839 : vector<16x16xf32>
    %841 = arith.addf %837, %840 : vector<16x16xf32>
    %842 = math.tanh %841 : vector<16x16xf32>
    %843 = arith.subf %788, %842 : vector<16x16xf32>
    %844 = arith.mulf %836, %843 : vector<16x16xf32>
    %845 = arith.addf %842, %844 : vector<16x16xf32>
    %846 = vector.extract_strided_slice %7 {offsets = [16, 48], sizes = [16, 48], strides = [1, 1]} : vector<256x96xf32> to vector<16x48xf32>
    %847 = vector.extract_strided_slice %818 {offsets = [16, 48], sizes = [16, 48], strides = [1, 1]} : vector<32x96xf32> to vector<16x48xf32>
    %848 = vector.extract_strided_slice %846 {offsets = [0, 0], sizes = [16, 16], strides = [1, 1]} : vector<16x48xf32> to vector<16x16xf32>
    %849 = vector.extract_strided_slice %847 {offsets = [0, 0], sizes = [16, 16], strides = [1, 1]} : vector<16x48xf32> to vector<16x16xf32>
    %850 = arith.addf %848, %849 : vector<16x16xf32>
    %851 = arith.negf %850 : vector<16x16xf32>
    %852 = math.exp %851 : vector<16x16xf32>
    %cst_85 = arith.constant 1.000000e+00 : f32
    %853 = vector.broadcast %cst_85 : f32 to vector<16x16xf32>
    %854 = arith.addf %853, %852 : vector<16x16xf32>
    %855 = arith.divf %853, %854 : vector<16x16xf32>
    %856 = vector.extract_strided_slice %846 {offsets = [0, 16], sizes = [16, 16], strides = [1, 1]} : vector<16x48xf32> to vector<16x16xf32>
    %857 = vector.extract_strided_slice %847 {offsets = [0, 16], sizes = [16, 16], strides = [1, 1]} : vector<16x48xf32> to vector<16x16xf32>
    %858 = arith.addf %856, %857 : vector<16x16xf32>
    %859 = arith.negf %858 : vector<16x16xf32>
    %860 = math.exp %859 : vector<16x16xf32>
    %cst_86 = arith.constant 1.000000e+00 : f32
    %861 = vector.broadcast %cst_86 : f32 to vector<16x16xf32>
    %862 = arith.addf %861, %860 : vector<16x16xf32>
    %863 = arith.divf %861, %862 : vector<16x16xf32>
    %864 = vector.extract_strided_slice %846 {offsets = [0, 32], sizes = [16, 16], strides = [1, 1]} : vector<16x48xf32> to vector<16x16xf32>
    %865 = vector.extract_strided_slice %847 {offsets = [0, 32], sizes = [16, 16], strides = [1, 1]} : vector<16x48xf32> to vector<16x16xf32>
    %866 = arith.addf %865, %15 : vector<16x16xf32>
    %867 = arith.mulf %855, %866 : vector<16x16xf32>
    %868 = arith.addf %864, %867 : vector<16x16xf32>
    %869 = math.tanh %868 : vector<16x16xf32>
    %870 = arith.subf %815, %869 : vector<16x16xf32>
    %871 = arith.mulf %863, %870 : vector<16x16xf32>
    %872 = arith.addf %869, %871 : vector<16x16xf32>
    %873 = tpu.concatenate %845, %872 in 0 : vector<16x16xf32>, vector<16x16xf32> -> vector<32x16xf32>
    %874 = arith.truncf %873 : vector<32x16xf32> to vector<32x16xbf16>
    %cst_87 = arith.constant dense<0.000000e+00> : vector<32x96xf32>
    %875 = tpu.matmul %874, %8, %cst_87 {dimension_numbers = #tpu.dot_dimension_numbers<[1], [0], [0], [1], [0, 0, 1, 1], [], []>} : vector<32x16xbf16>, vector<16x96xbf16>, vector<32x96xf32> -> vector<32x96xf32>
    %876 = vector.extract_strided_slice %7 {offsets = [240, 0], sizes = [16, 48], strides = [1, 1]} : vector<256x96xf32> to vector<16x48xf32>
    %877 = vector.extract_strided_slice %875 {offsets = [0, 0], sizes = [16, 48], strides = [1, 1]} : vector<32x96xf32> to vector<16x48xf32>
    %878 = vector.extract_strided_slice %876 {offsets = [0, 0], sizes = [16, 16], strides = [1, 1]} : vector<16x48xf32> to vector<16x16xf32>
    %879 = vector.extract_strided_slice %877 {offsets = [0, 0], sizes = [16, 16], strides = [1, 1]} : vector<16x48xf32> to vector<16x16xf32>
    %880 = arith.addf %878, %879 : vector<16x16xf32>
    %881 = arith.negf %880 : vector<16x16xf32>
    %882 = math.exp %881 : vector<16x16xf32>
    %cst_88 = arith.constant 1.000000e+00 : f32
    %883 = vector.broadcast %cst_88 : f32 to vector<16x16xf32>
    %884 = arith.addf %883, %882 : vector<16x16xf32>
    %885 = arith.divf %883, %884 : vector<16x16xf32>
    %886 = vector.extract_strided_slice %876 {offsets = [0, 16], sizes = [16, 16], strides = [1, 1]} : vector<16x48xf32> to vector<16x16xf32>
    %887 = vector.extract_strided_slice %877 {offsets = [0, 16], sizes = [16, 16], strides = [1, 1]} : vector<16x48xf32> to vector<16x16xf32>
    %888 = arith.addf %886, %887 : vector<16x16xf32>
    %889 = arith.negf %888 : vector<16x16xf32>
    %890 = math.exp %889 : vector<16x16xf32>
    %cst_89 = arith.constant 1.000000e+00 : f32
    %891 = vector.broadcast %cst_89 : f32 to vector<16x16xf32>
    %892 = arith.addf %891, %890 : vector<16x16xf32>
    %893 = arith.divf %891, %892 : vector<16x16xf32>
    %894 = vector.extract_strided_slice %876 {offsets = [0, 32], sizes = [16, 16], strides = [1, 1]} : vector<16x48xf32> to vector<16x16xf32>
    %895 = vector.extract_strided_slice %877 {offsets = [0, 32], sizes = [16, 16], strides = [1, 1]} : vector<16x48xf32> to vector<16x16xf32>
    %896 = arith.addf %895, %12 : vector<16x16xf32>
    %897 = arith.mulf %885, %896 : vector<16x16xf32>
    %898 = arith.addf %894, %897 : vector<16x16xf32>
    %899 = math.tanh %898 : vector<16x16xf32>
    %900 = arith.subf %845, %899 : vector<16x16xf32>
    %901 = arith.mulf %893, %900 : vector<16x16xf32>
    %902 = arith.addf %899, %901 : vector<16x16xf32>
    %903 = vector.extract_strided_slice %7 {offsets = [0, 48], sizes = [16, 48], strides = [1, 1]} : vector<256x96xf32> to vector<16x48xf32>
    %904 = vector.extract_strided_slice %875 {offsets = [16, 48], sizes = [16, 48], strides = [1, 1]} : vector<32x96xf32> to vector<16x48xf32>
    %905 = vector.extract_strided_slice %903 {offsets = [0, 0], sizes = [16, 16], strides = [1, 1]} : vector<16x48xf32> to vector<16x16xf32>
    %906 = vector.extract_strided_slice %904 {offsets = [0, 0], sizes = [16, 16], strides = [1, 1]} : vector<16x48xf32> to vector<16x16xf32>
    %907 = arith.addf %905, %906 : vector<16x16xf32>
    %908 = arith.negf %907 : vector<16x16xf32>
    %909 = math.exp %908 : vector<16x16xf32>
    %cst_90 = arith.constant 1.000000e+00 : f32
    %910 = vector.broadcast %cst_90 : f32 to vector<16x16xf32>
    %911 = arith.addf %910, %909 : vector<16x16xf32>
    %912 = arith.divf %910, %911 : vector<16x16xf32>
    %913 = vector.extract_strided_slice %903 {offsets = [0, 16], sizes = [16, 16], strides = [1, 1]} : vector<16x48xf32> to vector<16x16xf32>
    %914 = vector.extract_strided_slice %904 {offsets = [0, 16], sizes = [16, 16], strides = [1, 1]} : vector<16x48xf32> to vector<16x16xf32>
    %915 = arith.addf %913, %914 : vector<16x16xf32>
    %916 = arith.negf %915 : vector<16x16xf32>
    %917 = math.exp %916 : vector<16x16xf32>
    %cst_91 = arith.constant 1.000000e+00 : f32
    %918 = vector.broadcast %cst_91 : f32 to vector<16x16xf32>
    %919 = arith.addf %918, %917 : vector<16x16xf32>
    %920 = arith.divf %918, %919 : vector<16x16xf32>
    %921 = vector.extract_strided_slice %903 {offsets = [0, 32], sizes = [16, 16], strides = [1, 1]} : vector<16x48xf32> to vector<16x16xf32>
    %922 = vector.extract_strided_slice %904 {offsets = [0, 32], sizes = [16, 16], strides = [1, 1]} : vector<16x48xf32> to vector<16x16xf32>
    %923 = arith.addf %922, %15 : vector<16x16xf32>
    %924 = arith.mulf %912, %923 : vector<16x16xf32>
    %925 = arith.addf %921, %924 : vector<16x16xf32>
    %926 = math.tanh %925 : vector<16x16xf32>
    %927 = arith.subf %872, %926 : vector<16x16xf32>
    %928 = arith.mulf %920, %927 : vector<16x16xf32>
    %929 = arith.addf %926, %928 : vector<16x16xf32>
    %930 = tpu.concatenate %47, %929, %104, %872, %161, %815, %218, %758, %275, %701, %332, %644, %389, %587, %446, %530 in 1 : vector<16x16xf32>, vector<16x16xf32>, vector<16x16xf32>, vector<16x16xf32>, vector<16x16xf32>, vector<16x16xf32>, vector<16x16xf32>, vector<16x16xf32>, vector<16x16xf32>, vector<16x16xf32>, vector<16x16xf32>, vector<16x16xf32>, vector<16x16xf32>, vector<16x16xf32>, vector<16x16xf32>, vector<16x16xf32> -> vector<16x256xf32>
    %931 = tpu.concatenate %503, %473, %560, %416, %617, %359, %674, %302, %731, %245, %788, %188, %845, %131, %902, %74 in 1 : vector<16x16xf32>, vector<16x16xf32>, vector<16x16xf32>, vector<16x16xf32>, vector<16x16xf32>, vector<16x16xf32>, vector<16x16xf32>, vector<16x16xf32>, vector<16x16xf32>, vector<16x16xf32>, vector<16x16xf32>, vector<16x16xf32>, vector<16x16xf32>, vector<16x16xf32>, vector<16x16xf32>, vector<16x16xf32> -> vector<16x256xf32>
    %932 = tpu.concatenate %930, %931 in 1 : vector<16x256xf32>, vector<16x256xf32> -> vector<16x512xf32>
    %c0_92 = arith.constant 0 : index
    %c0_93 = arith.constant 0 : index
    %933 = vector.load %arg6[%c0_92, %c0_93] : memref<16x512xf32, #tpu.memory_space<vmem>>, vector<16x512xf32>
    tpu.vector_store %arg6[%c0_92, %c0_93], %932 {strides = array<i32>} : memref<16x512xf32, #tpu.memory_space<vmem>>, vector<16x512xf32>,
    return
  }
  func.func @transform_0(%arg0: i32) -> (i32, i32, i32) {
    %c0_i32 = arith.constant 0 : i32
    %c0_i32_0 = arith.constant 0 : i32
    %c0_i32_1 = arith.constant 0 : i32
    return %c0_i32, %arg0, %c0_i32_0 : i32, i32, i32
  }
  func.func @transform_1(%arg0: i32) -> (i32, i32) {
    %c0_i32 = arith.constant 0 : i32
    %c0_i32_0 = arith.constant 0 : i32
    %c0_i32_1 = arith.constant 0 : i32
    return %c0_i32, %c0_i32_0 : i32, i32
  }
  func.func @transform_2(%arg0: i32) -> (i32, i32) {
    %c0_i32 = arith.constant 0 : i32
    %c0_i32_0 = arith.constant 0 : i32
    %c0_i32_1 = arith.constant 0 : i32
    return %c0_i32, %c0_i32_0 : i32, i32
  }
  func.func @transform_3(%arg0: i32) -> (i32, i32) {
    %c0_i32 = arith.constant 0 : i32
    %c0_i32_0 = arith.constant 0 : i32
    %c0_i32_1 = arith.constant 0 : i32
    return %c0_i32, %c0_i32_0 : i32, i32
  }
  func.func @transform_4(%arg0: i32) -> (i32, i32) {
    %c0_i32 = arith.constant 0 : i32
    %c0_i32_0 = arith.constant 0 : i32
    %c0_i32_1 = arith.constant 0 : i32
    return %c0_i32, %c0_i32_0 : i32, i32
  }
  func.func @transform_5(%arg0: i32) -> (i32, i32) {
    %c0_i32 = arith.constant 0 : i32
    %c0_i32_0 = arith.constant 0 : i32
    return %arg0, %c0_i32 : i32, i32
  }
}

</mosaic_0001>

<bundles_post_ra>
// kernel: gru_block_forward.1
= control target key start
LH: loop header
LB: loop body
LE: loop exit
PB: predicated region body
PF: predicated region fallthrough
CT: control target
= control target key end

     0   :  { %vm126_vm0 = vcmask 1041408   ;;  %v4372_v1 = vmov 0.0|0.0   ;;  %vm77_vm1 = vcmask 31744   ;;  %s4373_s18 = smov 64   ;;  %s4377_s14 = smov 16   ;;  %vm306_vm2 = vcmask 130048   ;;  %s5703_s1 = inlined_call_operand.vmem [shape: bf16[4,96], index: 1, kind: input, shape index: {}]   ;;  %s5704_s3 = inlined_call_operand.vmem [shape: bf16[16,96], index: 3, kind: input, shape index: {}]   ;;  %s5705_s0 = inlined_call_operand.vmem [shape: f32[16,16,4], index: 0, kind: input, shape index: {}]   ;;  %s5706_s4 = inlined_call_operand.vmem [shape: f32[1,32], index: 4, kind: input, shape index: {}]   ;;  %s5707_s2 = inlined_call_operand.vmem [shape: f32[1,96], index: 2, kind: input, shape index: {}]   ;;  %s5708_s5 = inlined_call_operand.vmem [shape: f32[16,512], index: 5, kind: output, shape index: {}]  }
   0x1   :  { %v69_v0 = vld [vmem:[%s5703_s1] sm:$0x3]  ;;  %3808 = vmatprep.mubr.bf16.mxu1 %v4372_v1  ;;  %v22_v5 = vld [vmem:[%s5705_s0 + $0x8] sm:$0xff]  ;;  %v23_v7 = vld [vmem:[%s5705_s0 + $0x10] sm:$0xff]  ;;  %s4374_s1 = smov 32   ;;  %s4378_s15 = smov 80  }
   0x2   :  { %3902 = vmatprep.subr.msk.bf16.mxu0 %vm126_vm0, %v69_v0  ;;  %v128_v2 = vsel %vm126_vm0, %v69_v0, 0  ;;  %v4415_v3 = vld [vmem:[%s5704_s3] sm:$0xff]   ;;  %v24_v8 = vld [vmem:[%s5705_s0 + $0x18] sm:$0xff]  ;;  %v26_v11 = vld [vmem:[%s5705_s0 + $0x28] sm:$0xff]  ;;  %vm3438_vm3 = vcmask 261120   ;;  %vm3441_vm4 = vcmask 392192  }
   0x3   :  { %v21_v4 = vld [vmem:[%s5705_s0] sm:$0xff]  ;;  %3773 = vmatpush3.bf16.msra.mxu0 %v128_v2  ;;  %3806 = vmatprep.subr.bf16.mxu1 %v4415_v3  ;;  %v54_v10 = vpack.c.bf16 %v24_v8, %v23_v7  ;;  %v27_v13 = vld [vmem:[%s5705_s0 + $0x30] sm:$0xff]  ;;  %v28_v14 = vld [vmem:[%s5705_s0 + $0x38] sm:$0xff]  ;;  %vm3444_vm5 = vcmask 523264   ;;  %vm3447_vm6 = vcmask 654336   ;;  %vm3450_vm7 = vcmask 785408  }
   0x4   :  { %v53_v6 = vpack.c.bf16 %v22_v5, %v21_v4  ;;  %v25_v9 = vld [vmem:[%s5705_s0 + $0x20] sm:$0xff]  ;;  %3854 = vmatprep.subr.bf16.mxu0 %v4415_v3  ;;  %3807 = vmatpush3.bf16.msra.mxu1 %v4415_v3  ;;  %v30_v16 = vld [vmem:[%s5705_s0 + $0x48] sm:$0xff]  ;;  %v56_v17 = vpack.c.bf16 %v28_v14, %v27_v13  ;;  %v31_v20 = vld [vmem:[%s5705_s0 + $0x50] sm:$0xff]  ;;  %vm3453_vm8 = vcmask 916480  }
   0x5   :  { %v55_v12 = vpack.c.bf16 %v26_v11, %v25_v9  ;;  %3812 = vmatprep.subr.bf16.mxu1 %v4415_v3  ;;  %v29_v15 = vld [vmem:[%s5705_s0 + $0x40] sm:$0xff]  ;;  %v32_v21 = vld [vmem:[%s5705_s0 + $0x58] sm:$0xff]  ;;  %v34_v23 = vld [vmem:[%s5705_s0 + $0x68] sm:$0xff] }
   0x6   :  { %3774 = vmatprep.mubr.msk.bf16.mxu0 %vm77_vm1, %v53_v6  ;;  %v57_v18 = vpack.c.bf16 %v30_v16, %v29_v15  ;;  %v3611_v19 = vld [vmem:[%s5706_s4] ss:$0 sm:$0xff]  ;;  %v58_v24 = vpack.c.bf16 %v32_v21, %v31_v20  ;;  %v35_v26 = vld [vmem:[%s5705_s0 + $0x70] sm:$0xff]  ;;  %v36_v27 = vld [vmem:[%s5705_s0 + $0x78] sm:$0xff] }
   0x7   :  { %3775 = vmatmul.mubr.msk.bf16.vlgmr.msra.gmra.mxu0 %vm77_vm1, %v54_v10  ;;  %3809 = vmatmul.mubr.bf16.vlgmr.msra.gmra.mxu1 %v4372_v1  ;;  %v33_v22 = vld [vmem:[%s5705_s0 + $0x60] sm:$0xff]  ;;  %v38_v29 = vld [vmem:[%s5705_s0 + $0x88] sm:$0xff]  ;;  %v60_v30 = vpack.c.bf16 %v36_v27, %v35_v26  ;;  %v39_v32 = vld [vmem:[%s5705_s0 + $0x90] sm:$0xff] }
   0x8   :  { %3778 = vmatprep.mubr.msk.bf16.mxu0 %vm77_vm1, %v55_v12  ;;  %3855 = vmatpush3.bf16.msra.mxu0 %v4415_v3  ;;  %v59_v25 = vpack.c.bf16 %v34_v23, %v33_v22  ;;  %v37_v28 = vld [vmem:[%s5705_s0 + $0x80] sm:$0xff]  ;;  %v40_v33 = vld [vmem:[%s5705_s0 + $0x98] sm:$0xff]  ;;  %v42_v35 = vld [vmem:[%s5705_s0 + $0xa8] sm:$0xff] }
   0x9   :  { %3866 = vmatprep.subr.bf16.mxu0 %v4415_v3  ;;  %3813 = vmatpush3.bf16.msra.mxu1 %v4415_v3  ;;  %v61_v31 = vpack.c.bf16 %v38_v29, %v37_v28  ;;  %v41_v34 = vld [vmem:[%s5705_s0 + $0xa0] sm:$0xff]  ;;  %v62_v36 = vpack.c.bf16 %v40_v33, %v39_v32  ;;  %v43_v38 = vld [vmem:[%s5705_s0 + $0xb0] sm:$0xff]  ;;  %v44_v39 = vld [vmem:[%s5705_s0 + $0xb8] sm:$0xff] }
   0xa   :  { %3818 = vmatprep.subr.bf16.mxu1 %v4415_v3  ;;  %436 = vrot.lane.b32.xlu0 %v3611_v19, %s4373_s18  ;;  %v63_v37 = vpack.c.bf16 %v42_v35, %v41_v34  ;;  %v45_v40 = vld [vmem:[%s5705_s0 + $0xc0] sm:$0xff]  ;;  %v46_v41 = vld [vmem:[%s5705_s0 + $0xc8] sm:$0xff]  ;;  %v64_v42 = vpack.c.bf16 %v44_v39, %v43_v38  ;;  %v47_v44 = vld [vmem:[%s5705_s0 + $0xd0] sm:$0xff] }
   0xb   :  { %v65_v43 = vpack.c.bf16 %v46_v41, %v45_v40  ;;  %v48_v45 = vld [vmem:[%s5705_s0 + $0xd8] sm:$0xff]  ;;  %v49_v46 = vld [vmem:[%s5705_s0 + $0xe0] sm:$0xff]  ;;  %v50_v47 = vld [vmem:[%s5705_s0 + $0xe8] sm:$0xff] }
   0xc   :  { %v66_v48 = vpack.c.bf16 %v48_v45, %v47_v44  ;;  %v67_v49 = vpack.c.bf16 %v50_v47, %v49_v46  ;;  %v51_v50 = vld [vmem:[%s5705_s0 + $0xf0] sm:$0xff]  ;;  %v52_v51 = vld [vmem:[%s5705_s0 + $0xf8] sm:$0xff]  ;;  %v4547_v55 = vld [vmem:[%s5707_s2] ss:$0 sm:$0xff]  ;;  %s4375_s0 = smov 96   ;;  %s4376_s2 = smov 112  }
   0xd   :  { %v68_v52 = vpack.c.bf16 %v52_v51, %v51_v50 }
   0xe   :  { %373 = vrot.lane.b32.xlu0 %v3611_v19, %s4374_s1 }
   0xf   :  { %3779 = vmatmul.mubr.msk.bf16.gmra.mxu0 %vm77_vm1, %v56_v17 }
  0x10   :  { %3782 = vmatprep.mubr.msk.bf16.mxu0 %vm77_vm1, %v57_v18 }
  0x17   :  { %3783 = vmatmul.mubr.msk.bf16.gmra.mxu0 %vm77_vm1, %v58_v24 }
  0x18   :  { %3786 = vmatprep.mubr.msk.bf16.mxu0 %vm77_vm1, %v59_v25 }
  0x1f   :  { %3787 = vmatmul.mubr.msk.bf16.gmra.mxu0 %vm77_vm1, %v60_v30 }
  0x20   :  { %3790 = vmatprep.mubr.msk.bf16.mxu0 %vm77_vm1, %v61_v31 }
  0x27   :  { %3791 = vmatmul.mubr.msk.bf16.gmra.mxu0 %vm77_vm1, %v62_v36 }
  0x28   :  { %3794 = vmatprep.mubr.msk.bf16.mxu0 %vm77_vm1, %v63_v37 }
  0x2f   :  { %3795 = vmatmul.mubr.msk.bf16.gmra.mxu0 %vm77_vm1, %v64_v42 }
  0x30   :  { %3798 = vmatprep.mubr.msk.bf16.mxu0 %vm77_vm1, %v65_v43 }
  0x37   :  { %3799 = vmatmul.mubr.msk.bf16.gmra.mxu0 %vm77_vm1, %v66_v48 }
  0x38   :  { %3802 = vmatprep.mubr.msk.bf16.mxu0 %vm77_vm1, %v67_v49 }
  0x3f   :  { %3803 = vmatmul.mubr.msk.bf16.gmra.mxu0 %vm77_vm1, %v68_v52 }
  0x7c   :  { %v4542_v53 = vpop.permute.xlu0 %436 }
  0x80   :  { %v4552_v57 = vpop.permute.xlu0 %373 }
  0xc7   :  { %v3776_v54 = vpop.f32.mrf.mxu0  ;;  %v4556_v59 = vpop.f32.mrf.mxu1 }
  0xc8   :  { %v4550_v56 = vadd.f32 %v3776_v54, %v4547_v55  ;;  %v439_v60 = vadd.f32 %v4556_v59, %v4542_v53 }
  0xc9   :  { %v4554_v58 = vpop.f32.mrf.mxu0  ;;  %v4560_v62 = vpop.f32.mrf.mxu1 }
  0xca   :  { %v376_v0 = vadd.f32 %v4552_v57, %v4560_v62  ;;  %443 = vrot.lane.b32.xlu1 %v439_v60, %s4375_s0 }
  0xcb   :  { %v3777_v61 = vpop.f32.mrf.mxu0  ;;  %v4570_v2 = vpop.f32.mrf.mxu1 }
  0xcc   :  { %v4563_v63 = vadd.f32 %v3777_v61, %v4547_v55  ;;  %v440_v4 = vadd.f32 %v4570_v2, %v4542_v53  ;;  %380 = vrot.lane.b32.xlu0 %v376_v0, %s4375_s0 }
  0xcd   :  { %v4568_v1 = vpop.f32.mrf.mxu0  ;;  %v4575_v6 = vpop.f32.mrf.mxu1 }
  0xce   :  { %445 = vrot.lane.b32.xlu1 %v440_v4, %s4375_s0  ;;  %v377_v9 = vadd.f32 %v4552_v57, %v4575_v6 }
  0xcf   :  { %v3780_v5 = vpop.f32.mrf.mxu0 }
  0xd0   :  { %v4578_v7 = vadd.f32 %v3780_v5, %v4547_v55 }
  0xd1   :  { %v180_v8 = vpop.f32.mrf.mxu0 }
  0xd2   :  { %v4584_v10 = vadd.f32 %v4547_v55, %v180_v8  ;;  %382 = vrot.lane.b32.xlu1 %v377_v9, %s4375_s0  ;;  %v4661_v9 = vadd.f32 %v4547_v55, %v4554_v58 }
  0xd3   :  { %v3781_v11 = vpop.f32.mrf.mxu0 }
  0xd4   :  { %v4587_v12 = vadd.f32 %v3781_v11, %v4547_v55 }
  0xd5   :  { %v183_v13 = vpop.f32.mrf.mxu0 }
  0xd6   :  { %v4591_v14 = vadd.f32 %v4547_v55, %v183_v13 }
  0xd7   :  { %v3784_v15 = vpop.f32.mrf.mxu0 }
  0xd8   :  { %v4594_v16 = vadd.f32 %v3784_v15, %v4547_v55  ;;  %v359_v15 = vadd.f32 %v4560_v62, %v4661_v9 }
  0xd9   :  { %v196_v17 = vpop.f32.mrf.mxu0 }
  0xda   :  { %v4597_v18 = vadd.f32 %v4547_v55, %v196_v17  ;;  %v4672_v17 = vadd.f32 %v4547_v55, %v4568_v1 }
  0xdb   :  { %v3785_v19 = vpop.f32.mrf.mxu0 }
  0xdc   :  { %v4600_v20 = vadd.f32 %v3785_v19, %v4547_v55  ;;  %v360_v58 = vadd.f32 %v4575_v6, %v4672_v17 }
  0xdd   :  { %v199_v21 = vpop.f32.mrf.mxu0 }
  0xde   :  { %v4603_v22 = vadd.f32 %v4547_v55, %v199_v21 }
  0xdf   :  { %v3788_v23 = vpop.f32.mrf.mxu0 }
  0xe0   :  { %v4606_v24 = vadd.f32 %v3788_v23, %v4547_v55  ;;  %v3613_v23 = vmul.f32 -1.442695, %v359_v15 }
  0xe1   :  { %v212_v25 = vpop.f32.mrf.mxu0 }
  0xe2   :  { %v4609_v26 = vadd.f32 %v4547_v55, %v212_v25  ;;  %v3614_v25 = vmul.f32 -1.442695, %v360_v58 }
  0xe3   :  { %v3789_v27 = vpop.f32.mrf.mxu0 }
  0xe4   :  { %v4612_v28 = vadd.f32 %v3789_v27, %v4547_v55 }
  0xe5   :  { %v215_v29 = vpop.f32.mrf.mxu0 }
  0xe6   :  { %v4615_v30 = vadd.f32 %v4547_v55, %v215_v29 }
  0xe7   :  { %v3792_v31 = vpop.f32.mrf.mxu0 }
  0xe8   :  { %v4618_v32 = vadd.f32 %v3792_v31, %v4547_v55 }
  0xe9   :  { %v228_v33 = vpop.f32.mrf.mxu0 }
  0xea   :  { %v4621_v34 = vadd.f32 %v4547_v55, %v228_v33 }
  0xeb   :  { %v3793_v35 = vpop.f32.mrf.mxu0 }
  0xec   :  { %v4624_v36 = vadd.f32 %v3793_v35, %v4547_v55 }
  0xed   :  { %v231_v37 = vpop.f32.mrf.mxu0 }
  0xee   :  { %v4627_v38 = vadd.f32 %v4547_v55, %v231_v37 }
  0xef   :  { %v3796_v39 = vpop.f32.mrf.mxu0 }
  0xf0   :  { %v4630_v40 = vadd.f32 %v3796_v39, %v4547_v55 }
  0xf1   :  { %v244_v41 = vpop.f32.mrf.mxu0 }
  0xf2   :  { %v4633_v42 = vadd.f32 %v4547_v55, %v244_v41 }
  0xf3   :  { %v3797_v43 = vpop.f32.mrf.mxu0 }
  0xf4   :  { %v4636_v44 = vadd.f32 %v3797_v43, %v4547_v55 }
  0xf5   :  { %v247_v45 = vpop.f32.mrf.mxu0 }
  0xf6   :  { %v4639_v46 = vadd.f32 %v4547_v55, %v247_v45 }
  0xf7   :  { %v3800_v47 = vpop.f32.mrf.mxu0 }
  0xf8   :  { %v4642_v48 = vadd.f32 %v3800_v47, %v4547_v55 }
  0xf9   :  { %v260_v49 = vpop.f32.mrf.mxu0 }
  0xfa   :  { %v4645_v50 = vadd.f32 %v4547_v55, %v260_v49 }
  0xfb   :  { %v3801_v51 = vpop.f32.mrf.mxu0 }
  0xfc   :  { %v4648_v52 = vadd.f32 %v3801_v51, %v4547_v55 }
  0xfd   :  { %v263_v54 = vpop.f32.mrf.mxu0 }
  0xfe   :  { %v4651_v60 = vadd.f32 %v4547_v55, %v263_v54 }
  0xff   :  { %v3804_v61 = vpop.f32.mrf.mxu0 }
 0x100   :  { %v4657_v5 = vadd.f32 %v3804_v61, %v4547_v55 }
 0x101   :  { %v276_v0 = vpop.f32.mrf.mxu0 }
 0x102   :  { %v4654_v4 = vadd.f32 %v4547_v55, %v276_v0  ;;  %v422_v11 = vadd.f32 %v4556_v59, %v4657_v5 }
 0x103   :  { %v3805_v8 = vpop.f32.mrf.mxu0 }
 0x104   :  { %v4666_v13 = vadd.f32 %v3805_v8, %v4547_v55  ;;  %v3615_v19 = vmul.f32 -1.442695, %v422_v11 }
 0x106   :  { %v423_v21 = vadd.f32 %v4570_v2, %v4666_v13  ;;  %3986 = vpow2.f32 %v3615_v19 }
 0x107   :  { %3988 = vpow2.f32 %v3613_v23 }
 0x108   :  { %v3616_v59 = vmul.f32 -1.442695, %v423_v21 }
 0x10a   :  { %3990 = vpow2.f32 %v3616_v59 }
 0x10b   :  { %3992 = vpow2.f32 %v3614_v25 }
 0x113   :  { %v3987_v27 = vpop.eup %3986 }
 0x114   :  { %v3989_v62 = vpop.eup %3988  ;;  %v430_v29 = vadd.f32 1.0, %v3987_v27 }
 0x115   :  { %v367_v1 = vadd.f32 1.0, %v3989_v62 }
 0x116   :  { %3994 = vrcp.f32 %v430_v29 }
 0x117   :  { %v3991_v31 = vpop.eup %3990  ;;  %3996 = vrcp.f32 %v367_v1 }
 0x118   :  { %v431_v33 = vadd.f32 1.0, %v3991_v31  ;;  %v3993_v35 = vpop.eup %3992 }
 0x119   :  { %v368_v2 = vadd.f32 1.0, %v3993_v35 }
 0x11a   :  { %3998 = vrcp.f32 %v431_v33 }
 0x11b   :  { %4000 = vrcp.f32 %v368_v2 }
 0x123   :  { %v3995_v37 = vpop.eup %3994 }
 0x124   :  { %v3997_v43 = vpop.eup %3996 }
 0x127   :  { %v3999_v45 = vpop.eup %3998 }
 0x128   :  { %v4001_v54 = vpop.eup %4000 }
 0x13c   :  { %v444_v6 = vpop.permute.xlu1 %443 }
 0x13d   :  { %v449_v39 = vmul.f32 %v3995_v37, %v444_v6 }
 0x13e   :  { %v381_v41 = vpop.permute.xlu0 %380 }
 0x13f   :  { %453 = vrot.lane.b32.xlu0 %v449_v39, %s4374_s1  ;;  %v386_v49 = vmul.f32 %v3997_v43, %v381_v41 }
 0x140   :  { %v446_v47 = vpop.permute.xlu1 %445 }
 0x141   :  { %v450_v51 = vmul.f32 %v3999_v45, %v446_v47 }
 0x143   :  { %455 = vrot.lane.b32.xlu1 %v450_v51, %s4374_s1  ;;  %390 = vrot.lane.b32.xlu0 %v386_v49, %s4374_s1 }
 0x144   :  { %v383_v61 = vpop.permute.xlu1 %382 }
 0x145   :  { %v387_v0 = vmul.f32 %v4001_v54, %v383_v61 }
 0x147   :  { %392 = vrot.lane.b32.xlu1 %v387_v0, %s4374_s1 }
 0x1b1   :  { %v454_v8 = vpop.permute.xlu0 %453 }
 0x1b2   :  { %v459_v11 = vadd.f32 %v454_v8, %v4657_v5 }
 0x1b4   :  { %4002 = vtanh.f32 %v459_v11 }
 0x1b5   :  { %v456_v15 = vpop.permute.xlu1 %455  ;;  %v391_v19 = vpop.permute.xlu0 %390 }
 0x1b6   :  { %v460_v21 = vadd.f32 %v456_v15, %v4666_v13  ;;  %v396_v23 = vadd.f32 %v391_v19, %v4661_v9 }
 0x1b8   :  { %4004 = vtanh.f32 %v460_v21 }
 0x1b9   :  { %4006 = vtanh.f32 %v396_v23  ;;  %v393_v58 = vpop.permute.xlu1 %392 }
 0x1ba   :  { %v397_v59 = vadd.f32 %v393_v58, %v4672_v17 }
 0x1bc   :  { %4008 = vtanh.f32 %v397_v59 }
 0x1c1   :  { %v4003_v25 = vpop.eup %4002 }
 0x1c2   :  { %v463_v27 = vsub.f32 0.0, %v4003_v25 }
 0x1c4   :  { %467 = vrot.lane.b32.xlu0 %v463_v27, %s4376_s2 }
 0x1c5   :  { %v4005_v62 = vpop.eup %4004 }
 0x1c6   :  { %v4007_v29 = vpop.eup %4006  ;;  %v464_v31 = vsub.f32 0.0, %v4005_v62 }
 0x1c7   :  { %v400_v1 = vsub.f32 0.0, %v4007_v29 }
 0x1c8   :  { %469 = vrot.lane.b32.xlu1 %v464_v31, %s4376_s2 }
 0x1c9   :  { %v4009_v33 = vpop.eup %4008  ;;  %404 = vrot.lane.b32.xlu0 %v400_v1, %s4376_s2 }
 0x1ca   :  { %v401_v35 = vsub.f32 0.0, %v4009_v33 }
 0x1cc   :  { %406 = vrot.lane.b32.xlu1 %v401_v35, %s4376_s2 }
 0x236   :  { %v468_v2 = vpop.permute.xlu0 %467 }
 0x237   :  { %v473_v6 = vmul.f32 %v3995_v37, %v468_v2 }
 0x239   :  { %477 = vrot.lane.b32.xlu0 %v473_v6, %s4377_s14 }
 0x23a   :  { %v470_v39 = vpop.permute.xlu1 %469 }
 0x23b   :  { %v474_v41 = vmul.f32 %v3999_v45, %v470_v39  ;;  %v405_v47 = vpop.permute.xlu0 %404 }
 0x23c   :  { %v410_v49 = vmul.f32 %v3997_v43, %v405_v47 }
 0x23d   :  { %479 = vrot.lane.b32.xlu1 %v474_v41, %s4377_s14  ;;  %v279_v41 = vpop.f32.mrf.mxu0 }
 0x23e   :  { %414 = vrot.lane.b32.xlu0 %v410_v49, %s4377_s14  ;;  %v407_v51 = vpop.permute.xlu1 %406  ;;  %v4723_v49 = vadd.f32 %v4547_v55, %v279_v41 }
 0x23f   :  { %v411_v61 = vmul.f32 %v4001_v54, %v407_v51 }
 0x241   :  { %416 = vrot.lane.b32.xlu1 %v411_v61, %s4377_s14 }
 0x2ab   :  { %v478_v0 = vpop.permute.xlu0 %477 }
 0x2ac   :  { %v4694_v11 = vadd.f32 %v4003_v25, %v478_v0 }
 0x2ae   :  { %5729 = vst [vmem:[#allocation2_spill] sm:$0xff] %v4694_v11 }
 0x2af   :  { %v480_v8 = vpop.permute.xlu1 %479 }
 0x2b0   :  { %v4696_v37 = vadd.f32 %v4005_v62, %v480_v8  ;;  %v415_v15 = vpop.permute.xlu0 %414 }
 0x2b1   :  { %v4700_v43 = vadd.f32 %v4007_v29, %v415_v15 }
 0x2b2   :  { %5730 = vst [vmem:[#allocation3_spill] sm:$0xff] %v4696_v37  ;;  %v3910_v45 = vpack.i.bf16 %v4696_v37, %v4694_v11 }
 0x2b3   :  { %v417_v19 = vpop.permute.xlu1 %416 }
 0x2b4   :  { %v4702_v21 = vadd.f32 %v4009_v33, %v417_v19  ;;  %3911 = vrot.lane.b32.xlu0 %v3910_v45, %s4378_s15 }
 0x2b6   :  { %v493_v54 = vpack.c.bf16 %v4702_v21, %v4700_v43 }
 0x2b8   :  { %497 = vrot.lane.b32.xlu1 %v493_v54, %s4375_s0 }
 0x326   :  { %v3912_v23 = vpop.permute.xlu0 %3911 }
 0x327   :  { %v3914_v58 = vunpack.i.h.bf16 %v3912_v23  ;;  %v3913_v59 = vunpack.i.l.bf16 %v3912_v23 }
 0x329   :  { %v494_v25 = vpack.c.bf16 %v3914_v58, %v3913_v59 }
 0x32a   :  { %v498_v27 = vpop.permute.xlu1 %497 }
 0x32b   :  { %3814 = vmatprep.mubr.msk.bf16.mxu1 %vm306_vm2, %v498_v27  ;;  %499 = vrot.lane.b32.xlu0 %v494_v25, %s4375_s0 }
 0x39d   :  { %v500_v62 = vpop.permute.xlu0 %499 }
 0x39e   :  { %3815 = vmatmul.mubr.msk.bf16.vlgmr.msra.gmra.mxu1 %vm306_vm2, %v500_v62 }
 0x39f   :  { %3819 = vmatpush3.bf16.msra.mxu1 %v4415_v3 }
 0x3a0   :  { %3824 = vmatprep.subr.bf16.mxu1 %v4415_v3 }
 0x45e   :  { %v3816_v29 = vpop.f32.mrf.mxu1 }
 0x45f   :  { %v630_v31 = vadd.f32 %v3816_v29, %v4542_v53  ;;  %v616_v47 = vadd.f32 %v3816_v29, %v4654_v4 }
 0x460   :  { %v541_v1 = vpop.f32.mrf.mxu1 }
 0x461   :  { %634 = vrot.lane.b32.xlu1 %v630_v31, %s4375_s0  ;;  %v570_v35 = vadd.f32 %v541_v1, %v4552_v57  ;;  %v556_v51 = vadd.f32 %v541_v1, %v4550_v56  ;;  %v3621_v61 = vmul.f32 -1.442695, %v616_v47 }
 0x462   :  { %v3817_v33 = vpop.f32.mrf.mxu1 }
 0x463   :  { %v631_v2 = vadd.f32 %v3817_v33, %v4542_v53  ;;  %v617_v0 = vadd.f32 %v3817_v33, %v4723_v49  ;;  %v3619_v8 = vmul.f32 -1.442695, %v556_v51  ;;  %4010 = vpow2.f32 %v3621_v61 }
 0x464   :  { %v544_v6 = vpop.f32.mrf.mxu1 }
 0x465   :  { %574 = vrot.lane.b32.xlu1 %v570_v35, %s4375_s0  ;;  %636 = vrot.lane.b32.xlu0 %v631_v2, %s4375_s0  ;;  %v571_v39 = vadd.f32 %v544_v6, %v4552_v57  ;;  %v3622_v15 = vmul.f32 -1.442695, %v617_v0  ;;  %v557_v45 = vadd.f32 %v544_v6, %v4563_v63  ;;  %4012 = vpow2.f32 %v3619_v8 }
 0x467   :  { %4014 = vpow2.f32 %v3622_v15  ;;  %v3620_v19 = vmul.f32 -1.442695, %v557_v45 }
 0x469   :  { %576 = vrot.lane.b32.xlu0 %v571_v39, %s4375_s0  ;;  %4016 = vpow2.f32 %v3620_v19 }
 0x470   :  { %v4011_v54 = vpop.eup %4010 }
 0x471   :  { %v624_v58 = vadd.f32 1.0, %v4011_v54 }
 0x472   :  { %v4013_v23 = vpop.eup %4012 }
 0x473   :  { %v564_v55 = vadd.f32 1.0, %v4013_v23  ;;  %4018 = vrcp.f32 %v624_v58 }
 0x474   :  { %v4015_v59 = vpop.eup %4014 }
 0x475   :  { %v625_v25 = vadd.f32 1.0, %v4015_v59  ;;  %4020 = vrcp.f32 %v564_v55 }
 0x476   :  { %v4017_v27 = vpop.eup %4016 }
 0x477   :  { %4022 = vrcp.f32 %v625_v25  ;;  %v565_v62 = vadd.f32 1.0, %v4017_v27 }
 0x479   :  { %4024 = vrcp.f32 %v565_v62 }
 0x480   :  { %v4019_v29 = vpop.eup %4018 }
 0x482   :  { %v4021_v33 = vpop.eup %4020 }
 0x484   :  { %v4023_v35 = vpop.eup %4022 }
 0x486   :  { %v4025_v47 = vpop.eup %4024 }
 0x4d3   :  { %v635_v31 = vpop.permute.xlu1 %634 }
 0x4d4   :  { %v640_v1 = vmul.f32 %v4019_v29, %v635_v31 }
 0x4d6   :  { %644 = vrot.lane.b32.xlu1 %v640_v1, %s4374_s1 }
 0x4d7   :  { %v575_v2 = vpop.permute.xlu1 %574  ;;  %v637_v6 = vpop.permute.xlu0 %636 }
 0x4d8   :  { %v580_v39 = vmul.f32 %v4021_v33, %v575_v2  ;;  %v641_v41 = vmul.f32 %v4023_v35, %v637_v6 }
 0x4da   :  { %584 = vrot.lane.b32.xlu1 %v580_v39, %s4374_s1  ;;  %646 = vrot.lane.b32.xlu0 %v641_v41, %s4374_s1 }
 0x4db   :  { %v577_v51 = vpop.permute.xlu0 %576 }
 0x4dc   :  { %v581_v61 = vmul.f32 %v4025_v47, %v577_v51 }
 0x4de   :  { %586 = vrot.lane.b32.xlu0 %v581_v61, %s4374_s1 }
 0x548   :  { %v645_v0 = vpop.permute.xlu1 %644 }
 0x549   :  { %v650_v8 = vadd.f32 %v645_v0, %v4654_v4 }
 0x54b   :  { %4026 = vtanh.f32 %v650_v8 }
 0x54c   :  { %v585_v15 = vpop.permute.xlu1 %584  ;;  %v647_v45 = vpop.permute.xlu0 %646 }
 0x54d   :  { %v590_v19 = vadd.f32 %v585_v15, %v4550_v56  ;;  %v651_v54 = vadd.f32 %v647_v45, %v4723_v49 }
 0x54f   :  { %4028 = vtanh.f32 %v590_v19 }
 0x550   :  { %4030 = vtanh.f32 %v651_v54  ;;  %v587_v23 = vpop.permute.xlu0 %586 }
 0x551   :  { %v591_v58 = vadd.f32 %v587_v23, %v4563_v63 }
 0x553   :  { %4032 = vtanh.f32 %v591_v58 }
 0x558   :  { %v4027_v59 = vpop.eup %4026 }
 0x559   :  { %v654_v55 = vsub.f32 %v4694_v11, %v4027_v59 }
 0x55b   :  { %658 = vrot.lane.b32.xlu1 %v654_v55, %s4376_s2 }
 0x55c   :  { %v4029_v25 = vpop.eup %4028 }
 0x55d   :  { %v4031_v27 = vpop.eup %4030  ;;  %v594_v62 = vsub.f32 %v4700_v43, %v4029_v25 }
 0x55e   :  { %v655_v31 = vsub.f32 %v4696_v37, %v4031_v27 }
 0x55f   :  { %598 = vrot.lane.b32.xlu1 %v594_v62, %s4376_s2 }
 0x560   :  { %v4033_v1 = vpop.eup %4032  ;;  %660 = vrot.lane.b32.xlu0 %v655_v31, %s4376_s2 }
 0x561   :  { %v595_v2 = vsub.f32 %v4702_v21, %v4033_v1 }
 0x564   :  { %600 = vrot.lane.b32.xlu0 %v595_v2, %s4376_s2 }
 0x5cd   :  { %v659_v6 = vpop.permute.xlu1 %658 }
 0x5ce   :  { %v664_v39 = vmul.f32 %v4019_v29, %v659_v6 }
 0x5d0   :  { %668 = vrot.lane.b32.xlu1 %v664_v39, %s4377_s14 }
 0x5d1   :  { %v599_v41 = vpop.permute.xlu1 %598 }
 0x5d2   :  { %v604_v51 = vmul.f32 %v4021_v33, %v599_v41  ;;  %v661_v61 = vpop.permute.xlu0 %660 }
 0x5d3   :  { %v665_v0 = vmul.f32 %v4023_v35, %v661_v61 }
 0x5d4   :  { %608 = vrot.lane.b32.xlu1 %v604_v51, %s4377_s14 }
 0x5d5   :  { %670 = vrot.lane.b32.xlu0 %v665_v0, %s4377_s14 }
 0x5d6   :  { %v601_v8 = vpop.permute.xlu0 %600 }
 0x5d7   :  { %v605_v15 = vmul.f32 %v4025_v47, %v601_v8 }
 0x5d9   :  { %610 = vrot.lane.b32.xlu0 %v605_v15, %s4377_s14 }
 0x642   :  { %v669_v45 = vpop.permute.xlu1 %668 }
 0x643   :  { %v4748_v54 = vadd.f32 %v4027_v59, %v669_v45 }
 0x645   :  { %5731 = vst [vmem:[#allocation4_spill] sm:$0xff] %v4748_v54 }
 0x646   :  { %v609_v29 = vpop.permute.xlu1 %608 }
 0x647   :  { %v671_v19 = vpop.permute.xlu0 %670  ;;  %v4754_v35 = vadd.f32 %v4029_v25, %v609_v29 }
 0x648   :  { %v4750_v23 = vadd.f32 %v4031_v27, %v671_v19 }
 0x649   :  { %5733 = vst [vmem:[#allocation6_spill] sm:$0xff] %v4754_v35 }
 0x64a   :  { %5732 = vst [vmem:[#allocation5_spill] sm:$0xff] %v4750_v23  ;;  %v3915_v33 = vpack.i.bf16 %v4750_v23, %v4748_v54 }
 0x64b   :  { %v611_v58 = vpop.permute.xlu0 %610 }
 0x64c   :  { %v4756_v55 = vadd.f32 %v4033_v1, %v611_v58  ;;  %3916 = vrot.lane.b32.xlu1 %v3915_v33, %s4378_s15 }
 0x64e   :  { %5734 = vst [vmem:[#allocation7_spill] sm:$0xff] %v4756_v55  ;;  %v684_v47 = vpack.c.bf16 %v4756_v55, %v4754_v35 }
 0x650   :  { %688 = vrot.lane.b32.xlu0 %v684_v47, %s4375_s0 }
 0x6be   :  { %v3917_v59 = vpop.permute.xlu1 %3916 }
 0x6bf   :  { %v3919_v62 = vunpack.i.h.bf16 %v3917_v59  ;;  %v3918_v27 = vunpack.i.l.bf16 %v3917_v59 }
 0x6c1   :  { %v685_v31 = vpack.c.bf16 %v3919_v62, %v3918_v27 }
 0x6c2   :  { %v689_v2 = vpop.permute.xlu0 %688 }
 0x6c3   :  { %690 = vrot.lane.b32.xlu1 %v685_v31, %s4375_s0  ;;  %3820 = vmatprep.mubr.msk.bf16.mxu1 %vm306_vm2, %v689_v2 }
 0x735   :  { %v691_v25 = vpop.permute.xlu1 %690 }
 0x736   :  { %3821 = vmatmul.mubr.msk.bf16.vlgmr.msra.gmra.mxu1 %vm306_vm2, %v691_v25 }
 0x737   :  { %3825 = vmatpush3.bf16.msra.mxu1 %v4415_v3 }
 0x738   :  { %3830 = vmatprep.subr.bf16.mxu1 %v4415_v3 }
 0x7f6   :  { %v3822_v1 = vpop.f32.mrf.mxu1 }
 0x7f7   :  { %v821_v6 = vadd.f32 %v3822_v1, %v4542_v53  ;;  %v807_v15 = vadd.f32 %v3822_v1, %v4642_v48 }
 0x7f8   :  { %v732_v39 = vpop.f32.mrf.mxu1 }
 0x7f9   :  { %825 = vrot.lane.b32.xlu0 %v821_v6, %s4375_s0  ;;  %v761_v51 = vadd.f32 %v732_v39, %v4552_v57  ;;  %v747_v45 = vadd.f32 %v732_v39, %v4584_v10  ;;  %v3627_v19 = vmul.f32 -1.442695, %v807_v15 }
 0x7fa   :  { %v3823_v41 = vpop.f32.mrf.mxu1 }
 0x7fb   :  { %v822_v61 = vadd.f32 %v3823_v41, %v4542_v53  ;;  %v808_v29 = vadd.f32 %v3823_v41, %v4648_v52  ;;  %v3625_v33 = vmul.f32 -1.442695, %v747_v45  ;;  %4034 = vpow2.f32 %v3627_v19 }
 0x7fc   :  { %v735_v0 = vpop.f32.mrf.mxu1 }
 0x7fd   :  { %765 = vrot.lane.b32.xlu0 %v761_v51, %s4375_s0  ;;  %827 = vrot.lane.b32.xlu1 %v822_v61, %s4375_s0  ;;  %v762_v8 = vadd.f32 %v735_v0, %v4552_v57  ;;  %v3628_v58 = vmul.f32 -1.442695, %v808_v29  ;;  %v748_v47 = vadd.f32 %v735_v0, %v4591_v14  ;;  %4036 = vpow2.f32 %v3625_v33 }
 0x7ff   :  { %4038 = vpow2.f32 %v3628_v58  ;;  %v3626_v59 = vmul.f32 -1.442695, %v748_v47 }
 0x801   :  { %767 = vrot.lane.b32.xlu1 %v762_v8, %s4375_s0  ;;  %4040 = vpow2.f32 %v3626_v59 }
 0x808   :  { %v4035_v62 = vpop.eup %4034 }
 0x809   :  { %v815_v31 = vadd.f32 1.0, %v4035_v62 }
 0x80a   :  { %v4037_v27 = vpop.eup %4036 }
 0x80b   :  { %v755_v25 = vadd.f32 1.0, %v4037_v27  ;;  %4042 = vrcp.f32 %v815_v31 }
 0x80c   :  { %v4039_v2 = vpop.eup %4038 }
 0x80d   :  { %v816_v1 = vadd.f32 1.0, %v4039_v2  ;;  %4044 = vrcp.f32 %v755_v25 }
 0x80e   :  { %v4041_v6 = vpop.eup %4040 }
 0x80f   :  { %4046 = vrcp.f32 %v816_v1  ;;  %v756_v39 = vadd.f32 1.0, %v4041_v6 }
 0x811   :  { %4048 = vrcp.f32 %v756_v39 }
 0x818   :  { %v4043_v41 = vpop.eup %4042 }
 0x81a   :  { %v4045_v0 = vpop.eup %4044 }
 0x81c   :  { %v4047_v8 = vpop.eup %4046 }
 0x81e   :  { %v4049_v33 = vpop.eup %4048 }
 0x86b   :  { %v826_v51 = vpop.permute.xlu0 %825 }
 0x86c   :  { %v831_v61 = vmul.f32 %v4043_v41, %v826_v51 }
 0x86e   :  { %835 = vrot.lane.b32.xlu0 %v831_v61, %s4374_s1 }
 0x86f   :  { %v766_v15 = vpop.permute.xlu0 %765  ;;  %v828_v45 = vpop.permute.xlu1 %827 }
 0x870   :  { %v771_v19 = vmul.f32 %v4045_v0, %v766_v15  ;;  %v832_v29 = vmul.f32 %v4047_v8, %v828_v45 }
 0x872   :  { %775 = vrot.lane.b32.xlu0 %v771_v19, %s4374_s1  ;;  %837 = vrot.lane.b32.xlu1 %v832_v29, %s4374_s1 }
 0x873   :  { %v768_v58 = vpop.permute.xlu1 %767 }
 0x874   :  { %v772_v47 = vmul.f32 %v4049_v33, %v768_v58 }
 0x876   :  { %777 = vrot.lane.b32.xlu1 %v772_v47, %s4374_s1 }
 0x8e0   :  { %v836_v59 = vpop.permute.xlu0 %835 }
 0x8e1   :  { %v841_v62 = vadd.f32 %v836_v59, %v4642_v48 }
 0x8e3   :  { %4050 = vtanh.f32 %v841_v62 }
 0x8e4   :  { %v776_v27 = vpop.permute.xlu0 %775  ;;  %v838_v31 = vpop.permute.xlu1 %837 }
 0x8e5   :  { %v781_v2 = vadd.f32 %v776_v27, %v4584_v10  ;;  %v842_v25 = vadd.f32 %v838_v31, %v4648_v52 }
 0x8e7   :  { %4052 = vtanh.f32 %v781_v2 }
 0x8e8   :  { %4054 = vtanh.f32 %v842_v25  ;;  %v778_v1 = vpop.permute.xlu1 %777 }
 0x8e9   :  { %v782_v6 = vadd.f32 %v778_v1, %v4591_v14 }
 0x8eb   :  { %4056 = vtanh.f32 %v782_v6 }
 0x8f0   :  { %v4051_v39 = vpop.eup %4050 }
 0x8f1   :  { %v845_v51 = vsub.f32 %v4748_v54, %v4051_v39 }
 0x8f3   :  { %849 = vrot.lane.b32.xlu0 %v845_v51, %s4376_s2 }
 0x8f4   :  { %v4053_v61 = vpop.eup %4052 }
 0x8f5   :  { %v4055_v15 = vpop.eup %4054  ;;  %v785_v45 = vsub.f32 %v4754_v35, %v4053_v61 }
 0x8f6   :  { %v846_v19 = vsub.f32 %v4750_v23, %v4055_v15 }
 0x8f7   :  { %789 = vrot.lane.b32.xlu0 %v785_v45, %s4376_s2 }
 0x8f8   :  { %v4057_v29 = vpop.eup %4056  ;;  %851 = vrot.lane.b32.xlu1 %v846_v19, %s4376_s2 }
 0x8f9   :  { %v786_v58 = vsub.f32 %v4756_v55, %v4057_v29 }
 0x8fc   :  { %791 = vrot.lane.b32.xlu1 %v786_v58, %s4376_s2 }
 0x965   :  { %v850_v47 = vpop.permute.xlu0 %849 }
 0x966   :  { %v855_v59 = vmul.f32 %v4043_v41, %v850_v47 }
 0x968   :  { %859 = vrot.lane.b32.xlu0 %v855_v59, %s4377_s14 }
 0x969   :  { %v790_v62 = vpop.permute.xlu0 %789 }
 0x96a   :  { %v795_v27 = vmul.f32 %v4045_v0, %v790_v62  ;;  %v852_v31 = vpop.permute.xlu1 %851 }
 0x96b   :  { %v856_v2 = vmul.f32 %v4047_v8, %v852_v31 }
 0x96c   :  { %799 = vrot.lane.b32.xlu0 %v795_v27, %s4377_s14 }
 0x96d   :  { %861 = vrot.lane.b32.xlu1 %v856_v2, %s4377_s14 }
 0x96e   :  { %v792_v25 = vpop.permute.xlu1 %791 }
 0x96f   :  { %v796_v1 = vmul.f32 %v4049_v33, %v792_v25 }
 0x971   :  { %801 = vrot.lane.b32.xlu1 %v796_v1, %s4377_s14 }
 0x9da   :  { %v860_v6 = vpop.permute.xlu0 %859 }
 0x9db   :  { %v4799_v45 = vadd.f32 %v4051_v39, %v860_v6 }
 0x9dd   :  { %5735 = vst [vmem:[#allocation8_spill] sm:$0xff] %v4799_v45 }
 0x9de   :  { %v800_v41 = vpop.permute.xlu0 %799 }
 0x9df   :  { %v862_v51 = vpop.permute.xlu1 %861  ;;  %v4805_v8 = vadd.f32 %v4053_v61, %v800_v41 }
 0x9e0   :  { %v4801_v19 = vadd.f32 %v4055_v15, %v862_v51 }
 0x9e2   :  { %5736 = vst [vmem:[#allocation9_spill] sm:$0xff] %v4801_v19  ;;  %v3920_v0 = vpack.i.bf16 %v4801_v19, %v4799_v45 }
 0x9e3   :  { %v802_v58 = vpop.permute.xlu1 %801 }
 0x9e4   :  { %v4807_v47 = vadd.f32 %v4057_v29, %v802_v58  ;;  %3921 = vrot.lane.b32.xlu0 %v3920_v0, %s4378_s15 }
 0x9e6   :  { %v875_v33 = vpack.c.bf16 %v4807_v47, %v4805_v8 }
 0x9e8   :  { %879 = vrot.lane.b32.xlu1 %v875_v33, %s4375_s0 }
 0xa56   :  { %v3922_v39 = vpop.permute.xlu0 %3921 }
 0xa57   :  { %v3924_v59 = vunpack.i.h.bf16 %v3922_v39  ;;  %v3923_v15 = vunpack.i.l.bf16 %v3922_v39 }
 0xa59   :  { %v876_v62 = vpack.c.bf16 %v3924_v59, %v3923_v15 }
 0xa5a   :  { %v880_v27 = vpop.permute.xlu1 %879 }
 0xa5b   :  { %881 = vrot.lane.b32.xlu0 %v876_v62, %s4375_s0  ;;  %3826 = vmatprep.mubr.msk.bf16.mxu1 %vm306_vm2, %v880_v27 }
 0xacd   :  { %v882_v61 = vpop.permute.xlu0 %881 }
 0xace   :  { %3827 = vmatmul.mubr.msk.bf16.vlgmr.msra.gmra.mxu1 %vm306_vm2, %v882_v61 }
 0xacf   :  { %3831 = vmatpush3.bf16.msra.mxu1 %v4415_v3 }
 0xad0   :  { %3836 = vmatprep.subr.bf16.mxu1 %v4415_v3 }
 0xb8e   :  { %v3828_v29 = vpop.f32.mrf.mxu1 }
 0xb8f   :  { %v1012_v31 = vadd.f32 %v3828_v29, %v4542_v53  ;;  %v998_v3 = vadd.f32 %v3828_v29, %v4645_v50 }
 0xb90   :  { %v923_v2 = vpop.f32.mrf.mxu1 }
 0xb91   :  { %1016 = vrot.lane.b32.xlu1 %v1012_v31, %s4375_s0  ;;  %v952_v1 = vadd.f32 %v923_v2, %v4552_v57  ;;  %v938_v0 = vadd.f32 %v923_v2, %v4578_v7  ;;  %v3633_v58 = vmul.f32 -1.442695, %v998_v3 }
 0xb92   :  { %v3829_v25 = vpop.f32.mrf.mxu1 }
 0xb93   :  { %v1013_v6 = vadd.f32 %v3829_v25, %v4542_v53  ;;  %v999_v33 = vadd.f32 %v3829_v25, %v4651_v60  ;;  %v3631_v39 = vmul.f32 -1.442695, %v938_v0  ;;  %4058 = vpow2.f32 %v3633_v58 }
 0xb94   :  { %v926_v51 = vpop.f32.mrf.mxu1 }
 0xb95   :  { %956 = vrot.lane.b32.xlu1 %v952_v1, %s4375_s0  ;;  %1018 = vrot.lane.b32.xlu0 %v1013_v6, %s4375_s0  ;;  %v953_v41 = vadd.f32 %v926_v51, %v4552_v57  ;;  %v3634_v59 = vmul.f32 -1.442695, %v999_v33  ;;  %v939_v15 = vadd.f32 %v926_v51, %v4587_v12  ;;  %4060 = vpow2.f32 %v3631_v39 }
 0xb97   :  { %4062 = vpow2.f32 %v3634_v59  ;;  %v3632_v62 = vmul.f32 -1.442695, %v939_v15 }
 0xb99   :  { %958 = vrot.lane.b32.xlu0 %v953_v41, %s4375_s0  ;;  %4064 = vpow2.f32 %v3632_v62 }
 0xba0   :  { %v4059_v27 = vpop.eup %4058 }
 0xba1   :  { %v1006_v31 = vadd.f32 1.0, %v4059_v27 }
 0xba2   :  { %v4061_v61 = vpop.eup %4060 }
 0xba3   :  { %v946_v6 = vadd.f32 1.0, %v4061_v61  ;;  %4066 = vrcp.f32 %v1006_v31 }
 0xba4   :  { %v4063_v1 = vpop.eup %4062 }
 0xba5   :  { %v1007_v29 = vadd.f32 1.0, %v4063_v1  ;;  %4068 = vrcp.f32 %v946_v6 }
 0xba6   :  { %v4065_v2 = vpop.eup %4064 }
 0xba7   :  { %4070 = vrcp.f32 %v1007_v29  ;;  %v947_v25 = vadd.f32 1.0, %v4065_v2 }
 0xba9   :  { %4072 = vrcp.f32 %v947_v25 }
 0xbb0   :  { %v4067_v41 = vpop.eup %4066 }
 0xbb2   :  { %v4069_v51 = vpop.eup %4068 }
 0xbb4   :  { %v4071_v58 = vpop.eup %4070 }
 0xbb6   :  { %v4073_v62 = vpop.eup %4072 }
 0xc03   :  { %v1017_v3 = vpop.permute.xlu1 %1016 }
 0xc04   :  { %v1022_v0 = vmul.f32 %v4067_v41, %v1017_v3 }
 0xc06   :  { %1026 = vrot.lane.b32.xlu1 %v1022_v0, %s4374_s1 }
 0xc07   :  { %v957_v33 = vpop.permute.xlu1 %956  ;;  %v1019_v39 = vpop.permute.xlu0 %1018 }
 0xc08   :  { %v962_v59 = vmul.f32 %v4069_v51, %v957_v33  ;;  %v1023_v15 = vmul.f32 %v4071_v58, %v1019_v39 }
 0xc0a   :  { %966 = vrot.lane.b32.xlu1 %v962_v59, %s4374_s1  ;;  %1028 = vrot.lane.b32.xlu0 %v1023_v15, %s4374_s1 }
 0xc0b   :  { %v959_v27 = vpop.permute.xlu0 %958 }
 0xc0c   :  { %v963_v61 = vmul.f32 %v4073_v62, %v959_v27 }
 0xc0e   :  { %968 = vrot.lane.b32.xlu0 %v963_v61, %s4374_s1 }
 0xc78   :  { %v1027_v31 = vpop.permute.xlu1 %1026 }
 0xc79   :  { %v1032_v1 = vadd.f32 %v1027_v31, %v4645_v50 }
 0xc7b   :  { %4074 = vtanh.f32 %v1032_v1 }
 0xc7c   :  { %v967_v6 = vpop.permute.xlu1 %966  ;;  %v1029_v29 = vpop.permute.xlu0 %1028 }
 0xc7d   :  { %v972_v2 = vadd.f32 %v967_v6, %v4578_v7  ;;  %v1033_v25 = vadd.f32 %v1029_v29, %v4651_v60 }
 0xc7f   :  { %4076 = vtanh.f32 %v972_v2 }
 0xc80   :  { %4078 = vtanh.f32 %v1033_v25  ;;  %v969_v3 = vpop.permute.xlu0 %968 }
 0xc81   :  { %v973_v0 = vadd.f32 %v969_v3, %v4587_v12 }
 0xc83   :  { %4080 = vtanh.f32 %v973_v0 }
 0xc88   :  { %v4075_v33 = vpop.eup %4074 }
 0xc89   :  { %v1036_v39 = vsub.f32 %v4799_v45, %v4075_v33 }
 0xc8b   :  { %1040 = vrot.lane.b32.xlu1 %v1036_v39, %s4376_s2 }
 0xc8c   :  { %v4077_v59 = vpop.eup %4076 }
 0xc8d   :  { %v4079_v15 = vpop.eup %4078  ;;  %v976_v27 = vsub.f32 %v4805_v8, %v4077_v59 }
 0xc8e   :  { %v1037_v61 = vsub.f32 %v4801_v19, %v4079_v15 }
 0xc8f   :  { %980 = vrot.lane.b32.xlu1 %v976_v27, %s4376_s2 }
 0xc90   :  { %v4081_v31 = vpop.eup %4080  ;;  %1042 = vrot.lane.b32.xlu0 %v1037_v61, %s4376_s2 }
 0xc91   :  { %v977_v1 = vsub.f32 %v4807_v47, %v4081_v31 }
 0xc94   :  { %982 = vrot.lane.b32.xlu0 %v977_v1, %s4376_s2 }
 0xcfd   :  { %v1041_v6 = vpop.permute.xlu1 %1040 }
 0xcfe   :  { %v1046_v29 = vmul.f32 %v4067_v41, %v1041_v6 }
 0xd00   :  { %1050 = vrot.lane.b32.xlu1 %v1046_v29, %s4377_s14 }
 0xd01   :  { %v981_v2 = vpop.permute.xlu1 %980 }
 0xd02   :  { %v986_v25 = vmul.f32 %v4069_v51, %v981_v2  ;;  %v1043_v3 = vpop.permute.xlu0 %1042 }
 0xd03   :  { %v1047_v0 = vmul.f32 %v4071_v58, %v1043_v3 }
 0xd04   :  { %990 = vrot.lane.b32.xlu1 %v986_v25, %s4377_s14 }
 0xd05   :  { %1052 = vrot.lane.b32.xlu0 %v1047_v0, %s4377_s14 }
 0xd06   :  { %v983_v39 = vpop.permute.xlu0 %982 }
 0xd07   :  { %v987_v27 = vmul.f32 %v4073_v62, %v983_v39 }
 0xd09   :  { %992 = vrot.lane.b32.xlu0 %v987_v27, %s4377_s14 }
 0xd72   :  { %v1051_v61 = vpop.permute.xlu1 %1050 }
 0xd73   :  { %v4850_v55 = vadd.f32 %v4075_v33, %v1051_v61 }
 0xd75   :  { %5737 = vst [vmem:[#allocation10_spill] sm:$0xff] %v4850_v55 }
 0xd76   :  { %v991_v41 = vpop.permute.xlu1 %990 }
 0xd77   :  { %v1053_v23 = vpop.permute.xlu0 %1052  ;;  %v4856_v58 = vadd.f32 %v4077_v59, %v991_v41 }
 0xd78   :  { %v4852_v1 = vadd.f32 %v4079_v15, %v1053_v23 }
 0xd7a   :  { %5738 = vst [vmem:[#allocation11_spill] sm:$0xff] %v4852_v1  ;;  %v3925_v51 = vpack.i.bf16 %v4852_v1, %v4850_v55 }
 0xd7b   :  { %v993_v6 = vpop.permute.xlu0 %992 }
 0xd7c   :  { %v4858_v29 = vadd.f32 %v4081_v31, %v993_v6  ;;  %3926 = vrot.lane.b32.xlu1 %v3925_v51, %s4378_s15  ;;  %v4870_v31 = vld [vmem:[%s5704_s3] sm:$0xff]  }
 0xd7e   :  { %v1066_v62 = vpack.c.bf16 %v4858_v29, %v4856_v58 }
 0xd80   :  { %1070 = vrot.lane.b32.xlu0 %v1066_v62, %s4375_s0 }
 0xdee   :  { %v3927_v33 = vpop.permute.xlu1 %3926 }
 0xdef   :  { %v3929_v2 = vunpack.i.h.bf16 %v3927_v33  ;;  %v3928_v23 = vunpack.i.l.bf16 %v3927_v33 }
 0xdf1   :  { %v1067_v15 = vpack.c.bf16 %v3929_v2, %v3928_v23 }
 0xdf2   :  { %v1071_v25 = vpop.permute.xlu0 %1070 }
 0xdf3   :  { %1072 = vrot.lane.b32.xlu1 %v1067_v15, %s4375_s0  ;;  %3832 = vmatprep.mubr.msk.bf16.mxu1 %vm306_vm2, %v1071_v25 }
 0xe65   :  { %v1073_v59 = vpop.permute.xlu1 %1072 }
 0xe66   :  { %3833 = vmatmul.mubr.msk.bf16.vlgmr.msra.gmra.mxu1 %vm306_vm2, %v1073_v59 }
 0xe67   :  { %3837 = vmatpush3.bf16.msra.mxu1 %v4870_v31 }
 0xe68   :  { %3842 = vmatprep.subr.bf16.mxu1 %v4870_v31 }
 0xf26   :  { %v3834_v3 = vpop.f32.mrf.mxu1 }
 0xf27   :  { %v1203_v0 = vadd.f32 %v3834_v3, %v4542_v53  ;;  %v1189_v62 = vadd.f32 %v3834_v3, %v4630_v40 }
 0xf28   :  { %v1114_v39 = vpop.f32.mrf.mxu1 }
 0xf29   :  { %1207 = vrot.lane.b32.xlu0 %v1203_v0, %s4375_s0  ;;  %v1143_v61 = vadd.f32 %v1114_v39, %v4552_v57  ;;  %v1129_v33 = vadd.f32 %v1114_v39, %v4597_v18  ;;  %v3639_v2 = vmul.f32 -1.442695, %v1189_v62 }
 0xf2a   :  { %v3835_v27 = vpop.f32.mrf.mxu1 }
 0xf2b   :  { %v1204_v41 = vadd.f32 %v3835_v27, %v4542_v53  ;;  %v1190_v23 = vadd.f32 %v3835_v27, %v4636_v44  ;;  %v3637_v15 = vmul.f32 -1.442695, %v1129_v33  ;;  %4082 = vpow2.f32 %v3639_v2 }
 0xf2c   :  { %v1117_v51 = vpop.f32.mrf.mxu1 }
 0xf2d   :  { %1147 = vrot.lane.b32.xlu0 %v1143_v61, %s4375_s0  ;;  %1209 = vrot.lane.b32.xlu1 %v1204_v41, %s4375_s0  ;;  %v1144_v6 = vadd.f32 %v1117_v51, %v4552_v57  ;;  %v3640_v25 = vmul.f32 -1.442695, %v1190_v23  ;;  %v1130_v59 = vadd.f32 %v1117_v51, %v4603_v22  ;;  %4084 = vpow2.f32 %v3637_v15 }
 0xf2f   :  { %4086 = vpow2.f32 %v3640_v25  ;;  %v3638_v0 = vmul.f32 -1.442695, %v1130_v59 }
 0xf31   :  { %1149 = vrot.lane.b32.xlu1 %v1144_v6, %s4375_s0  ;;  %4088 = vpow2.f32 %v3638_v0 }
 0xf38   :  { %v4083_v61 = vpop.eup %4082 }
 0xf39   :  { %v1197_v54 = vadd.f32 1.0, %v4083_v61 }
 0xf3a   :  { %v4085_v41 = vpop.eup %4084 }
 0xf3b   :  { %v1137_v35 = vadd.f32 1.0, %v4085_v41  ;;  %4090 = vrcp.f32 %v1197_v54 }
 0xf3c   :  { %v4087_v6 = vpop.eup %4086 }
 0xf3d   :  { %v1198_v3 = vadd.f32 1.0, %v4087_v6  ;;  %4092 = vrcp.f32 %v1137_v35 }
 0xf3e   :  { %v4089_v39 = vpop.eup %4088 }
 0xf3f   :  { %4094 = vrcp.f32 %v1198_v3  ;;  %v1138_v27 = vadd.f32 1.0, %v4089_v39 }
 0xf41   :  { %4096 = vrcp.f32 %v1138_v27 }
 0xf48   :  { %v4091_v62 = vpop.eup %4090 }
 0xf4a   :  { %v4093_v51 = vpop.eup %4092 }
 0xf4c   :  { %v4095_v23 = vpop.eup %4094 }
 0xf4e   :  { %v4097_v54 = vpop.eup %4096 }
 0xf9b   :  { %v1208_v33 = vpop.permute.xlu0 %1207 }
 0xf9c   :  { %v1213_v2 = vmul.f32 %v4091_v62, %v1208_v33 }
 0xf9e   :  { %1217 = vrot.lane.b32.xlu0 %v1213_v2, %s4374_s1 }
 0xf9f   :  { %v1148_v15 = vpop.permute.xlu0 %1147  ;;  %v1210_v25 = vpop.permute.xlu1 %1209 }
 0xfa0   :  { %v1153_v59 = vmul.f32 %v4093_v51, %v1148_v15  ;;  %v1214_v0 = vmul.f32 %v4095_v23, %v1210_v25 }
 0xfa2   :  { %1157 = vrot.lane.b32.xlu0 %v1153_v59, %s4374_s1  ;;  %1219 = vrot.lane.b32.xlu1 %v1214_v0, %s4374_s1 }
 0xfa3   :  { %v1150_v35 = vpop.permute.xlu1 %1149 }
 0xfa4   :  { %v1154_v61 = vmul.f32 %v4097_v54, %v1150_v35 }
 0xfa6   :  { %1159 = vrot.lane.b32.xlu1 %v1154_v61, %s4374_s1 }
0x1010   :  { %v1218_v41 = vpop.permute.xlu0 %1217 }
0x1011   :  { %v1223_v6 = vadd.f32 %v1218_v41, %v4630_v40 }
0x1013   :  { %4098 = vtanh.f32 %v1223_v6 }
0x1014   :  { %v1158_v3 = vpop.permute.xlu0 %1157  ;;  %v1220_v39 = vpop.permute.xlu1 %1219 }
0x1015   :  { %v1163_v27 = vadd.f32 %v1158_v3, %v4597_v18  ;;  %v1224_v33 = vadd.f32 %v1220_v39, %v4636_v44 }
0x1017   :  { %4100 = vtanh.f32 %v1163_v27 }
0x1018   :  { %4102 = vtanh.f32 %v1224_v33  ;;  %v1160_v2 = vpop.permute.xlu1 %1159 }
0x1019   :  { %v1164_v15 = vadd.f32 %v1160_v2, %v4603_v22 }
0x101b   :  { %4104 = vtanh.f32 %v1164_v15 }
0x1020   :  { %v4099_v25 = vpop.eup %4098 }
0x1021   :  { %v1227_v59 = vsub.f32 %v4850_v55, %v4099_v25 }
0x1023   :  { %1231 = vrot.lane.b32.xlu0 %v1227_v59, %s4376_s2 }
0x1024   :  { %v4101_v0 = vpop.eup %4100 }
0x1025   :  { %v4103_v35 = vpop.eup %4102  ;;  %v1167_v61 = vsub.f32 %v4856_v58, %v4101_v0 }
0x1026   :  { %v1228_v41 = vsub.f32 %v4852_v1, %v4103_v35 }
0x1027   :  { %1171 = vrot.lane.b32.xlu0 %v1167_v61, %s4376_s2 }
0x1028   :  { %v4105_v6 = vpop.eup %4104  ;;  %1233 = vrot.lane.b32.xlu1 %v1228_v41, %s4376_s2 }
0x1029   :  { %v1168_v3 = vsub.f32 %v4858_v29, %v4105_v6 }
0x102c   :  { %1173 = vrot.lane.b32.xlu1 %v1168_v3, %s4376_s2 }
0x1095   :  { %v1232_v39 = vpop.permute.xlu0 %1231 }
0x1096   :  { %v1237_v27 = vmul.f32 %v4091_v62, %v1232_v39 }
0x1098   :  { %1241 = vrot.lane.b32.xlu0 %v1237_v27, %s4377_s14 }
0x1099   :  { %v1172_v33 = vpop.permute.xlu0 %1171 }
0x109a   :  { %v1177_v2 = vmul.f32 %v4093_v51, %v1172_v33  ;;  %v1234_v15 = vpop.permute.xlu1 %1233 }
0x109b   :  { %v1238_v59 = vmul.f32 %v4095_v23, %v1234_v15 }
0x109c   :  { %1181 = vrot.lane.b32.xlu0 %v1177_v2, %s4377_s14 }
0x109d   :  { %1243 = vrot.lane.b32.xlu1 %v1238_v59, %s4377_s14 }
0x109e   :  { %v1174_v61 = vpop.permute.xlu1 %1173 }
0x109f   :  { %v1178_v37 = vmul.f32 %v4097_v54, %v1174_v61 }
0x10a1   :  { %1183 = vrot.lane.b32.xlu1 %v1178_v37, %s4377_s14 }
0x110a   :  { %v1242_v41 = vpop.permute.xlu0 %1241 }
0x110b   :  { %v4906_v19 = vadd.f32 %v4099_v25, %v1242_v41 }
0x110d   :  { %5739 = vst [vmem:[#allocation12_spill] sm:$0xff] %v4906_v19 }
0x110e   :  { %v1182_v62 = vpop.permute.xlu0 %1181 }
0x110f   :  { %v1244_v11 = vpop.permute.xlu1 %1243  ;;  %v4912_v23 = vadd.f32 %v4101_v0, %v1182_v62 }
0x1110   :  { %v4908_v3 = vadd.f32 %v4103_v35, %v1244_v11 }
0x1112   :  { %5740 = vst [vmem:[#allocation13_spill] sm:$0xff] %v4908_v3  ;;  %v3930_v51 = vpack.i.bf16 %v4908_v3, %v4906_v19 }
0x1113   :  { %v1184_v39 = vpop.permute.xlu1 %1183 }
0x1114   :  { %v4914_v27 = vadd.f32 %v4105_v6, %v1184_v39  ;;  %3931 = vrot.lane.b32.xlu0 %v3930_v51, %s4378_s15 }
0x1116   :  { %v1257_v37 = vpack.c.bf16 %v4914_v27, %v4912_v23 }
0x1118   :  { %1261 = vrot.lane.b32.xlu1 %v1257_v37, %s4375_s0 }
0x1186   :  { %v3932_v54 = vpop.permute.xlu0 %3931 }
0x1187   :  { %v3934_v25 = vunpack.i.h.bf16 %v3932_v54  ;;  %v3933_v11 = vunpack.i.l.bf16 %v3932_v54 }
0x1189   :  { %v1258_v35 = vpack.c.bf16 %v3934_v25, %v3933_v11 }
0x118a   :  { %v1262_v33 = vpop.permute.xlu1 %1261 }
0x118b   :  { %1263 = vrot.lane.b32.xlu0 %v1258_v35, %s4375_s0  ;;  %3838 = vmatprep.mubr.msk.bf16.mxu1 %vm306_vm2, %v1262_v33 }
0x11fd   :  { %v1264_v0 = vpop.permute.xlu0 %1263 }
0x11fe   :  { %3839 = vmatmul.mubr.msk.bf16.vlgmr.msra.gmra.mxu1 %vm306_vm2, %v1264_v0 }
0x11ff   :  { %3843 = vmatpush3.bf16.msra.mxu1 %v4870_v31 }
0x1200   :  { %3848 = vmatprep.subr.bf16.mxu1 %v4870_v31 }
0x12be   :  { %v3840_v6 = vpop.f32.mrf.mxu1 }
0x12bf   :  { %v1394_v2 = vadd.f32 %v3840_v6, %v4542_v53  ;;  %v1380_v39 = vadd.f32 %v3840_v6, %v4633_v42 }
0x12c0   :  { %v1305_v15 = vpop.f32.mrf.mxu1 }
0x12c1   :  { %1398 = vrot.lane.b32.xlu1 %v1394_v2, %s4375_s0  ;;  %v1334_v61 = vadd.f32 %v1305_v15, %v4552_v57  ;;  %v1320_v37 = vadd.f32 %v1305_v15, %v4594_v16  ;;  %v3645_v54 = vmul.f32 -1.442695, %v1380_v39 }
0x12c2   :  { %v3841_v59 = vpop.f32.mrf.mxu1 }
0x12c3   :  { %v1395_v41 = vadd.f32 %v3841_v59, %v4542_v53  ;;  %v1381_v25 = vadd.f32 %v3841_v59, %v4639_v46  ;;  %v3643_v11 = vmul.f32 -1.442695, %v1320_v37  ;;  %4106 = vpow2.f32 %v3645_v54 }
0x12c4   :  { %v1308_v62 = vpop.f32.mrf.mxu1 }
0x12c5   :  { %1338 = vrot.lane.b32.xlu1 %v1334_v61, %s4375_s0  ;;  %1400 = vrot.lane.b32.xlu0 %v1395_v41, %s4375_s0  ;;  %v1335_v51 = vadd.f32 %v1308_v62, %v4552_v57  ;;  %v3646_v35 = vmul.f32 -1.442695, %v1381_v25  ;;  %v1321_v33 = vadd.f32 %v1308_v62, %v4600_v20  ;;  %4108 = vpow2.f32 %v3643_v11 }
0x12c7   :  { %4110 = vpow2.f32 %v3646_v35  ;;  %v3644_v0 = vmul.f32 -1.442695, %v1321_v33 }
0x12c9   :  { %1340 = vrot.lane.b32.xlu0 %v1335_v51, %s4375_s0  ;;  %4112 = vpow2.f32 %v3644_v0 }
0x12d0   :  { %v4107_v2 = vpop.eup %4106 }
0x12d1   :  { %v1388_v41 = vadd.f32 1.0, %v4107_v2 }
0x12d2   :  { %v4109_v61 = vpop.eup %4108 }
0x12d3   :  { %v1328_v45 = vadd.f32 1.0, %v4109_v61  ;;  %4114 = vrcp.f32 %v1388_v41 }
0x12d4   :  { %v4111_v51 = vpop.eup %4110 }
0x12d5   :  { %v1389_v6 = vadd.f32 1.0, %v4111_v51  ;;  %4116 = vrcp.f32 %v1328_v45 }
0x12d6   :  { %v4113_v15 = vpop.eup %4112 }
0x12d7   :  { %4118 = vrcp.f32 %v1389_v6  ;;  %v1329_v59 = vadd.f32 1.0, %v4113_v15 }
0x12d9   :  { %4120 = vrcp.f32 %v1329_v59 }
0x12e0   :  { %v4115_v39 = vpop.eup %4114 }
0x12e2   :  { %v4117_v62 = vpop.eup %4116 }
0x12e4   :  { %v4119_v25 = vpop.eup %4118 }
0x12e6   :  { %v4121_v2 = vpop.eup %4120 }
0x1333   :  { %v1399_v37 = vpop.permute.xlu1 %1398 }
0x1334   :  { %v1404_v54 = vmul.f32 %v4115_v39, %v1399_v37 }
0x1336   :  { %1408 = vrot.lane.b32.xlu1 %v1404_v54, %s4374_s1 }
0x1337   :  { %v1339_v11 = vpop.permute.xlu1 %1338  ;;  %v1401_v35 = vpop.permute.xlu0 %1400 }
0x1338   :  { %v1344_v33 = vmul.f32 %v4117_v62, %v1339_v11  ;;  %v1405_v0 = vmul.f32 %v4119_v25, %v1401_v35 }
0x133a   :  { %1348 = vrot.lane.b32.xlu1 %v1344_v33, %s4374_s1  ;;  %1410 = vrot.lane.b32.xlu0 %v1405_v0, %s4374_s1 }
0x133b   :  { %v1341_v45 = vpop.permute.xlu0 %1340 }
0x133c   :  { %v1345_v61 = vmul.f32 %v4121_v2, %v1341_v45 }
0x133e   :  { %1350 = vrot.lane.b32.xlu0 %v1345_v61, %s4374_s1 }
0x13a8   :  { %v1409_v41 = vpop.permute.xlu1 %1408 }
0x13a9   :  { %v1414_v51 = vadd.f32 %v1409_v41, %v4633_v42 }
0x13ab   :  { %4122 = vtanh.f32 %v1414_v51 }
0x13ac   :  { %v1349_v6 = vpop.permute.xlu1 %1348  ;;  %v1411_v15 = vpop.permute.xlu0 %1410 }
0x13ad   :  { %v1354_v59 = vadd.f32 %v1349_v6, %v4594_v16  ;;  %v1415_v37 = vadd.f32 %v1411_v15, %v4639_v46 }
0x13af   :  { %4124 = vtanh.f32 %v1354_v59 }
0x13b0   :  { %4126 = vtanh.f32 %v1415_v37  ;;  %v1351_v54 = vpop.permute.xlu0 %1350 }
0x13b1   :  { %v1355_v11 = vadd.f32 %v1351_v54, %v4600_v20 }
0x13b3   :  { %4128 = vtanh.f32 %v1355_v11 }
0x13b8   :  { %v4123_v35 = vpop.eup %4122 }
0x13b9   :  { %v1418_v33 = vsub.f32 %v4906_v19, %v4123_v35 }
0x13bb   :  { %1422 = vrot.lane.b32.xlu1 %v1418_v33, %s4376_s2 }
0x13bc   :  { %v4125_v0 = vpop.eup %4124 }
0x13bd   :  { %v4127_v45 = vpop.eup %4126  ;;  %v1358_v61 = vsub.f32 %v4912_v23, %v4125_v0 }
0x13be   :  { %v1419_v41 = vsub.f32 %v4908_v3, %v4127_v45 }
0x13bf   :  { %1362 = vrot.lane.b32.xlu1 %v1358_v61, %s4376_s2 }
0x13c0   :  { %v4129_v51 = vpop.eup %4128  ;;  %1424 = vrot.lane.b32.xlu0 %v1419_v41, %s4376_s2 }
0x13c1   :  { %v1359_v6 = vsub.f32 %v4914_v27, %v4129_v51 }
0x13c4   :  { %1364 = vrot.lane.b32.xlu0 %v1359_v6, %s4376_s2 }
0x142d   :  { %v1423_v15 = vpop.permute.xlu1 %1422 }
0x142e   :  { %v1428_v59 = vmul.f32 %v4115_v39, %v1423_v15 }
0x1430   :  { %1432 = vrot.lane.b32.xlu1 %v1428_v59, %s4377_s14 }
0x1431   :  { %v1363_v37 = vpop.permute.xlu1 %1362 }
0x1432   :  { %v1368_v54 = vmul.f32 %v4117_v62, %v1363_v37  ;;  %v1425_v11 = vpop.permute.xlu0 %1424 }
0x1433   :  { %v1429_v33 = vmul.f32 %v4119_v25, %v1425_v11 }
0x1434   :  { %1372 = vrot.lane.b32.xlu1 %v1368_v54, %s4377_s14 }
0x1435   :  { %1434 = vrot.lane.b32.xlu0 %v1429_v33, %s4377_s14 }
0x1436   :  { %v1365_v61 = vpop.permute.xlu0 %1364 }
0x1437   :  { %v1369_v3 = vmul.f32 %v4121_v2, %v1365_v61 }
0x1439   :  { %1374 = vrot.lane.b32.xlu0 %v1369_v3, %s4377_s14 }
0x14a2   :  { %v1433_v41 = vpop.permute.xlu1 %1432 }
0x14a3   :  { %v4957_v1 = vadd.f32 %v4123_v35, %v1433_v41 }
0x14a5   :  { %5741 = vst [vmem:[#allocation14_spill] sm:$0xff] %v4957_v1 }
0x14a6   :  { %v1373_v39 = vpop.permute.xlu1 %1372 }
0x14a7   :  { %v1435_v19 = vpop.permute.xlu0 %1434  ;;  %v4963_v25 = vadd.f32 %v4125_v0, %v1373_v39 }
0x14a8   :  { %v4959_v6 = vadd.f32 %v4127_v45, %v1435_v19 }
0x14a9   :  { %5743 = vst [vmem:[#allocation16_spill] sm:$0xff] %v4963_v25 }
0x14aa   :  { %5742 = vst [vmem:[#allocation15_spill] sm:$0xff] %v4959_v6  ;;  %v3935_v62 = vpack.i.bf16 %v4959_v6, %v4957_v1 }
0x14ab   :  { %v1375_v15 = vpop.permute.xlu0 %1374 }
0x14ac   :  { %v4965_v59 = vadd.f32 %v4129_v51, %v1375_v15  ;;  %3936 = vrot.lane.b32.xlu1 %v3935_v62, %s4378_s15 }
0x14ae   :  { %5744 = vst [vmem:[#allocation17_spill] sm:$0xff] %v4965_v59  ;;  %v1448_v3 = vpack.c.bf16 %v4965_v59, %v4963_v25 }
0x14b0   :  { %1452 = vrot.lane.b32.xlu0 %v1448_v3, %s4375_s0 }
0x151e   :  { %v3937_v2 = vpop.permute.xlu1 %3936 }
0x151f   :  { %v3939_v35 = vunpack.i.h.bf16 %v3937_v2  ;;  %v3938_v19 = vunpack.i.l.bf16 %v3937_v2 }
0x1521   :  { %v1449_v45 = vpack.c.bf16 %v3939_v35, %v3938_v19 }
0x1522   :  { %v1453_v37 = vpop.permute.xlu0 %1452 }
0x1523   :  { %1454 = vrot.lane.b32.xlu1 %v1449_v45, %s4375_s0  ;;  %3844 = vmatprep.mubr.msk.bf16.mxu1 %vm306_vm2, %v1453_v37 }
0x1595   :  { %v1455_v0 = vpop.permute.xlu1 %1454 }
0x1596   :  { %3845 = vmatmul.mubr.msk.bf16.vlgmr.msra.gmra.mxu1 %vm306_vm2, %v1455_v0 }
0x1597   :  { %3849 = vmatpush3.bf16.msra.mxu1 %v4870_v31 }
0x1598   :  { %3860 = vmatprep.subr.bf16.mxu1 %v4870_v31 }
0x1656   :  { %v3846_v51 = vpop.f32.mrf.mxu1 }
0x1657   :  { %v1585_v54 = vadd.f32 %v3846_v51, %v4542_v53  ;;  %v1571_v15 = vadd.f32 %v3846_v51, %v4618_v32 }
0x1658   :  { %v1496_v11 = vpop.f32.mrf.mxu1 }
0x1659   :  { %1589 = vrot.lane.b32.xlu0 %v1585_v54, %s4375_s0  ;;  %v1525_v61 = vadd.f32 %v1496_v11, %v4552_v57  ;;  %v1511_v3 = vadd.f32 %v1496_v11, %v4609_v26  ;;  %v3651_v2 = vmul.f32 -1.442695, %v1571_v15 }
0x165a   :  { %v3847_v33 = vpop.f32.mrf.mxu1 }
0x165b   :  { %v1586_v41 = vadd.f32 %v3847_v33, %v4542_v53  ;;  %v1572_v35 = vadd.f32 %v3847_v33, %v4624_v36  ;;  %v3649_v19 = vmul.f32 -1.442695, %v1511_v3  ;;  %4130 = vpow2.f32 %v3651_v2 }
0x165c   :  { %v1499_v39 = vpop.f32.mrf.mxu1 }
0x165d   :  { %1529 = vrot.lane.b32.xlu0 %v1525_v61, %s4375_s0  ;;  %1591 = vrot.lane.b32.xlu1 %v1586_v41, %s4375_s0  ;;  %v1526_v62 = vadd.f32 %v1499_v39, %v4552_v57  ;;  %v3652_v45 = vmul.f32 -1.442695, %v1572_v35  ;;  %v1512_v37 = vadd.f32 %v1499_v39, %v4615_v30  ;;  %4132 = vpow2.f32 %v3649_v19 }
0x165f   :  { %4134 = vpow2.f32 %v3652_v45  ;;  %v3650_v0 = vmul.f32 -1.442695, %v1512_v37 }
0x1661   :  { %1531 = vrot.lane.b32.xlu1 %v1526_v62, %s4375_s0  ;;  %4136 = vpow2.f32 %v3650_v0 }
0x1668   :  { %v4131_v54 = vpop.eup %4130 }
0x1669   :  { %v1579_v41 = vadd.f32 1.0, %v4131_v54 }
0x166a   :  { %v4133_v61 = vpop.eup %4132 }
0x166b   :  { %v1519_v55 = vadd.f32 1.0, %v4133_v61  ;;  %4138 = vrcp.f32 %v1579_v41 }
0x166c   :  { %v4135_v62 = vpop.eup %4134 }
0x166d   :  { %v1580_v51 = vadd.f32 1.0, %v4135_v62  ;;  %4140 = vrcp.f32 %v1519_v55 }
0x166e   :  { %v4137_v11 = vpop.eup %4136 }
0x166f   :  { %4142 = vrcp.f32 %v1580_v51  ;;  %v1520_v33 = vadd.f32 1.0, %v4137_v11 }
0x1671   :  { %4144 = vrcp.f32 %v1520_v33 }
0x1678   :  { %v4139_v15 = vpop.eup %4138 }
0x167a   :  { %v4141_v39 = vpop.eup %4140 }
0x167c   :  { %v4143_v35 = vpop.eup %4142 }
0x167e   :  { %v4145_v54 = vpop.eup %4144 }
0x16cb   :  { %v1590_v3 = vpop.permute.xlu0 %1589 }
0x16cc   :  { %v1595_v2 = vmul.f32 %v4139_v15, %v1590_v3 }
0x16ce   :  { %1599 = vrot.lane.b32.xlu0 %v1595_v2, %s4374_s1 }
0x16cf   :  { %v1530_v19 = vpop.permute.xlu0 %1529  ;;  %v1592_v45 = vpop.permute.xlu1 %1591 }
0x16d0   :  { %v1535_v37 = vmul.f32 %v4141_v39, %v1530_v19  ;;  %v1596_v0 = vmul.f32 %v4143_v35, %v1592_v45 }
0x16d2   :  { %1539 = vrot.lane.b32.xlu0 %v1535_v37, %s4374_s1  ;;  %1601 = vrot.lane.b32.xlu1 %v1596_v0, %s4374_s1 }
0x16d3   :  { %v1532_v55 = vpop.permute.xlu1 %1531 }
0x16d4   :  { %v1536_v61 = vmul.f32 %v4145_v54, %v1532_v55 }
0x16d6   :  { %1541 = vrot.lane.b32.xlu1 %v1536_v61, %s4374_s1 }
0x1740   :  { %v1600_v41 = vpop.permute.xlu0 %1599 }
0x1741   :  { %v1605_v62 = vadd.f32 %v1600_v41, %v4618_v32 }
0x1743   :  { %4146 = vtanh.f32 %v1605_v62 }
0x1744   :  { %v1540_v51 = vpop.permute.xlu0 %1539  ;;  %v1602_v11 = vpop.permute.xlu1 %1601 }
0x1745   :  { %v1545_v33 = vadd.f32 %v1540_v51, %v4609_v26  ;;  %v1606_v3 = vadd.f32 %v1602_v11, %v4624_v36 }
0x1747   :  { %4148 = vtanh.f32 %v1545_v33 }
0x1748   :  { %4150 = vtanh.f32 %v1606_v3  ;;  %v1542_v2 = vpop.permute.xlu1 %1541 }
0x1749   :  { %v1546_v19 = vadd.f32 %v1542_v2, %v4615_v30 }
0x174b   :  { %4152 = vtanh.f32 %v1546_v19 }
0x1750   :  { %v4147_v45 = vpop.eup %4146 }
0x1751   :  { %v1609_v37 = vsub.f32 %v4957_v1, %v4147_v45 }
0x1753   :  { %1613 = vrot.lane.b32.xlu0 %v1609_v37, %s4376_s2 }
0x1754   :  { %v4149_v0 = vpop.eup %4148 }
0x1755   :  { %v4151_v55 = vpop.eup %4150  ;;  %v1549_v61 = vsub.f32 %v4963_v25, %v4149_v0 }
0x1756   :  { %v1610_v41 = vsub.f32 %v4959_v6, %v4151_v55 }
0x1757   :  { %1553 = vrot.lane.b32.xlu0 %v1549_v61, %s4376_s2 }
0x1758   :  { %v4153_v62 = vpop.eup %4152  ;;  %1615 = vrot.lane.b32.xlu1 %v1610_v41, %s4376_s2 }
0x1759   :  { %v1550_v51 = vsub.f32 %v4965_v59, %v4153_v62 }
0x175c   :  { %1555 = vrot.lane.b32.xlu1 %v1550_v51, %s4376_s2 }
0x17c5   :  { %v1614_v11 = vpop.permute.xlu0 %1613 }
0x17c6   :  { %v1619_v33 = vmul.f32 %v4139_v15, %v1614_v11 }
0x17c8   :  { %1623 = vrot.lane.b32.xlu0 %v1619_v33, %s4377_s14 }
0x17c9   :  { %v1554_v3 = vpop.permute.xlu0 %1553 }
0x17ca   :  { %v1559_v2 = vmul.f32 %v4141_v39, %v1554_v3  ;;  %v1616_v19 = vpop.permute.xlu1 %1615 }
0x17cb   :  { %v1620_v37 = vmul.f32 %v4143_v35, %v1616_v19 }
0x17cc   :  { %1563 = vrot.lane.b32.xlu0 %v1559_v2, %s4377_s14 }
0x17cd   :  { %1625 = vrot.lane.b32.xlu1 %v1620_v37, %s4377_s14 }
0x17ce   :  { %v1556_v61 = vpop.permute.xlu1 %1555 }
0x17cf   :  { %v1560_v6 = vmul.f32 %v4145_v54, %v1556_v61 }
0x17d1   :  { %1565 = vrot.lane.b32.xlu1 %v1560_v6, %s4377_s14 }
0x183a   :  { %v1624_v41 = vpop.permute.xlu0 %1623 }
0x183b   :  { %v5008_v59 = vadd.f32 %v4147_v45, %v1624_v41 }
0x183e   :  { %v1564_v15 = vpop.permute.xlu0 %1563 }
0x183f   :  { %v1626_v1 = vpop.permute.xlu1 %1625  ;;  %v5014_v35 = vadd.f32 %v4149_v0, %v1564_v15 }
0x1840   :  { %v5010_v51 = vadd.f32 %v4151_v55, %v1626_v1 }
0x1841   :  { %5746 = vst [vmem:[#allocation19_spill] sm:$0xff] %v5014_v35 }
0x1842   :  { %5745 = vst [vmem:[#allocation18_spill] sm:$0xff] %v5010_v51  ;;  %v3940_v39 = vpack.i.bf16 %v5010_v51, %v5008_v59 }
0x1843   :  { %v1566_v11 = vpop.permute.xlu1 %1565 }
0x1844   :  { %v5016_v33 = vadd.f32 %v4153_v62, %v1566_v11  ;;  %3941 = vrot.lane.b32.xlu0 %v3940_v39, %s4378_s15 }
0x1846   :  { %5747 = vst [vmem:[#allocation20_spill] sm:$0xff] %v5016_v33  ;;  %v1639_v6 = vpack.c.bf16 %v5016_v33, %v5014_v35 }
0x1848   :  { %1643 = vrot.lane.b32.xlu1 %v1639_v6, %s4375_s0 }
0x18b6   :  { %v3942_v54 = vpop.permute.xlu0 %3941 }
0x18b7   :  { %v3944_v45 = vunpack.i.h.bf16 %v3942_v54  ;;  %v3943_v1 = vunpack.i.l.bf16 %v3942_v54 }
0x18b9   :  { %v1640_v55 = vpack.c.bf16 %v3944_v45, %v3943_v1 }
0x18ba   :  { %v1644_v3 = vpop.permute.xlu1 %1643 }
0x18bb   :  { %1645 = vrot.lane.b32.xlu0 %v1640_v55, %s4375_s0  ;;  %3850 = vmatprep.mubr.msk.bf16.mxu1 %vm306_vm2, %v1644_v3 }
0x192d   :  { %v1646_v0 = vpop.permute.xlu0 %1645 }
0x192e   :  { %3851 = vmatmul.mubr.msk.bf16.vlgmr.msra.gmra.mxu1 %vm306_vm2, %v1646_v0 }
0x192f   :  { %3861 = vmatpush3.bf16.msra.mxu1 %v4870_v31 }
0x1930   :  { %3872 = vmatprep.subr.bf16.mxu1 %v4870_v31 }
0x19ee   :  { %v3852_v62 = vpop.f32.mrf.mxu1 }
0x19ef   :  { %v1776_v2 = vadd.f32 %v3852_v62, %v4542_v53  ;;  %v1762_v11 = vadd.f32 %v3852_v62, %v4621_v34 }
0x19f0   :  { %v1687_v19 = vpop.f32.mrf.mxu1 }
0x19f1   :  { %1780 = vrot.lane.b32.xlu1 %v1776_v2, %s4375_s0  ;;  %v1716_v61 = vadd.f32 %v1687_v19, %v4552_v57  ;;  %v1702_v6 = vadd.f32 %v1687_v19, %v4606_v24  ;;  %v3657_v54 = vmul.f32 -1.442695, %v1762_v11 }
0x19f2   :  { %v3853_v37 = vpop.f32.mrf.mxu1 }
0x19f3   :  { %v1777_v41 = vadd.f32 %v3853_v37, %v4542_v53  ;;  %v1763_v45 = vadd.f32 %v3853_v37, %v4627_v38  ;;  %v3655_v1 = vmul.f32 -1.442695, %v1702_v6  ;;  %4154 = vpow2.f32 %v3657_v54 }
0x19f4   :  { %v1690_v15 = vpop.f32.mrf.mxu1 }
0x19f5   :  { %1720 = vrot.lane.b32.xlu1 %v1716_v61, %s4375_s0  ;;  %1782 = vrot.lane.b32.xlu0 %v1777_v41, %s4375_s0  ;;  %v1717_v39 = vadd.f32 %v1690_v15, %v4552_v57  ;;  %v3658_v55 = vmul.f32 -1.442695, %v1763_v45  ;;  %v1703_v3 = vadd.f32 %v1690_v15, %v4612_v28  ;;  %4156 = vpow2.f32 %v3655_v1 }
0x19f7   :  { %4158 = vpow2.f32 %v3658_v55  ;;  %v3656_v0 = vmul.f32 -1.442695, %v1703_v3 }
0x19f9   :  { %1722 = vrot.lane.b32.xlu0 %v1717_v39, %s4375_s0  ;;  %4160 = vpow2.f32 %v3656_v0 }
0x1a00   :  { %v4155_v2 = vpop.eup %4154 }
0x1a01   :  { %v1770_v41 = vadd.f32 1.0, %v4155_v2 }
0x1a02   :  { %v4157_v61 = vpop.eup %4156 }
0x1a03   :  { %v1710_v25 = vadd.f32 1.0, %v4157_v61  ;;  %4162 = vrcp.f32 %v1770_v41 }
0x1a04   :  { %v4159_v39 = vpop.eup %4158 }
0x1a05   :  { %v1771_v62 = vadd.f32 1.0, %v4159_v39  ;;  %4164 = vrcp.f32 %v1710_v25 }
0x1a06   :  { %v4161_v19 = vpop.eup %4160 }
0x1a07   :  { %4166 = vrcp.f32 %v1771_v62  ;;  %v1711_v37 = vadd.f32 1.0, %v4161_v19 }
0x1a09   :  { %4168 = vrcp.f32 %v1711_v37 }
0x1a10   :  { %v4163_v11 = vpop.eup %4162 }
0x1a12   :  { %v4165_v15 = vpop.eup %4164 }
0x1a14   :  { %v4167_v45 = vpop.eup %4166 }
0x1a16   :  { %v4169_v2 = vpop.eup %4168 }
0x1a63   :  { %v1781_v6 = vpop.permute.xlu1 %1780 }
0x1a64   :  { %v1786_v54 = vmul.f32 %v4163_v11, %v1781_v6 }
0x1a66   :  { %1790 = vrot.lane.b32.xlu1 %v1786_v54, %s4374_s1 }
0x1a67   :  { %v1721_v1 = vpop.permute.xlu1 %1720  ;;  %v1783_v55 = vpop.permute.xlu0 %1782 }
0x1a68   :  { %v1726_v3 = vmul.f32 %v4165_v15, %v1721_v1  ;;  %v1787_v0 = vmul.f32 %v4167_v45, %v1783_v55 }
0x1a6a   :  { %1730 = vrot.lane.b32.xlu1 %v1726_v3, %s4374_s1  ;;  %1792 = vrot.lane.b32.xlu0 %v1787_v0, %s4374_s1 }
0x1a6b   :  { %v1723_v25 = vpop.permute.xlu0 %1722 }
0x1a6c   :  { %v1727_v61 = vmul.f32 %v4169_v2, %v1723_v25 }
0x1a6e   :  { %1732 = vrot.lane.b32.xlu0 %v1727_v61, %s4374_s1 }
0x1ad8   :  { %v1791_v41 = vpop.permute.xlu1 %1790 }
0x1ad9   :  { %v1796_v39 = vadd.f32 %v1791_v41, %v4621_v34 }
0x1adb   :  { %4170 = vtanh.f32 %v1796_v39 }
0x1adc   :  { %v1731_v62 = vpop.permute.xlu1 %1730  ;;  %v1793_v19 = vpop.permute.xlu0 %1792 }
0x1add   :  { %v1736_v37 = vadd.f32 %v1731_v62, %v4606_v24  ;;  %v1797_v6 = vadd.f32 %v1793_v19, %v4627_v38 }
0x1adf   :  { %4172 = vtanh.f32 %v1736_v37 }
0x1ae0   :  { %4174 = vtanh.f32 %v1797_v6  ;;  %v1733_v54 = vpop.permute.xlu0 %1732 }
0x1ae1   :  { %v1737_v1 = vadd.f32 %v1733_v54, %v4612_v28 }
0x1ae3   :  { %4176 = vtanh.f32 %v1737_v1 }
0x1ae8   :  { %v4171_v55 = vpop.eup %4170 }
0x1ae9   :  { %v1800_v3 = vsub.f32 %v5008_v59, %v4171_v55 }
0x1aeb   :  { %1804 = vrot.lane.b32.xlu1 %v1800_v3, %s4376_s2 }
0x1aec   :  { %v4173_v0 = vpop.eup %4172 }
0x1aed   :  { %v4175_v25 = vpop.eup %4174  ;;  %v1740_v61 = vsub.f32 %v5014_v35, %v4173_v0 }
0x1aee   :  { %v1801_v41 = vsub.f32 %v5010_v51, %v4175_v25 }
0x1aef   :  { %1744 = vrot.lane.b32.xlu1 %v1740_v61, %s4376_s2 }
0x1af0   :  { %v4177_v39 = vpop.eup %4176  ;;  %1806 = vrot.lane.b32.xlu0 %v1801_v41, %s4376_s2 }
0x1af1   :  { %v1741_v62 = vsub.f32 %v5016_v33, %v4177_v39 }
0x1af4   :  { %1746 = vrot.lane.b32.xlu0 %v1741_v62, %s4376_s2 }
0x1b5d   :  { %v1805_v19 = vpop.permute.xlu1 %1804 }
0x1b5e   :  { %v1810_v37 = vmul.f32 %v4163_v11, %v1805_v19 }
0x1b60   :  { %1814 = vrot.lane.b32.xlu1 %v1810_v37, %s4377_s14 }
0x1b61   :  { %v1745_v6 = vpop.permute.xlu1 %1744 }
0x1b62   :  { %v1750_v54 = vmul.f32 %v4165_v15, %v1745_v6  ;;  %v1807_v1 = vpop.permute.xlu0 %1806 }
0x1b63   :  { %v1811_v3 = vmul.f32 %v4167_v45, %v1807_v1 }
0x1b64   :  { %1754 = vrot.lane.b32.xlu1 %v1750_v54, %s4377_s14 }
0x1b65   :  { %1816 = vrot.lane.b32.xlu0 %v1811_v3, %s4377_s14 }
0x1b66   :  { %v1747_v61 = vpop.permute.xlu0 %1746 }
0x1b67   :  { %v1751_v35 = vmul.f32 %v4169_v2, %v1747_v61 }
0x1b69   :  { %1756 = vrot.lane.b32.xlu0 %v1751_v35, %s4377_s14 }
0x1bd2   :  { %v1815_v41 = vpop.permute.xlu1 %1814 }
0x1bd3   :  { %v5059_v51 = vadd.f32 %v4171_v55, %v1815_v41 }
0x1bd6   :  { %v1755_v11 = vpop.permute.xlu1 %1754 }
0x1bd7   :  { %v1817_v33 = vpop.permute.xlu0 %1816  ;;  %v5065_v45 = vadd.f32 %v4173_v0, %v1755_v11 }
0x1bd8   :  { %v5061_v62 = vadd.f32 %v4175_v25, %v1817_v33 }
0x1bda   :  { %v3945_v15 = vpack.i.bf16 %v5061_v62, %v5059_v51 }
0x1bdb   :  { %v1757_v19 = vpop.permute.xlu0 %1756 }
0x1bdc   :  { %v5067_v37 = vadd.f32 %v4177_v39, %v1757_v19  ;;  %3946 = vrot.lane.b32.xlu1 %v3945_v15, %s4378_s15 }
0x1bde   :  { %5748 = vst [vmem:[#allocation21_spill] sm:$0xff] %v5067_v37  ;;  %v1830_v35 = vpack.c.bf16 %v5067_v37, %v5065_v45 }
0x1be0   :  { %1834 = vrot.lane.b32.xlu0 %v1830_v35, %s4375_s0 }
0x1c4e   :  { %v3947_v2 = vpop.permute.xlu1 %3946 }
0x1c4f   :  { %v3949_v55 = vunpack.i.h.bf16 %v3947_v2  ;;  %v3948_v33 = vunpack.i.l.bf16 %v3947_v2 }
0x1c51   :  { %v1831_v25 = vpack.c.bf16 %v3949_v55, %v3948_v33 }
0x1c52   :  { %v1835_v6 = vpop.permute.xlu0 %1834 }
0x1c53   :  { %1836 = vrot.lane.b32.xlu1 %v1831_v25, %s4375_s0  ;;  %3856 = vmatprep.mubr.msk.bf16.mxu0 %vm306_vm2, %v1835_v6 }
0x1cc5   :  { %v1837_v0 = vpop.permute.xlu1 %1836 }
0x1cc6   :  { %3857 = vmatmul.mubr.msk.bf16.vlgmr.msra.gmra.mxu0 %vm306_vm2, %v1837_v0 }
0x1cc7   :  { %3867 = vmatpush3.bf16.msra.mxu0 %v4870_v31 }
0x1cc8   :  { %3878 = vmatprep.subr.bf16.mxu0 %v4870_v31 }
0x1d86   :  { %v3858_v39 = vpop.f32.mrf.mxu0 }
0x1d87   :  { %v1967_v54 = vadd.f32 %v3858_v39, %v4542_v53  ;;  %v1953_v31 = vadd.f32 %v3858_v39, %v4606_v24 }
0x1d88   :  { %v1878_v1 = vpop.f32.mrf.mxu0 }
0x1d89   :  { %1971 = vrot.lane.b32.xlu0 %v1967_v54, %s4375_s0  ;;  %v1907_v61 = vadd.f32 %v1878_v1, %v4552_v57  ;;  %v1893_v19 = vadd.f32 %v1878_v1, %v4621_v34  ;;  %v3663_v35 = vmul.f32 -1.442695, %v1953_v31 }
0x1d8a   :  { %v3859_v3 = vpop.f32.mrf.mxu0 }
0x1d8b   :  { %v1968_v41 = vadd.f32 %v3859_v3, %v4542_v53  ;;  %v1954_v2 = vadd.f32 %v3859_v3, %v4612_v28  ;;  %v3661_v55 = vmul.f32 -1.442695, %v1893_v19  ;;  %4178 = vpow2.f32 %v3663_v35 }
0x1d8c   :  { %v1881_v11 = vpop.f32.mrf.mxu0 }
0x1d8d   :  { %1911 = vrot.lane.b32.xlu0 %v1907_v61, %s4375_s0  ;;  %1973 = vrot.lane.b32.xlu1 %v1968_v41, %s4375_s0  ;;  %v1908_v15 = vadd.f32 %v1881_v11, %v4552_v57  ;;  %v3664_v33 = vmul.f32 -1.442695, %v1954_v2  ;;  %v1894_v25 = vadd.f32 %v1881_v11, %v4627_v38  ;;  %4180 = vpow2.f32 %v3661_v55 }
0x1d8f   :  { %4182 = vpow2.f32 %v3664_v33  ;;  %v3662_v6 = vmul.f32 -1.442695, %v1894_v25 }
0x1d91   :  { %1913 = vrot.lane.b32.xlu1 %v1908_v15, %s4375_s0  ;;  %4184 = vpow2.f32 %v3662_v6 }
0x1d98   :  { %v4179_v0 = vpop.eup %4178 }
0x1d99   :  { %v1961_v61 = vadd.f32 1.0, %v4179_v0 }
0x1d9a   :  { %v4181_v54 = vpop.eup %4180 }
0x1d9b   :  { %v1901_v15 = vadd.f32 1.0, %v4181_v54  ;;  %4186 = vrcp.f32 %v1961_v61 }
0x1d9c   :  { %v4183_v41 = vpop.eup %4182 }
0x1d9d   :  { %v1962_v39 = vadd.f32 1.0, %v4183_v41  ;;  %4188 = vrcp.f32 %v1901_v15 }
0x1d9e   :  { %v4185_v1 = vpop.eup %4184 }
0x1d9f   :  { %4190 = vrcp.f32 %v1962_v39  ;;  %v1902_v3 = vadd.f32 1.0, %v4185_v1 }
0x1da1   :  { %4192 = vrcp.f32 %v1902_v3 }
0x1da8   :  { %v4187_v31 = vpop.eup %4186 }
0x1daa   :  { %v4189_v11 = vpop.eup %4188 }
0x1dac   :  { %v4191_v2 = vpop.eup %4190 }
0x1dae   :  { %v4193_v0 = vpop.eup %4192 }
0x1dfb   :  { %v1972_v19 = vpop.permute.xlu0 %1971 }
0x1dfc   :  { %v1977_v35 = vmul.f32 %v4187_v31, %v1972_v19 }
0x1dfe   :  { %1981 = vrot.lane.b32.xlu0 %v1977_v35, %s4374_s1 }
0x1dff   :  { %v1912_v55 = vpop.permute.xlu0 %1911  ;;  %v1974_v33 = vpop.permute.xlu1 %1973 }
0x1e00   :  { %v1917_v25 = vmul.f32 %v4189_v11, %v1912_v55  ;;  %v1978_v6 = vmul.f32 %v4191_v2, %v1974_v33 }
0x1e02   :  { %1921 = vrot.lane.b32.xlu0 %v1917_v25, %s4374_s1  ;;  %1983 = vrot.lane.b32.xlu1 %v1978_v6, %s4374_s1 }
0x1e03   :  { %v1914_v54 = vpop.permute.xlu1 %1913 }
0x1e04   :  { %v1918_v61 = vmul.f32 %v4193_v0, %v1914_v54 }
0x1e06   :  { %1923 = vrot.lane.b32.xlu1 %v1918_v61, %s4374_s1 }
0x1e70   :  { %v1982_v41 = vpop.permute.xlu0 %1981 }
0x1e71   :  { %v1987_v15 = vadd.f32 %v1982_v41, %v4606_v24 }
0x1e73   :  { %4194 = vtanh.f32 %v1987_v15 }
0x1e74   :  { %v1922_v39 = vpop.permute.xlu0 %1921  ;;  %v1984_v1 = vpop.permute.xlu1 %1983 }
0x1e75   :  { %v1927_v3 = vadd.f32 %v1922_v39, %v4621_v34  ;;  %v1988_v19 = vadd.f32 %v1984_v1, %v4612_v28 }
0x1e77   :  { %4196 = vtanh.f32 %v1927_v3 }
0x1e78   :  { %4198 = vtanh.f32 %v1988_v19  ;;  %v1924_v35 = vpop.permute.xlu1 %1923 }
0x1e79   :  { %v1928_v55 = vadd.f32 %v1924_v35, %v4627_v38 }
0x1e7b   :  { %4200 = vtanh.f32 %v1928_v55 }
0x1e80   :  { %v4195_v33 = vpop.eup %4194 }
0x1e81   :  { %v1991_v25 = vsub.f32 %v5059_v51, %v4195_v33 }
0x1e83   :  { %1995 = vrot.lane.b32.xlu0 %v1991_v25, %s4376_s2 }
0x1e84   :  { %v4197_v6 = vpop.eup %4196 }
0x1e85   :  { %v4199_v24 = vpop.eup %4198  ;;  %v1931_v54 = vsub.f32 %v5065_v45, %v4197_v6 }
0x1e86   :  { %v1992_v61 = vsub.f32 %v5061_v62, %v4199_v24 }
0x1e87   :  { %1935 = vrot.lane.b32.xlu0 %v1931_v54, %s4376_s2 }
0x1e88   :  { %v4201_v28 = vpop.eup %4200  ;;  %1997 = vrot.lane.b32.xlu1 %v1992_v61, %s4376_s2 }
0x1e89   :  { %v1932_v34 = vsub.f32 %v5067_v37, %v4201_v28 }
0x1e8c   :  { %1937 = vrot.lane.b32.xlu1 %v1932_v34, %s4376_s2 }
0x1ef5   :  { %v1996_v38 = vpop.permute.xlu0 %1995 }
0x1ef6   :  { %v2001_v41 = vmul.f32 %v4187_v31, %v1996_v38 }
0x1ef8   :  { %2005 = vrot.lane.b32.xlu0 %v2001_v41, %s4377_s14 }
0x1ef9   :  { %v1936_v15 = vpop.permute.xlu0 %1935 }
0x1efa   :  { %v1941_v39 = vmul.f32 %v4189_v11, %v1936_v15  ;;  %v1998_v1 = vpop.permute.xlu1 %1997 }
0x1efb   :  { %v2002_v3 = vmul.f32 %v4191_v2, %v1998_v1 }
0x1efc   :  { %1945 = vrot.lane.b32.xlu0 %v1941_v39, %s4377_s14 }
0x1efd   :  { %2007 = vrot.lane.b32.xlu1 %v2002_v3, %s4377_s14 }
0x1efe   :  { %v1938_v19 = vpop.permute.xlu1 %1937 }
0x1eff   :  { %v1942_v35 = vmul.f32 %v4193_v0, %v1938_v19 }
0x1f01   :  { %1947 = vrot.lane.b32.xlu1 %v1942_v35, %s4377_s14 }
0x1f6a   :  { %v2006_v55 = vpop.permute.xlu0 %2005 }
0x1f6b   :  { %v5110_v54 = vadd.f32 %v4195_v33, %v2006_v55 }
0x1f6e   :  { %v1946_v31 = vpop.permute.xlu0 %1945 }
0x1f6f   :  { %v2008_v25 = vpop.permute.xlu1 %2007  ;;  %v5116_v2 = vadd.f32 %v4197_v6, %v1946_v31 }
0x1f70   :  { %v5112_v61 = vadd.f32 %v4199_v24, %v2008_v25 }
0x1f72   :  { %v3950_v11 = vpack.i.bf16 %v5112_v61, %v5110_v54 }
0x1f73   :  { %v1948_v34 = vpop.permute.xlu1 %1947 }
0x1f74   :  { %v5118_v38 = vadd.f32 %v4201_v28, %v1948_v34  ;;  %3951 = vrot.lane.b32.xlu0 %v3950_v11, %s4378_s15  ;;  %v5130_v28 = vld [vmem:[%s5704_s3] sm:$0xff]  }
0x1f76   :  { %v2021_v0 = vpack.c.bf16 %v5118_v38, %v5116_v2 }
0x1f78   :  { %2025 = vrot.lane.b32.xlu1 %v2021_v0, %s4375_s0 }
0x1fe6   :  { %v3952_v33 = vpop.permute.xlu0 %3951 }
0x1fe7   :  { %v3954_v41 = vunpack.i.h.bf16 %v3952_v33  ;;  %v3953_v24 = vunpack.i.l.bf16 %v3952_v33 }
0x1fe9   :  { %v2022_v15 = vpack.c.bf16 %v3954_v41, %v3953_v24 }
0x1fea   :  { %v2026_v39 = vpop.permute.xlu1 %2025 }
0x1feb   :  { %2027 = vrot.lane.b32.xlu0 %v2022_v15, %s4375_s0  ;;  %3862 = vmatprep.mubr.msk.bf16.mxu1 %vm306_vm2, %v2026_v39 }
0x205d   :  { %v2028_v6 = vpop.permute.xlu0 %2027 }
0x205e   :  { %3863 = vmatmul.mubr.msk.bf16.vlgmr.msra.gmra.mxu1 %vm306_vm2, %v2028_v6 }
0x205f   :  { %3873 = vmatpush3.bf16.msra.mxu1 %v5130_v28 }
0x2060   :  { %3884 = vmatprep.subr.bf16.mxu1 %v5130_v28 }
0x211e   :  { %v3864_v1 = vpop.f32.mrf.mxu1 }
0x211f   :  { %v2158_v3 = vadd.f32 %v3864_v1, %v4542_v53  ;;  %v2144_v34 = vadd.f32 %v3864_v1, %v4609_v26 }
0x2120   :  { %v2069_v19 = vpop.f32.mrf.mxu1 }
0x2121   :  { %2162 = vrot.lane.b32.xlu1 %v2158_v3, %s4375_s0  ;;  %v2098_v55 = vadd.f32 %v2069_v19, %v4552_v57  ;;  %v2084_v0 = vadd.f32 %v2069_v19, %v4618_v32  ;;  %v3669_v33 = vmul.f32 -1.442695, %v2144_v34 }
0x2122   :  { %v3865_v35 = vpop.f32.mrf.mxu1 }
0x2123   :  { %v2159_v25 = vadd.f32 %v3865_v35, %v4542_v53  ;;  %v2145_v41 = vadd.f32 %v3865_v35, %v4615_v30  ;;  %v3667_v24 = vmul.f32 -1.442695, %v2084_v0  ;;  %4202 = vpow2.f32 %v3669_v33 }
0x2124   :  { %v2072_v31 = vpop.f32.mrf.mxu1 }
0x2125   :  { %2102 = vrot.lane.b32.xlu1 %v2098_v55, %s4375_s0  ;;  %2164 = vrot.lane.b32.xlu0 %v2159_v25, %s4375_s0  ;;  %v2099_v11 = vadd.f32 %v2072_v31, %v4552_v57  ;;  %v3670_v15 = vmul.f32 -1.442695, %v2145_v41  ;;  %v2085_v39 = vadd.f32 %v2072_v31, %v4624_v36  ;;  %4204 = vpow2.f32 %v3667_v24 }
0x2127   :  { %4206 = vpow2.f32 %v3670_v15  ;;  %v3668_v6 = vmul.f32 -1.442695, %v2085_v39 }
0x2129   :  { %2104 = vrot.lane.b32.xlu0 %v2099_v11, %s4375_s0  ;;  %4208 = vpow2.f32 %v3668_v6 }
0x2130   :  { %v4203_v3 = vpop.eup %4202 }
0x2131   :  { %v2152_v25 = vadd.f32 1.0, %v4203_v3 }
0x2132   :  { %v4205_v55 = vpop.eup %4204 }
0x2133   :  { %v2092_v37 = vadd.f32 1.0, %v4205_v55  ;;  %4210 = vrcp.f32 %v2152_v25 }
0x2134   :  { %v4207_v11 = vpop.eup %4206 }
0x2135   :  { %v2153_v1 = vadd.f32 1.0, %v4207_v11  ;;  %4212 = vrcp.f32 %v2092_v37 }
0x2136   :  { %v4209_v19 = vpop.eup %4208 }
0x2137   :  { %4214 = vrcp.f32 %v2153_v1  ;;  %v2093_v35 = vadd.f32 1.0, %v4209_v19 }
0x2139   :  { %4216 = vrcp.f32 %v2093_v35 }
0x2140   :  { %v4211_v34 = vpop.eup %4210 }
0x2142   :  { %v4213_v31 = vpop.eup %4212 }
0x2144   :  { %v4215_v41 = vpop.eup %4214 }
0x2146   :  { %v4217_v3 = vpop.eup %4216 }
0x2193   :  { %v2163_v0 = vpop.permute.xlu1 %2162 }
0x2194   :  { %v2168_v33 = vmul.f32 %v4211_v34, %v2163_v0 }
0x2196   :  { %2172 = vrot.lane.b32.xlu1 %v2168_v33, %s4374_s1 }
0x2197   :  { %v2103_v24 = vpop.permute.xlu1 %2102  ;;  %v2165_v15 = vpop.permute.xlu0 %2164 }
0x2198   :  { %v2108_v39 = vmul.f32 %v4213_v31, %v2103_v24  ;;  %v2169_v6 = vmul.f32 %v4215_v41, %v2165_v15 }
0x219a   :  { %2112 = vrot.lane.b32.xlu1 %v2108_v39, %s4374_s1  ;;  %2174 = vrot.lane.b32.xlu0 %v2169_v6, %s4374_s1 }
0x219b   :  { %v2105_v37 = vpop.permute.xlu0 %2104 }
0x219c   :  { %v2109_v55 = vmul.f32 %v4217_v3, %v2105_v37 }
0x219e   :  { %2114 = vrot.lane.b32.xlu0 %v2109_v55, %s4374_s1 }
0x2208   :  { %v2173_v25 = vpop.permute.xlu1 %2172 }
0x2209   :  { %v2178_v11 = vadd.f32 %v2173_v25, %v4609_v26 }
0x220b   :  { %4218 = vtanh.f32 %v2178_v11 }
0x220c   :  { %v2113_v1 = vpop.permute.xlu1 %2112  ;;  %v2175_v19 = vpop.permute.xlu0 %2174 }
0x220d   :  { %v2118_v35 = vadd.f32 %v2113_v1, %v4618_v32  ;;  %v2179_v0 = vadd.f32 %v2175_v19, %v4615_v30 }
0x220f   :  { %4220 = vtanh.f32 %v2118_v35 }
0x2210   :  { %4222 = vtanh.f32 %v2179_v0  ;;  %v2115_v33 = vpop.permute.xlu0 %2114 }
0x2211   :  { %v2119_v24 = vadd.f32 %v2115_v33, %v4624_v36 }
0x2213   :  { %4224 = vtanh.f32 %v2119_v24 }
0x2218   :  { %v4219_v15 = vpop.eup %4218 }
0x2219   :  { %v2182_v39 = vsub.f32 %v5110_v54, %v4219_v15 }
0x221b   :  { %2186 = vrot.lane.b32.xlu1 %v2182_v39, %s4376_s2 }
0x221c   :  { %v4221_v6 = vpop.eup %4220 }
0x221d   :  { %v4223_v26 = vpop.eup %4222  ;;  %v2122_v37 = vsub.f32 %v5116_v2, %v4221_v6 }
0x221e   :  { %v2183_v55 = vsub.f32 %v5112_v61, %v4223_v26 }
0x221f   :  { %2126 = vrot.lane.b32.xlu1 %v2122_v37, %s4376_s2 }
0x2220   :  { %v4225_v30 = vpop.eup %4224  ;;  %2188 = vrot.lane.b32.xlu0 %v2183_v55, %s4376_s2 }
0x2221   :  { %v2123_v32 = vsub.f32 %v5118_v38, %v4225_v30 }
0x2224   :  { %2128 = vrot.lane.b32.xlu0 %v2123_v32, %s4376_s2 }
0x228d   :  { %v2187_v36 = vpop.permute.xlu1 %2186 }
0x228e   :  { %v2192_v25 = vmul.f32 %v4211_v34, %v2187_v36 }
0x2290   :  { %2196 = vrot.lane.b32.xlu1 %v2192_v25, %s4377_s14 }
0x2291   :  { %v2127_v11 = vpop.permute.xlu1 %2126 }
0x2292   :  { %v2132_v1 = vmul.f32 %v4213_v31, %v2127_v11  ;;  %v2189_v19 = vpop.permute.xlu0 %2188 }
0x2293   :  { %v2193_v35 = vmul.f32 %v4215_v41, %v2189_v19 }
0x2294   :  { %2136 = vrot.lane.b32.xlu1 %v2132_v1, %s4377_s14 }
0x2295   :  { %2198 = vrot.lane.b32.xlu0 %v2193_v35, %s4377_s14 }
0x2296   :  { %v2129_v0 = vpop.permute.xlu0 %2128 }
0x2297   :  { %v2133_v33 = vmul.f32 %v4217_v3, %v2129_v0 }
0x2299   :  { %2138 = vrot.lane.b32.xlu0 %v2133_v33, %s4377_s14 }
0x2302   :  { %v2197_v24 = vpop.permute.xlu1 %2196 }
0x2303   :  { %v5166_v37 = vadd.f32 %v4219_v15, %v2197_v24 }
0x2306   :  { %v2137_v34 = vpop.permute.xlu1 %2136 }
0x2307   :  { %v2199_v39 = vpop.permute.xlu0 %2198  ;;  %v5172_v41 = vadd.f32 %v4221_v6, %v2137_v34 }
0x2308   :  { %v5168_v55 = vadd.f32 %v4223_v26, %v2199_v39 }
0x230a   :  { %v3955_v31 = vpack.i.bf16 %v5168_v55, %v5166_v37 }
0x230b   :  { %v2139_v32 = vpop.permute.xlu0 %2138 }
0x230c   :  { %v5174_v36 = vadd.f32 %v4225_v30, %v2139_v32  ;;  %3956 = vrot.lane.b32.xlu1 %v3955_v31, %s4378_s15 }
0x230e   :  { %v2212_v3 = vpack.c.bf16 %v5174_v36, %v5172_v41 }
0x2310   :  { %2216 = vrot.lane.b32.xlu0 %v2212_v3, %s4375_s0 }
0x237e   :  { %v3957_v15 = vpop.permute.xlu1 %3956 }
0x237f   :  { %v3959_v25 = vunpack.i.h.bf16 %v3957_v15  ;;  %v3958_v26 = vunpack.i.l.bf16 %v3957_v15 }
0x2381   :  { %v2213_v11 = vpack.c.bf16 %v3959_v25, %v3958_v26 }
0x2382   :  { %v2217_v1 = vpop.permute.xlu0 %2216 }
0x2383   :  { %2218 = vrot.lane.b32.xlu1 %v2213_v11, %s4375_s0  ;;  %3868 = vmatprep.mubr.msk.bf16.mxu0 %vm306_vm2, %v2217_v1 }
0x23f5   :  { %v2219_v6 = vpop.permute.xlu1 %2218 }
0x23f6   :  { %3869 = vmatmul.mubr.msk.bf16.vlgmr.msra.gmra.mxu0 %vm306_vm2, %v2219_v6 }
0x23f7   :  { %3879 = vmatpush3.bf16.msra.mxu0 %v5130_v28 }
0x23f8   :  { %3890 = vmatprep.subr.bf16.mxu0 %v5130_v28 }
0x24b6   :  { %v3870_v30 = vpop.f32.mrf.mxu0 }
0x24b7   :  { %v2349_v19 = vadd.f32 %v3870_v30, %v4542_v53  ;;  %v2335_v31 = vadd.f32 %v3870_v30, %v4594_v16 }
0x24b8   :  { %v2260_v35 = vpop.f32.mrf.mxu0 }
0x24b9   :  { %2353 = vrot.lane.b32.xlu0 %v2349_v19, %s4375_s0  ;;  %v2289_v33 = vadd.f32 %v2260_v35, %v4552_v57  ;;  %v2275_v32 = vadd.f32 %v2260_v35, %v4633_v42  ;;  %v3675_v3 = vmul.f32 -1.442695, %v2335_v31 }
0x24ba   :  { %v3871_v0 = vpop.f32.mrf.mxu0 }
0x24bb   :  { %v2350_v24 = vadd.f32 %v3871_v0, %v4542_v53  ;;  %v2336_v15 = vadd.f32 %v3871_v0, %v4600_v20  ;;  %v3673_v25 = vmul.f32 -1.442695, %v2275_v32  ;;  %4226 = vpow2.f32 %v3675_v3 }
0x24bc   :  { %v2263_v39 = vpop.f32.mrf.mxu0 }
0x24bd   :  { %2293 = vrot.lane.b32.xlu0 %v2289_v33, %s4375_s0  ;;  %2355 = vrot.lane.b32.xlu1 %v2350_v24, %s4375_s0  ;;  %v2290_v34 = vadd.f32 %v2263_v39, %v4552_v57  ;;  %v3676_v26 = vmul.f32 -1.442695, %v2336_v15  ;;  %v2276_v11 = vadd.f32 %v2263_v39, %v4639_v46  ;;  %4228 = vpow2.f32 %v3673_v25 }
0x24bf   :  { %4230 = vpow2.f32 %v3676_v26  ;;  %v3674_v1 = vmul.f32 -1.442695, %v2276_v11 }
0x24c1   :  { %2295 = vrot.lane.b32.xlu1 %v2290_v34, %s4375_s0  ;;  %4232 = vpow2.f32 %v3674_v1 }
0x24c8   :  { %v4227_v6 = vpop.eup %4226 }
0x24c9   :  { %v2343_v33 = vadd.f32 1.0, %v4227_v6 }
0x24ca   :  { %v4229_v19 = vpop.eup %4228 }
0x24cb   :  { %v2283_v34 = vadd.f32 1.0, %v4229_v19  ;;  %4234 = vrcp.f32 %v2343_v33 }
0x24cc   :  { %v4231_v24 = vpop.eup %4230 }
0x24cd   :  { %v2344_v30 = vadd.f32 1.0, %v4231_v24  ;;  %4236 = vrcp.f32 %v2283_v34 }
0x24ce   :  { %v4233_v35 = vpop.eup %4232 }
0x24cf   :  { %4238 = vrcp.f32 %v2344_v30  ;;  %v2284_v0 = vadd.f32 1.0, %v4233_v35 }
0x24d1   :  { %4240 = vrcp.f32 %v2284_v0 }
0x24d8   :  { %v4235_v31 = vpop.eup %4234 }
0x24da   :  { %v4237_v39 = vpop.eup %4236 }
0x24dc   :  { %v4239_v15 = vpop.eup %4238 }
0x24de   :  { %v4241_v6 = vpop.eup %4240 }
0x252b   :  { %v2354_v32 = vpop.permute.xlu0 %2353 }
0x252c   :  { %v2359_v3 = vmul.f32 %v4235_v31, %v2354_v32 }
0x252e   :  { %2363 = vrot.lane.b32.xlu0 %v2359_v3, %s4374_s1 }
0x252f   :  { %v2294_v25 = vpop.permute.xlu0 %2293  ;;  %v2356_v26 = vpop.permute.xlu1 %2355 }
0x2530   :  { %v2299_v11 = vmul.f32 %v4237_v39, %v2294_v25  ;;  %v2360_v1 = vmul.f32 %v4239_v15, %v2356_v26 }
0x2532   :  { %2303 = vrot.lane.b32.xlu0 %v2299_v11, %s4374_s1  ;;  %2365 = vrot.lane.b32.xlu1 %v2360_v1, %s4374_s1 }
0x2533   :  { %v2296_v19 = vpop.permute.xlu1 %2295 }
0x2534   :  { %v2300_v33 = vmul.f32 %v4241_v6, %v2296_v19 }
0x2536   :  { %2305 = vrot.lane.b32.xlu1 %v2300_v33, %s4374_s1 }
0x25a0   :  { %v2364_v24 = vpop.permute.xlu0 %2363 }
0x25a1   :  { %v2369_v34 = vadd.f32 %v2364_v24, %v4594_v16 }
0x25a3   :  { %4242 = vtanh.f32 %v2369_v34 }
0x25a4   :  { %v2304_v30 = vpop.permute.xlu0 %2303  ;;  %v2366_v35 = vpop.permute.xlu1 %2365 }
0x25a5   :  { %v2309_v0 = vadd.f32 %v2304_v30, %v4633_v42  ;;  %v2370_v32 = vadd.f32 %v2366_v35, %v4600_v20 }
0x25a7   :  { %4244 = vtanh.f32 %v2309_v0 }
0x25a8   :  { %4246 = vtanh.f32 %v2370_v32  ;;  %v2306_v3 = vpop.permute.xlu1 %2305 }
0x25a9   :  { %v2310_v25 = vadd.f32 %v2306_v3, %v4639_v46 }
0x25ab   :  { %4248 = vtanh.f32 %v2310_v25 }
0x25b0   :  { %v4243_v26 = vpop.eup %4242 }
0x25b1   :  { %v2373_v11 = vsub.f32 %v5166_v37, %v4243_v26 }
0x25b3   :  { %2377 = vrot.lane.b32.xlu0 %v2373_v11, %s4376_s2 }
0x25b4   :  { %v4245_v1 = vpop.eup %4244 }
0x25b5   :  { %v4247_v16 = vpop.eup %4246  ;;  %v2313_v19 = vsub.f32 %v5172_v41, %v4245_v1 }
0x25b6   :  { %v2374_v33 = vsub.f32 %v5168_v55, %v4247_v16 }
0x25b7   :  { %2317 = vrot.lane.b32.xlu0 %v2313_v19, %s4376_s2 }
0x25b8   :  { %v4249_v20 = vpop.eup %4248  ;;  %2379 = vrot.lane.b32.xlu1 %v2374_v33, %s4376_s2 }
0x25b9   :  { %v2314_v42 = vsub.f32 %v5174_v36, %v4249_v20 }
0x25bc   :  { %2319 = vrot.lane.b32.xlu1 %v2314_v42, %s4376_s2 }
0x2625   :  { %v2378_v46 = vpop.permute.xlu0 %2377 }
0x2626   :  { %v2383_v24 = vmul.f32 %v4235_v31, %v2378_v46 }
0x2628   :  { %2387 = vrot.lane.b32.xlu0 %v2383_v24, %s4377_s14 }
0x2629   :  { %v2318_v34 = vpop.permute.xlu0 %2317 }
0x262a   :  { %v2323_v30 = vmul.f32 %v4237_v39, %v2318_v34  ;;  %v2380_v35 = vpop.permute.xlu1 %2379 }
0x262b   :  { %v2384_v0 = vmul.f32 %v4239_v15, %v2380_v35 }
0x262c   :  { %2327 = vrot.lane.b32.xlu0 %v2323_v30, %s4377_s14 }
0x262d   :  { %2389 = vrot.lane.b32.xlu1 %v2384_v0, %s4377_s14 }
0x262e   :  { %v2320_v32 = vpop.permute.xlu1 %2319 }
0x262f   :  { %v2324_v3 = vmul.f32 %v4241_v6, %v2320_v32 }
0x2631   :  { %2329 = vrot.lane.b32.xlu1 %v2324_v3, %s4377_s14 }
0x269a   :  { %v2388_v25 = vpop.permute.xlu0 %2387 }
0x269b   :  { %v5217_v19 = vadd.f32 %v4243_v26, %v2388_v25 }
0x269e   :  { %v2328_v31 = vpop.permute.xlu0 %2327 }
0x269f   :  { %v2390_v11 = vpop.permute.xlu1 %2389  ;;  %v5223_v15 = vadd.f32 %v4245_v1, %v2328_v31 }
0x26a0   :  { %v5219_v33 = vadd.f32 %v4247_v16, %v2390_v11 }
0x26a2   :  { %v3960_v39 = vpack.i.bf16 %v5219_v33, %v5217_v19 }
0x26a3   :  { %v2330_v42 = vpop.permute.xlu1 %2329 }
0x26a4   :  { %v5225_v46 = vadd.f32 %v4249_v20, %v2330_v42  ;;  %3961 = vrot.lane.b32.xlu0 %v3960_v39, %s4378_s15 }
0x26a6   :  { %v2403_v6 = vpack.c.bf16 %v5225_v46, %v5223_v15 }
0x26a8   :  { %2407 = vrot.lane.b32.xlu1 %v2403_v6, %s4375_s0 }
0x2716   :  { %v3962_v26 = vpop.permute.xlu0 %3961 }
0x2717   :  { %v3964_v24 = vunpack.i.h.bf16 %v3962_v26  ;;  %v3963_v16 = vunpack.i.l.bf16 %v3962_v26 }
0x2719   :  { %v2404_v34 = vpack.c.bf16 %v3964_v24, %v3963_v16 }
0x271a   :  { %v2408_v30 = vpop.permute.xlu1 %2407 }
0x271b   :  { %2409 = vrot.lane.b32.xlu0 %v2404_v34, %s4375_s0  ;;  %3874 = vmatprep.mubr.msk.bf16.mxu1 %vm306_vm2, %v2408_v30 }
0x278d   :  { %v2410_v1 = vpop.permute.xlu0 %2409 }
0x278e   :  { %3875 = vmatmul.mubr.msk.bf16.vlgmr.msra.gmra.mxu1 %vm306_vm2, %v2410_v1 }
0x278f   :  { %3885 = vmatpush3.bf16.msra.mxu1 %v5130_v28 }
0x2790   :  { %3896 = vmatprep.subr.bf16.mxu1 %v5130_v28 }
0x284e   :  { %v3876_v20 = vpop.f32.mrf.mxu1 }
0x284f   :  { %v2540_v35 = vadd.f32 %v3876_v20, %v4542_v53  ;;  %v2526_v39 = vadd.f32 %v3876_v20, %v4597_v18 }
0x2850   :  { %v2451_v0 = vpop.f32.mrf.mxu1 }
0x2851   :  { %2544 = vrot.lane.b32.xlu1 %v2540_v35, %s4375_s0  ;;  %v2480_v3 = vadd.f32 %v2451_v0, %v4552_v57  ;;  %v2466_v42 = vadd.f32 %v2451_v0, %v4630_v40  ;;  %v3681_v6 = vmul.f32 -1.442695, %v2526_v39 }
0x2852   :  { %v3877_v32 = vpop.f32.mrf.mxu1 }
0x2853   :  { %v2541_v25 = vadd.f32 %v3877_v32, %v4542_v53  ;;  %v2527_v26 = vadd.f32 %v3877_v32, %v4603_v22  ;;  %v3679_v24 = vmul.f32 -1.442695, %v2466_v42  ;;  %4250 = vpow2.f32 %v3681_v6 }
0x2854   :  { %v2454_v11 = vpop.f32.mrf.mxu1 }
0x2855   :  { %2484 = vrot.lane.b32.xlu1 %v2480_v3, %s4375_s0  ;;  %2546 = vrot.lane.b32.xlu0 %v2541_v25, %s4375_s0  ;;  %v2481_v31 = vadd.f32 %v2454_v11, %v4552_v57  ;;  %v3682_v16 = vmul.f32 -1.442695, %v2527_v26  ;;  %v2467_v34 = vadd.f32 %v2454_v11, %v4636_v44  ;;  %4252 = vpow2.f32 %v3679_v24 }
0x2857   :  { %4254 = vpow2.f32 %v3682_v16  ;;  %v3680_v30 = vmul.f32 -1.442695, %v2467_v34 }
0x2859   :  { %2486 = vrot.lane.b32.xlu0 %v2481_v31, %s4375_s0  ;;  %4256 = vpow2.f32 %v3680_v30 }
0x2860   :  { %v4251_v1 = vpop.eup %4250 }
0x2861   :  { %v2534_v3 = vadd.f32 1.0, %v4251_v1 }
0x2862   :  { %v4253_v35 = vpop.eup %4252 }
0x2863   :  { %v2474_v31 = vadd.f32 1.0, %v4253_v35  ;;  %4258 = vrcp.f32 %v2534_v3 }
0x2864   :  { %v4255_v25 = vpop.eup %4254 }
0x2865   :  { %v2535_v20 = vadd.f32 1.0, %v4255_v25  ;;  %4260 = vrcp.f32 %v2474_v31 }
0x2866   :  { %v4257_v0 = vpop.eup %4256 }
0x2867   :  { %4262 = vrcp.f32 %v2535_v20  ;;  %v2475_v32 = vadd.f32 1.0, %v4257_v0 }
0x2869   :  { %4264 = vrcp.f32 %v2475_v32 }
0x2870   :  { %v4259_v39 = vpop.eup %4258 }
0x2872   :  { %v4261_v11 = vpop.eup %4260 }
0x2874   :  { %v4263_v26 = vpop.eup %4262 }
0x2876   :  { %v4265_v1 = vpop.eup %4264 }
0x28c3   :  { %v2545_v42 = vpop.permute.xlu1 %2544 }
0x28c4   :  { %v2550_v6 = vmul.f32 %v4259_v39, %v2545_v42 }
0x28c6   :  { %2554 = vrot.lane.b32.xlu1 %v2550_v6, %s4374_s1 }
0x28c7   :  { %v2485_v24 = vpop.permute.xlu1 %2484  ;;  %v2547_v16 = vpop.permute.xlu0 %2546 }
0x28c8   :  { %v2490_v34 = vmul.f32 %v4261_v11, %v2485_v24  ;;  %v2551_v30 = vmul.f32 %v4263_v26, %v2547_v16 }
0x28ca   :  { %2494 = vrot.lane.b32.xlu1 %v2490_v34, %s4374_s1  ;;  %2556 = vrot.lane.b32.xlu0 %v2551_v30, %s4374_s1 }
0x28cb   :  { %v2487_v35 = vpop.permute.xlu0 %2486 }
0x28cc   :  { %v2491_v3 = vmul.f32 %v4265_v1, %v2487_v35 }
0x28ce   :  { %2496 = vrot.lane.b32.xlu0 %v2491_v3, %s4374_s1 }
0x2938   :  { %v2555_v25 = vpop.permute.xlu1 %2554 }
0x2939   :  { %v2560_v31 = vadd.f32 %v2555_v25, %v4597_v18 }
0x293b   :  { %4266 = vtanh.f32 %v2560_v31 }
0x293c   :  { %v2495_v20 = vpop.permute.xlu1 %2494  ;;  %v2557_v0 = vpop.permute.xlu0 %2556 }
0x293d   :  { %v2500_v32 = vadd.f32 %v2495_v20, %v4630_v40  ;;  %v2561_v42 = vadd.f32 %v2557_v0, %v4603_v22 }
0x293f   :  { %4268 = vtanh.f32 %v2500_v32 }
0x2940   :  { %4270 = vtanh.f32 %v2561_v42  ;;  %v2497_v6 = vpop.permute.xlu0 %2496 }
0x2941   :  { %v2501_v24 = vadd.f32 %v2497_v6, %v4636_v44 }
0x2943   :  { %4272 = vtanh.f32 %v2501_v24 }
0x2948   :  { %v4267_v16 = vpop.eup %4266 }
0x2949   :  { %v2564_v34 = vsub.f32 %v5217_v19, %v4267_v16 }
0x294b   :  { %2568 = vrot.lane.b32.xlu1 %v2564_v34, %s4376_s2 }
0x294c   :  { %v4269_v30 = vpop.eup %4268 }
0x294d   :  { %v4271_v18 = vpop.eup %4270  ;;  %v2504_v35 = vsub.f32 %v5223_v15, %v4269_v30 }
0x294e   :  { %v2565_v3 = vsub.f32 %v5219_v33, %v4271_v18 }
0x294f   :  { %2508 = vrot.lane.b32.xlu1 %v2504_v35, %s4376_s2 }
0x2950   :  { %v4273_v22 = vpop.eup %4272  ;;  %2570 = vrot.lane.b32.xlu0 %v2565_v3, %s4376_s2 }
0x2951   :  { %v2505_v40 = vsub.f32 %v5225_v46, %v4273_v22 }
0x2954   :  { %2510 = vrot.lane.b32.xlu0 %v2505_v40, %s4376_s2 }
0x29bd   :  { %v2569_v44 = vpop.permute.xlu1 %2568 }
0x29be   :  { %v2574_v25 = vmul.f32 %v4259_v39, %v2569_v44 }
0x29c0   :  { %2578 = vrot.lane.b32.xlu1 %v2574_v25, %s4377_s14 }
0x29c1   :  { %v2509_v31 = vpop.permute.xlu1 %2508 }
0x29c2   :  { %v2514_v20 = vmul.f32 %v4261_v11, %v2509_v31  ;;  %v2571_v0 = vpop.permute.xlu0 %2570 }
0x29c3   :  { %v2575_v32 = vmul.f32 %v4263_v26, %v2571_v0 }
0x29c4   :  { %2518 = vrot.lane.b32.xlu1 %v2514_v20, %s4377_s14 }
0x29c5   :  { %2580 = vrot.lane.b32.xlu0 %v2575_v32, %s4377_s14 }
0x29c6   :  { %v2511_v42 = vpop.permute.xlu0 %2510 }
0x29c7   :  { %v2515_v6 = vmul.f32 %v4265_v1, %v2511_v42 }
0x29c9   :  { %2520 = vrot.lane.b32.xlu0 %v2515_v6, %s4377_s14 }
0x2a32   :  { %v2579_v24 = vpop.permute.xlu1 %2578 }
0x2a33   :  { %v5268_v35 = vadd.f32 %v4267_v16, %v2579_v24 }
0x2a36   :  { %v2519_v39 = vpop.permute.xlu1 %2518 }
0x2a37   :  { %v2581_v34 = vpop.permute.xlu0 %2580  ;;  %v5274_v26 = vadd.f32 %v4269_v30, %v2519_v39 }
0x2a38   :  { %v5270_v3 = vadd.f32 %v4271_v18, %v2581_v34 }
0x2a3a   :  { %v3965_v11 = vpack.i.bf16 %v5270_v3, %v5268_v35 }
0x2a3b   :  { %v2521_v40 = vpop.permute.xlu0 %2520 }
0x2a3c   :  { %v5276_v44 = vadd.f32 %v4273_v22, %v2521_v40  ;;  %3966 = vrot.lane.b32.xlu1 %v3965_v11, %s4378_s15 }
0x2a3e   :  { %v2594_v1 = vpack.c.bf16 %v5276_v44, %v5274_v26 }
0x2a40   :  { %2598 = vrot.lane.b32.xlu0 %v2594_v1, %s4375_s0 }
0x2aae   :  { %v3967_v16 = vpop.permute.xlu1 %3966 }
0x2aaf   :  { %v3969_v25 = vunpack.i.h.bf16 %v3967_v16  ;;  %v3968_v18 = vunpack.i.l.bf16 %v3967_v16 }
0x2ab1   :  { %v2595_v31 = vpack.c.bf16 %v3969_v25, %v3968_v18 }
0x2ab2   :  { %v2599_v20 = vpop.permute.xlu0 %2598 }
0x2ab3   :  { %2600 = vrot.lane.b32.xlu1 %v2595_v31, %s4375_s0  ;;  %3880 = vmatprep.mubr.msk.bf16.mxu0 %vm306_vm2, %v2599_v20 }
0x2b25   :  { %v2601_v30 = vpop.permute.xlu1 %2600 }
0x2b26   :  { %3881 = vmatmul.mubr.msk.bf16.vlgmr.msra.gmra.mxu0 %vm306_vm2, %v2601_v30 }
0x2b27   :  { %3891 = vmatpush3.bf16.msra.mxu0 %v5130_v28 }
0x2be6   :  { %v3882_v22 = vpop.f32.mrf.mxu0 }
0x2be7   :  { %v2731_v0 = vadd.f32 %v3882_v22, %v4542_v53  ;;  %v2717_v11 = vadd.f32 %v3882_v22, %v4578_v7 }
0x2be8   :  { %v2642_v32 = vpop.f32.mrf.mxu0 }
0x2be9   :  { %2735 = vrot.lane.b32.xlu0 %v2731_v0, %s4375_s0  ;;  %v2671_v6 = vadd.f32 %v2642_v32, %v4552_v57  ;;  %v2657_v40 = vadd.f32 %v2642_v32, %v4645_v50  ;;  %v3687_v1 = vmul.f32 -1.442695, %v2717_v11 }
0x2bea   :  { %v3883_v42 = vpop.f32.mrf.mxu0 }
0x2beb   :  { %v2732_v24 = vadd.f32 %v3883_v42, %v4542_v53  ;;  %v2718_v16 = vadd.f32 %v3883_v42, %v4587_v12  ;;  %v3685_v25 = vmul.f32 -1.442695, %v2657_v40  ;;  %4274 = vpow2.f32 %v3687_v1 }
0x2bec   :  { %v2645_v34 = vpop.f32.mrf.mxu0 }
0x2bed   :  { %2675 = vrot.lane.b32.xlu0 %v2671_v6, %s4375_s0  ;;  %2737 = vrot.lane.b32.xlu1 %v2732_v24, %s4375_s0  ;;  %v2672_v39 = vadd.f32 %v2645_v34, %v4552_v57  ;;  %v3688_v18 = vmul.f32 -1.442695, %v2718_v16  ;;  %v2658_v31 = vadd.f32 %v2645_v34, %v4651_v60  ;;  %4276 = vpow2.f32 %v3685_v25 }
0x2bef   :  { %4278 = vpow2.f32 %v3688_v18  ;;  %v3686_v20 = vmul.f32 -1.442695, %v2658_v31 }
0x2bf1   :  { %2677 = vrot.lane.b32.xlu1 %v2672_v39, %s4375_s0  ;;  %4280 = vpow2.f32 %v3686_v20 }
0x2bf8   :  { %v4275_v30 = vpop.eup %4274 }
0x2bf9   :  { %v2725_v6 = vadd.f32 1.0, %v4275_v30 }
0x2bfa   :  { %v4277_v0 = vpop.eup %4276 }
0x2bfb   :  { %v2665_v39 = vadd.f32 1.0, %v4277_v0  ;;  %4282 = vrcp.f32 %v2725_v6 }
0x2bfc   :  { %v4279_v24 = vpop.eup %4278 }
0x2bfd   :  { %v2726_v22 = vadd.f32 1.0, %v4279_v24  ;;  %4284 = vrcp.f32 %v2665_v39 }
0x2bfe   :  { %v4281_v32 = vpop.eup %4280 }
0x2bff   :  { %4286 = vrcp.f32 %v2726_v22  ;;  %v2666_v42 = vadd.f32 1.0, %v4281_v32 }
0x2c01   :  { %4288 = vrcp.f32 %v2666_v42 }
0x2c08   :  { %v4283_v11 = vpop.eup %4282 }
0x2c0a   :  { %v4285_v34 = vpop.eup %4284 }
0x2c0c   :  { %v4287_v16 = vpop.eup %4286 }
0x2c0e   :  { %v4289_v30 = vpop.eup %4288 }
0x2c5b   :  { %v2736_v40 = vpop.permute.xlu0 %2735 }
0x2c5c   :  { %v2741_v1 = vmul.f32 %v4283_v11, %v2736_v40 }
0x2c5e   :  { %2745 = vrot.lane.b32.xlu0 %v2741_v1, %s4374_s1 }
0x2c5f   :  { %v2676_v25 = vpop.permute.xlu0 %2675  ;;  %v2738_v18 = vpop.permute.xlu1 %2737 }
0x2c60   :  { %v2681_v31 = vmul.f32 %v4285_v34, %v2676_v25  ;;  %v2742_v20 = vmul.f32 %v4287_v16, %v2738_v18 }
0x2c62   :  { %2685 = vrot.lane.b32.xlu0 %v2681_v31, %s4374_s1  ;;  %2747 = vrot.lane.b32.xlu1 %v2742_v20, %s4374_s1 }
0x2c63   :  { %v2678_v0 = vpop.permute.xlu1 %2677 }
0x2c64   :  { %v2682_v6 = vmul.f32 %v4289_v30, %v2678_v0 }
0x2c66   :  { %2687 = vrot.lane.b32.xlu1 %v2682_v6, %s4374_s1 }
0x2cd0   :  { %v2746_v24 = vpop.permute.xlu0 %2745 }
0x2cd1   :  { %v2751_v39 = vadd.f32 %v2746_v24, %v4578_v7 }
0x2cd3   :  { %4290 = vtanh.f32 %v2751_v39 }
0x2cd4   :  { %v2686_v22 = vpop.permute.xlu0 %2685  ;;  %v2748_v32 = vpop.permute.xlu1 %2747 }
0x2cd5   :  { %v2691_v42 = vadd.f32 %v2686_v22, %v4645_v50  ;;  %v2752_v40 = vadd.f32 %v2748_v32, %v4587_v12 }
0x2cd7   :  { %4292 = vtanh.f32 %v2691_v42 }
0x2cd8   :  { %4294 = vtanh.f32 %v2752_v40  ;;  %v2688_v1 = vpop.permute.xlu1 %2687 }
0x2cd9   :  { %v2692_v25 = vadd.f32 %v2688_v1, %v4651_v60 }
0x2cdb   :  { %4296 = vtanh.f32 %v2692_v25 }
0x2ce0   :  { %v4291_v18 = vpop.eup %4290 }
0x2ce1   :  { %v2755_v31 = vsub.f32 %v5268_v35, %v4291_v18 }
0x2ce3   :  { %2759 = vrot.lane.b32.xlu0 %v2755_v31, %s4376_s2 }
0x2ce4   :  { %v4293_v20 = vpop.eup %4292 }
0x2ce5   :  { %v4295_v7 = vpop.eup %4294  ;;  %v2695_v0 = vsub.f32 %v5274_v26, %v4293_v20 }
0x2ce6   :  { %v2756_v6 = vsub.f32 %v5270_v3, %v4295_v7 }
0x2ce7   :  { %2699 = vrot.lane.b32.xlu0 %v2695_v0, %s4376_s2 }
0x2ce8   :  { %v4297_v12 = vpop.eup %4296  ;;  %2761 = vrot.lane.b32.xlu1 %v2756_v6, %s4376_s2 }
0x2ce9   :  { %v2696_v50 = vsub.f32 %v5276_v44, %v4297_v12 }
0x2cec   :  { %2701 = vrot.lane.b32.xlu1 %v2696_v50, %s4376_s2 }
0x2d55   :  { %v2760_v60 = vpop.permute.xlu0 %2759 }
0x2d56   :  { %v2765_v24 = vmul.f32 %v4283_v11, %v2760_v60 }
0x2d58   :  { %2769 = vrot.lane.b32.xlu0 %v2765_v24, %s4377_s14 }
0x2d59   :  { %v2700_v39 = vpop.permute.xlu0 %2699 }
0x2d5a   :  { %v2705_v22 = vmul.f32 %v4285_v34, %v2700_v39  ;;  %v2762_v32 = vpop.permute.xlu1 %2761 }
0x2d5b   :  { %v2766_v42 = vmul.f32 %v4287_v16, %v2762_v32 }
0x2d5c   :  { %2709 = vrot.lane.b32.xlu0 %v2705_v22, %s4377_s14 }
0x2d5d   :  { %2771 = vrot.lane.b32.xlu1 %v2766_v42, %s4377_s14 }
0x2d5e   :  { %v2702_v40 = vpop.permute.xlu1 %2701 }
0x2d5f   :  { %v2706_v1 = vmul.f32 %v4289_v30, %v2702_v40 }
0x2d61   :  { %2711 = vrot.lane.b32.xlu1 %v2706_v1, %s4377_s14 }
0x2dca   :  { %v2770_v25 = vpop.permute.xlu0 %2769 }
0x2dcb   :  { %v5318_v0 = vadd.f32 %v4291_v18, %v2770_v25 }
0x2dce   :  { %v2710_v11 = vpop.permute.xlu0 %2709 }
0x2dcf   :  { %v2772_v31 = vpop.permute.xlu1 %2771  ;;  %v5324_v16 = vadd.f32 %v4293_v20, %v2710_v11 }
0x2dd0   :  { %v5320_v6 = vadd.f32 %v4295_v7, %v2772_v31 }
0x2dd2   :  { %v3970_v34 = vpack.i.bf16 %v5320_v6, %v5318_v0 }
0x2dd3   :  { %v2712_v50 = vpop.permute.xlu1 %2711 }
0x2dd4   :  { %v5326_v60 = vadd.f32 %v4297_v12, %v2712_v50  ;;  %3971 = vrot.lane.b32.xlu0 %v3970_v34, %s4378_s15 }
0x2dd6   :  { %v2785_v30 = vpack.c.bf16 %v5326_v60, %v5324_v16 }
0x2dd8   :  { %2789 = vrot.lane.b32.xlu1 %v2785_v30, %s4375_s0 }
0x2e46   :  { %v3972_v18 = vpop.permute.xlu0 %3971 }
0x2e47   :  { %v3974_v24 = vunpack.i.h.bf16 %v3972_v18  ;;  %v3973_v7 = vunpack.i.l.bf16 %v3972_v18 }
0x2e49   :  { %v2786_v39 = vpack.c.bf16 %v3974_v24, %v3973_v7 }
0x2e4a   :  { %v2790_v22 = vpop.permute.xlu1 %2789 }
0x2e4b   :  { %2791 = vrot.lane.b32.xlu0 %v2786_v39, %s4375_s0  ;;  %3886 = vmatprep.mubr.msk.bf16.mxu1 %vm306_vm2, %v2790_v22 }
0x2ebd   :  { %v2792_v20 = vpop.permute.xlu0 %2791 }
0x2ebe   :  { %3887 = vmatmul.mubr.msk.bf16.vlgmr.msra.gmra.mxu1 %vm306_vm2, %v2792_v20 }
0x2ebf   :  { %3897 = vmatpush3.bf16.msra.mxu1 %v5130_v28 }
0x2f7e   :  { %v3888_v12 = vpop.f32.mrf.mxu1 }
0x2f7f   :  { %v2922_v32 = vadd.f32 %v3888_v12, %v4542_v53  ;;  %v2908_v28 = vadd.f32 %v3888_v12, %v4584_v10 }
0x2f80   :  { %v2833_v42 = vpop.f32.mrf.mxu1 }
0x2f81   :  { %2926 = vrot.lane.b32.xlu1 %v2922_v32, %s4375_s0  ;;  %v2862_v1 = vadd.f32 %v2833_v42, %v4552_v57  ;;  %v2848_v34 = vadd.f32 %v2833_v42, %v4642_v48  ;;  %v3693_v50 = vmul.f32 -1.442695, %v2908_v28 }
0x2f82   :  { %v3889_v40 = vpop.f32.mrf.mxu1 }
0x2f83   :  { %v2923_v25 = vadd.f32 %v3889_v40, %v4542_v53  ;;  %v2909_v30 = vadd.f32 %v3889_v40, %v4591_v14  ;;  %v3691_v18 = vmul.f32 -1.442695, %v2848_v34  ;;  %4298 = vpow2.f32 %v3693_v50 }
0x2f84   :  { %v2836_v31 = vpop.f32.mrf.mxu1 }
0x2f85   :  { %2866 = vrot.lane.b32.xlu1 %v2862_v1, %s4375_s0  ;;  %2928 = vrot.lane.b32.xlu0 %v2923_v25, %s4375_s0  ;;  %v2863_v11 = vadd.f32 %v2836_v31, %v4552_v57  ;;  %v3694_v24 = vmul.f32 -1.442695, %v2909_v30  ;;  %v2849_v7 = vadd.f32 %v2836_v31, %v4648_v52  ;;  %4300 = vpow2.f32 %v3691_v18 }
0x2f87   :  { %4302 = vpow2.f32 %v3694_v24  ;;  %v3692_v39 = vmul.f32 -1.442695, %v2849_v7 }
0x2f89   :  { %2868 = vrot.lane.b32.xlu0 %v2863_v11, %s4375_s0  ;;  %4304 = vpow2.f32 %v3692_v39 }
0x2f90   :  { %v4299_v22 = vpop.eup %4298 }
0x2f91   :  { %v2916_v32 = vadd.f32 1.0, %v4299_v22 }
0x2f92   :  { %v4301_v20 = vpop.eup %4300 }
0x2f93   :  { %v2856_v25 = vadd.f32 1.0, %v4301_v20  ;;  %4306 = vrcp.f32 %v2916_v32 }
0x2f94   :  { %v4303_v1 = vpop.eup %4302 }
0x2f95   :  { %v2917_v12 = vadd.f32 1.0, %v4303_v1  ;;  %4308 = vrcp.f32 %v2856_v25 }
0x2f96   :  { %v4305_v42 = vpop.eup %4304 }
0x2f97   :  { %4310 = vrcp.f32 %v2917_v12  ;;  %v2857_v40 = vadd.f32 1.0, %v4305_v42 }
0x2f99   :  { %4312 = vrcp.f32 %v2857_v40 }
0x2fa0   :  { %v4307_v11 = vpop.eup %4306 }
0x2fa2   :  { %v4309_v31 = vpop.eup %4308 }
0x2fa4   :  { %v4311_v50 = vpop.eup %4310 }
0x2fa6   :  { %v4313_v39 = vpop.eup %4312 }
0x2ff3   :  { %v2927_v28 = vpop.permute.xlu1 %2926 }
0x2ff4   :  { %v2932_v34 = vmul.f32 %v4307_v11, %v2927_v28 }
0x2ff6   :  { %2936 = vrot.lane.b32.xlu1 %v2932_v34, %s4374_s1 }
0x2ff7   :  { %v2867_v30 = vpop.permute.xlu1 %2866  ;;  %v2929_v18 = vpop.permute.xlu0 %2928 }
0x2ff8   :  { %v2872_v24 = vmul.f32 %v4309_v31, %v2867_v30  ;;  %v2933_v7 = vmul.f32 %v4311_v50, %v2929_v18 }
0x2ffa   :  { %2876 = vrot.lane.b32.xlu1 %v2872_v24, %s4374_s1  ;;  %2938 = vrot.lane.b32.xlu0 %v2933_v7, %s4374_s1 }
0x2ffb   :  { %v2869_v22 = vpop.permute.xlu0 %2868 }
0x2ffc   :  { %v2873_v20 = vmul.f32 %v4313_v39, %v2869_v22 }
0x2ffe   :  { %2878 = vrot.lane.b32.xlu0 %v2873_v20, %s4374_s1 }
0x3068   :  { %v2937_v32 = vpop.permute.xlu1 %2936 }
0x3069   :  { %v2942_v1 = vadd.f32 %v2937_v32, %v4584_v10 }
0x306b   :  { %4314 = vtanh.f32 %v2942_v1 }
0x306c   :  { %v2877_v25 = vpop.permute.xlu1 %2876  ;;  %v2939_v12 = vpop.permute.xlu0 %2938 }
0x306d   :  { %v2882_v42 = vadd.f32 %v2877_v25, %v4642_v48  ;;  %v2943_v40 = vadd.f32 %v2939_v12, %v4591_v14 }
0x306f   :  { %4316 = vtanh.f32 %v2882_v42 }
0x3070   :  { %4318 = vtanh.f32 %v2943_v40  ;;  %v2879_v28 = vpop.permute.xlu0 %2878 }
0x3071   :  { %v2883_v34 = vadd.f32 %v2879_v28, %v4648_v52 }
0x3073   :  { %4320 = vtanh.f32 %v2883_v34 }
0x3078   :  { %v4315_v30 = vpop.eup %4314 }
0x3079   :  { %v2946_v18 = vsub.f32 %v5318_v0, %v4315_v30 }
0x307b   :  { %2950 = vrot.lane.b32.xlu1 %v2946_v18, %s4376_s2 }
0x307c   :  { %v4317_v24 = vpop.eup %4316 }
0x307d   :  { %v4319_v10 = vpop.eup %4318  ;;  %v2886_v7 = vsub.f32 %v5324_v16, %v4317_v24 }
0x307e   :  { %v2947_v22 = vsub.f32 %v5320_v6, %v4319_v10 }
0x307f   :  { %2890 = vrot.lane.b32.xlu1 %v2886_v7, %s4376_s2 }
0x3080   :  { %v4321_v14 = vpop.eup %4320  ;;  %2952 = vrot.lane.b32.xlu0 %v2947_v22, %s4376_s2 }
0x3081   :  { %v2887_v48 = vsub.f32 %v5326_v60, %v4321_v14 }
0x3084   :  { %2892 = vrot.lane.b32.xlu0 %v2887_v48, %s4376_s2 }
0x30ed   :  { %v2951_v52 = vpop.permute.xlu1 %2950 }
0x30ee   :  { %v2956_v20 = vmul.f32 %v4307_v11, %v2951_v52 }
0x30f0   :  { %2960 = vrot.lane.b32.xlu1 %v2956_v20, %s4377_s14 }
0x30f1   :  { %v2891_v32 = vpop.permute.xlu1 %2890 }
0x30f2   :  { %v2896_v1 = vmul.f32 %v4309_v31, %v2891_v32  ;;  %v2953_v25 = vpop.permute.xlu0 %2952 }
0x30f3   :  { %v2957_v12 = vmul.f32 %v4311_v50, %v2953_v25 }
0x30f4   :  { %2900 = vrot.lane.b32.xlu1 %v2896_v1, %s4377_s14 }
0x30f5   :  { %2962 = vrot.lane.b32.xlu0 %v2957_v12, %s4377_s14 }
0x30f6   :  { %v2893_v42 = vpop.permute.xlu0 %2892 }
0x30f7   :  { %v2897_v40 = vmul.f32 %v4313_v39, %v2893_v42 }
0x30f9   :  { %2902 = vrot.lane.b32.xlu0 %v2897_v40, %s4377_s14 }
0x3162   :  { %v2961_v28 = vpop.permute.xlu1 %2960 }
0x3163   :  { %v5368_v18 = vadd.f32 %v4315_v30, %v2961_v28 }
0x3166   :  { %v2901_v11 = vpop.permute.xlu1 %2900 }
0x3167   :  { %v2963_v34 = vpop.permute.xlu0 %2962  ;;  %v5374_v50 = vadd.f32 %v4317_v24, %v2901_v11 }
0x3168   :  { %v5370_v7 = vadd.f32 %v4319_v10, %v2963_v34 }
0x316a   :  { %v3975_v31 = vpack.i.bf16 %v5370_v7, %v5368_v18 }
0x316b   :  { %v2903_v22 = vpop.permute.xlu0 %2902 }
0x316c   :  { %v5376_v48 = vadd.f32 %v4321_v14, %v2903_v22  ;;  %3976 = vrot.lane.b32.xlu1 %v3975_v31, %s4378_s15 }
0x316e   :  { %v2976_v39 = vpack.c.bf16 %v5376_v48, %v5374_v50 }
0x3170   :  { %2980 = vrot.lane.b32.xlu0 %v2976_v39, %s4375_s0 }
0x31de   :  { %v3977_v30 = vpop.permute.xlu1 %3976 }
0x31df   :  { %v3979_v52 = vunpack.i.h.bf16 %v3977_v30  ;;  %v3978_v10 = vunpack.i.l.bf16 %v3977_v30 }
0x31e1   :  { %v2977_v20 = vpack.c.bf16 %v3979_v52, %v3978_v10 }
0x31e2   :  { %v2981_v32 = vpop.permute.xlu0 %2980 }
0x31e3   :  { %2982 = vrot.lane.b32.xlu1 %v2977_v20, %s4375_s0  ;;  %3892 = vmatprep.mubr.msk.bf16.mxu0 %vm306_vm2, %v2981_v32 }
0x3255   :  { %v2983_v24 = vpop.permute.xlu1 %2982 }
0x3256   :  { %3893 = vmatmul.mubr.msk.bf16.vlgmr.msra.gmra.mxu0 %vm306_vm2, %v2983_v24 }
0x3316   :  { %v3894_v14 = vpop.f32.mrf.mxu0 }
0x3317   :  { %v3113_v1 = vadd.f32 %v3894_v14, %v4542_v53  ;;  %v3099_v11 = vadd.f32 %v3894_v14, %v4550_v56 }
0x3318   :  { %v3024_v25 = vpop.f32.mrf.mxu0 }
0x3319   :  { %3117 = vrot.lane.b32.xlu0 %v3113_v1, %s4375_s0  ;;  %v3053_v42 = vadd.f32 %v3024_v25, %v4552_v57  ;;  %v3039_v31 = vadd.f32 %v3024_v25, %v4654_v4  ;;  %v3699_v22 = vmul.f32 -1.442695, %v3099_v11 }
0x331a   :  { %v3895_v12 = vpop.f32.mrf.mxu0 }
0x331b   :  { %v3114_v40 = vadd.f32 %v3895_v12, %v4542_v53  ;;  %v3100_v39 = vadd.f32 %v3895_v12, %v4563_v63  ;;  %v3697_v30 = vmul.f32 -1.442695, %v3039_v31  ;;  %4322 = vpow2.f32 %v3699_v22 }
0x331c   :  { %v3027_v28 = vpop.f32.mrf.mxu0 }
0x331d   :  { %3057 = vrot.lane.b32.xlu0 %v3053_v42, %s4375_s0  ;;  %3119 = vrot.lane.b32.xlu1 %v3114_v40, %s4375_s0  ;;  %v3054_v34 = vadd.f32 %v3027_v28, %v4552_v57  ;;  %v3700_v52 = vmul.f32 -1.442695, %v3100_v39  ;;  %v3040_v10 = vadd.f32 %v3027_v28, %v4723_v49  ;;  %4324 = vpow2.f32 %v3697_v30 }
0x331f   :  { %4326 = vpow2.f32 %v3700_v52  ;;  %v3698_v20 = vmul.f32 -1.442695, %v3040_v10 }
0x3321   :  { %3059 = vrot.lane.b32.xlu1 %v3054_v34, %s4375_s0  ;;  %4328 = vpow2.f32 %v3698_v20 }
0x3328   :  { %v4323_v32 = vpop.eup %4322 }
0x3329   :  { %v3107_v1 = vadd.f32 1.0, %v4323_v32 }
0x332a   :  { %v4325_v24 = vpop.eup %4324 }
0x332b   :  { %v3047_v40 = vadd.f32 1.0, %v4325_v24  ;;  %4330 = vrcp.f32 %v3107_v1 }
0x332c   :  { %v4327_v42 = vpop.eup %4326 }
0x332d   :  { %v3108_v14 = vadd.f32 1.0, %v4327_v42  ;;  %4332 = vrcp.f32 %v3047_v40 }
0x332e   :  { %v4329_v25 = vpop.eup %4328 }
0x332f   :  { %4334 = vrcp.f32 %v3108_v14  ;;  %v3048_v12 = vadd.f32 1.0, %v4329_v25 }
0x3331   :  { %4336 = vrcp.f32 %v3048_v12 }
0x3338   :  { %v4331_v34 = vpop.eup %4330 }
0x333a   :  { %v4333_v28 = vpop.eup %4332 }
0x333c   :  { %v4335_v22 = vpop.eup %4334 }
0x333e   :  { %v4337_v20 = vpop.eup %4336 }
0x338b   :  { %v3118_v11 = vpop.permute.xlu0 %3117 }
0x338c   :  { %v3123_v31 = vmul.f32 %v4331_v34, %v3118_v11 }
0x338e   :  { %3127 = vrot.lane.b32.xlu0 %v3123_v31, %s4374_s1 }
0x338f   :  { %v3058_v39 = vpop.permute.xlu0 %3057  ;;  %v3120_v30 = vpop.permute.xlu1 %3119 }
0x3390   :  { %v3063_v52 = vmul.f32 %v4333_v28, %v3058_v39  ;;  %v3124_v10 = vmul.f32 %v4335_v22, %v3120_v30 }
0x3392   :  { %3067 = vrot.lane.b32.xlu0 %v3063_v52, %s4374_s1  ;;  %3129 = vrot.lane.b32.xlu1 %v3124_v10, %s4374_s1 }
0x3393   :  { %v3060_v32 = vpop.permute.xlu1 %3059 }
0x3394   :  { %v3064_v24 = vmul.f32 %v4337_v20, %v3060_v32 }
0x3396   :  { %3069 = vrot.lane.b32.xlu1 %v3064_v24, %s4374_s1 }
0x3400   :  { %v3128_v1 = vpop.permute.xlu0 %3127 }
0x3401   :  { %v3133_v42 = vadd.f32 %v3128_v1, %v4550_v56 }
0x3403   :  { %4338 = vtanh.f32 %v3133_v42 }
0x3404   :  { %v3068_v40 = vpop.permute.xlu0 %3067  ;;  %v3130_v14 = vpop.permute.xlu1 %3129 }
0x3405   :  { %v3073_v25 = vadd.f32 %v3068_v40, %v4654_v4  ;;  %v3134_v12 = vadd.f32 %v3130_v14, %v4563_v63 }
0x3407   :  { %4340 = vtanh.f32 %v3073_v25 }
0x3408   :  { %4342 = vtanh.f32 %v3134_v12  ;;  %v3070_v11 = vpop.permute.xlu1 %3069 }
0x3409   :  { %v3074_v31 = vadd.f32 %v3070_v11, %v4723_v49 }
0x340b   :  { %4344 = vtanh.f32 %v3074_v31 }
0x3410   :  { %v4339_v39 = vpop.eup %4338 }
0x3411   :  { %v3137_v30 = vsub.f32 %v5368_v18, %v4339_v39 }
0x3413   :  { %3141 = vrot.lane.b32.xlu0 %v3137_v30, %s4376_s2 }
0x3414   :  { %v4341_v52 = vpop.eup %4340 }
0x3415   :  { %v4343_v56 = vpop.eup %4342  ;;  %v3077_v10 = vsub.f32 %v5374_v50, %v4341_v52 }
0x3416   :  { %v3138_v32 = vsub.f32 %v5370_v7, %v4343_v56 }
0x3417   :  { %3081 = vrot.lane.b32.xlu0 %v3077_v10, %s4376_s2 }
0x3418   :  { %v4345_v63 = vpop.eup %4344  ;;  %3143 = vrot.lane.b32.xlu1 %v3138_v32, %s4376_s2 }
0x3419   :  { %v3078_v4 = vsub.f32 %v5376_v48, %v4345_v63 }
0x341c   :  { %3083 = vrot.lane.b32.xlu1 %v3078_v4, %s4376_s2 }
0x3485   :  { %v3142_v49 = vpop.permute.xlu0 %3141 }
0x3486   :  { %v3147_v24 = vmul.f32 %v4331_v34, %v3142_v49 }
0x3488   :  { %3151 = vrot.lane.b32.xlu0 %v3147_v24, %s4377_s14 }
0x3489   :  { %v3082_v1 = vpop.permute.xlu0 %3081 }
0x348a   :  { %v3087_v42 = vmul.f32 %v4333_v28, %v3082_v1  ;;  %v3144_v40 = vpop.permute.xlu1 %3143 }
0x348b   :  { %v3148_v14 = vmul.f32 %v4335_v22, %v3144_v40 }
0x348c   :  { %3091 = vrot.lane.b32.xlu0 %v3087_v42, %s4377_s14 }
0x348d   :  { %3153 = vrot.lane.b32.xlu1 %v3148_v14, %s4377_s14 }
0x348e   :  { %v3084_v25 = vpop.permute.xlu1 %3083 }
0x348f   :  { %v3088_v12 = vmul.f32 %v4337_v20, %v3084_v25 }
0x3491   :  { %3093 = vrot.lane.b32.xlu1 %v3088_v12, %s4377_s14 }
0x34fa   :  { %v3152_v11 = vpop.permute.xlu0 %3151 }
0x34fb   :  { %v5417_v30 = vadd.f32 %v4339_v39, %v3152_v11 }
0x34fe   :  { %v3092_v34 = vpop.permute.xlu0 %3091 }
0x34ff   :  { %v3154_v31 = vpop.permute.xlu1 %3153  ;;  %v5423_v22 = vadd.f32 %v4341_v52, %v3092_v34 }
0x3500   :  { %v5419_v10 = vadd.f32 %v4343_v56, %v3154_v31 }
0x3502   :  { %v3980_v28 = vpack.i.bf16 %v5419_v10, %v5417_v30 }
0x3503   :  { %v3094_v32 = vpop.permute.xlu1 %3093 }
0x3504   :  { %v5425_v4 = vadd.f32 %v4345_v63, %v3094_v32  ;;  %3981 = vrot.lane.b32.xlu0 %v3980_v28, %s4378_s15 }
0x3506   :  { %v3167_v20 = vpack.c.bf16 %v5425_v4, %v5423_v22 }
0x3508   :  { %3171 = vrot.lane.b32.xlu1 %v3167_v20, %s4375_s0 }
0x3576   :  { %v3982_v39 = vpop.permute.xlu0 %3981 }
0x3577   :  { %v3984_v49 = vunpack.i.h.bf16 %v3982_v39  ;;  %v3983_v56 = vunpack.i.l.bf16 %v3982_v39 }
0x3579   :  { %v3168_v24 = vpack.c.bf16 %v3984_v49, %v3983_v56 }
0x357a   :  { %v3172_v1 = vpop.permute.xlu1 %3171 }
0x357b   :  { %3173 = vrot.lane.b32.xlu0 %v3168_v24, %s4375_s0  ;;  %3898 = vmatprep.mubr.msk.bf16.mxu1 %vm306_vm2, %v3172_v1 }
0x35ed   :  { %v3174_v52 = vpop.permute.xlu0 %3173 }
0x35ee   :  { %3899 = vmatmul.mubr.msk.bf16.vlgmr.msra.gmra.mxu1 %vm306_vm2, %v3174_v52 }
0x36ae   :  { %v3900_v63 = vpop.f32.mrf.mxu1 }
0x36af   :  { %v3304_v42 = vadd.f32 %v3900_v63, %v4542_v53  ;;  %v3290_v34 = vadd.f32 %v3900_v63, %v4661_v9 }
0x36b0   :  { %v3215_v40 = vpop.f32.mrf.mxu1 }
0x36b1   :  { %3308 = vrot.lane.b32.xlu1 %v3304_v42, %s4375_s0  ;;  %v3244_v25 = vadd.f32 %v3215_v40, %v4552_v57  ;;  %v3230_v28 = vadd.f32 %v3215_v40, %v4657_v5  ;;  %v3705_v32 = vmul.f32 -1.442695, %v3290_v34 }
0x36b2   :  { %v3901_v14 = vpop.f32.mrf.mxu1 }
0x36b3   :  { %v3305_v12 = vadd.f32 %v3901_v14, %v4542_v53  ;;  %v3291_v20 = vadd.f32 %v3901_v14, %v4672_v17  ;;  %v3703_v39 = vmul.f32 -1.442695, %v3230_v28  ;;  %4346 = vpow2.f32 %v3705_v32 }
0x36b4   :  { %v3218_v11 = vpop.f32.mrf.mxu1 }
0x36b5   :  { %3248 = vrot.lane.b32.xlu1 %v3244_v25, %s4375_s0  ;;  %3310 = vrot.lane.b32.xlu0 %v3305_v12, %s4375_s0  ;;  %v3245_v31 = vadd.f32 %v3218_v11, %v4552_v57  ;;  %v3706_v49 = vmul.f32 -1.442695, %v3291_v20  ;;  %v3231_v53 = vadd.f32 %v3218_v11, %v4666_v13  ;;  %4348 = vpow2.f32 %v3703_v39 }
0x36b7   :  { %4350 = vpow2.f32 %v3706_v49  ;;  %v3704_v56 = vmul.f32 -1.442695, %v3231_v53 }
0x36b9   :  { %3250 = vrot.lane.b32.xlu0 %v3245_v31, %s4375_s0  ;;  %4352 = vpow2.f32 %v3704_v56 }
0x36c0   :  { %v4347_v24 = vpop.eup %4346 }
0x36c1   :  { %v3298_v1 = vadd.f32 1.0, %v4347_v24 }
0x36c2   :  { %v4349_v57 = vpop.eup %4348 }
0x36c3   :  { %v3238_v42 = vadd.f32 1.0, %v4349_v57  ;;  %4354 = vrcp.f32 %v3298_v1 }
0x36c4   :  { %v4351_v52 = vpop.eup %4350 }
0x36c5   :  { %v3299_v63 = vadd.f32 1.0, %v4351_v52  ;;  %4356 = vrcp.f32 %v3238_v42 }
0x36c6   :  { %v4353_v40 = vpop.eup %4352 }
0x36c7   :  { %4358 = vrcp.f32 %v3299_v63  ;;  %v3239_v14 = vadd.f32 1.0, %v4353_v40 }
0x36c9   :  { %4360 = vrcp.f32 %v3239_v14 }
0x36d0   :  { %v4355_v25 = vpop.eup %4354 }
0x36d2   :  { %v4357_v11 = vpop.eup %4356 }
0x36d4   :  { %v4359_v34 = vpop.eup %4358 }
0x36d6   :  { %v4361_v49 = vpop.eup %4360 }
0x3723   :  { %v3309_v12 = vpop.permute.xlu1 %3308 }
0x3724   :  { %v3314_v31 = vmul.f32 %v4355_v25, %v3309_v12 }
0x3726   :  { %3318 = vrot.lane.b32.xlu1 %v3314_v31, %s4374_s1 }
0x3727   :  { %v3249_v28 = vpop.permute.xlu1 %3248  ;;  %v3311_v32 = vpop.permute.xlu0 %3310 }
0x3728   :  { %v3254_v20 = vmul.f32 %v4357_v11, %v3249_v28  ;;  %v3315_v39 = vmul.f32 %v4359_v34, %v3311_v32 }
0x372a   :  { %3258 = vrot.lane.b32.xlu1 %v3254_v20, %s4374_s1  ;;  %3320 = vrot.lane.b32.xlu0 %v3315_v39, %s4374_s1 }
0x372b   :  { %v3251_v53 = vpop.permute.xlu0 %3250 }
0x372c   :  { %v3255_v56 = vmul.f32 %v4361_v49, %v3251_v53 }
0x372e   :  { %3260 = vrot.lane.b32.xlu0 %v3255_v56, %s4374_s1 }
0x3798   :  { %v3319_v24 = vpop.permute.xlu1 %3318 }
0x3799   :  { %v3324_v57 = vadd.f32 %v3319_v24, %v4661_v9 }
0x379b   :  { %4362 = vtanh.f32 %v3324_v57 }
0x379c   :  { %v3259_v1 = vpop.permute.xlu1 %3258  ;;  %v3321_v52 = vpop.permute.xlu0 %3320 }
0x379d   :  { %v3264_v42 = vadd.f32 %v3259_v1, %v4657_v5  ;;  %v3325_v63 = vadd.f32 %v3321_v52, %v4672_v17  ;;  %v5759_v52 = vld [vmem:[#allocation2_spill] sm:$0xff] }
0x379f   :  { %4364 = vtanh.f32 %v3264_v42 }
0x37a0   :  { %4366 = vtanh.f32 %v3325_v63  ;;  %v3261_v40 = vpop.permute.xlu0 %3260 }
0x37a1   :  { %v3265_v14 = vadd.f32 %v3261_v40, %v4666_v13  ;;  %v5760_v40 = vld [vmem:[#allocation3_spill] sm:$0xff] }
0x37a3   :  { %4368 = vtanh.f32 %v3265_v14 }
0x37a8   :  { %v5454_v12 = vpop.eup %4362 }
0x37a9   :  { %v3328_v31 = vsub.f32 %v5417_v30, %v5454_v12 }
0x37ab   :  { %3332 = vrot.lane.b32.xlu1 %v3328_v31, %s4376_s2 }
0x37ac   :  { %v5459_v9 = vpop.eup %4364 }
0x37ad   :  { %v5461_v28 = vpop.eup %4366  ;;  %v3268_v5 = vsub.f32 %v5423_v22, %v5459_v9 }
0x37ae   :  { %v3329_v17 = vsub.f32 %v5419_v10, %v5461_v28 }
0x37af   :  { %3272 = vrot.lane.b32.xlu1 %v3268_v5, %s4376_s2 }
0x37b0   :  { %v5468_v13 = vpop.eup %4368  ;;  %3334 = vrot.lane.b32.xlu0 %v3329_v17, %s4376_s2 }
0x37b1   :  { %v3269_v32 = vsub.f32 %v5425_v4, %v5468_v13 }
0x37b3   :  { %3352 = vrot.lane.b32.xlu1 %v4700_v43, %s4375_s0 }
0x37b4   :  { %3274 = vrot.lane.b32.xlu0 %v3269_v32, %s4376_s2 }
0x37b7   :  { %3366 = vrot.lane.b32.xlu1 %v5417_v30, %s4375_s0 }
0x37b8   :  { %3354 = vrot.lane.b32.xlu0 %v4702_v21, %s4375_s0 }
0x37bb   :  { %3374 = vrot.lane.b32.xlu1 %v4805_v8, %s4374_s1 }
0x37bc   :  { %3368 = vrot.lane.b32.xlu0 %v5419_v10, %s4375_s0 }
0x37bf   :  { %3382 = vrot.lane.b32.xlu1 %v4856_v58, %s4373_s18 }
0x37c0   :  { %3376 = vrot.lane.b32.xlu0 %v4807_v47, %s4374_s1 }
0x37c3   :  { %3388 = vrot.lane.b32.xlu1 %v5318_v0, %s4374_s1 }
0x37c4   :  { %3384 = vrot.lane.b32.xlu0 %v4858_v29, %s4373_s18 }
0x37c7   :  { %3396 = vrot.lane.b32.xlu1 %v4912_v23, %s4375_s0 }
0x37c8   :  { %3390 = vrot.lane.b32.xlu0 %v5320_v6, %s4374_s1 }
0x37cb   :  { %3402 = vrot.lane.b32.xlu1 %v5268_v35, %s4373_s18  ;;  %v5753_v35 = vld [vmem:[#allocation19_spill] sm:$0xff] }
0x37cc   :  { %3398 = vrot.lane.b32.xlu0 %v4914_v27, %s4375_s0 }
0x37cf   :  { %3472 = vrot.lane.b32.xlu1 %v5116_v2, %s4375_s0  ;;  %v5749_v2 = vld [vmem:[#allocation10_spill] sm:$0xff] }
0x37d0   :  { %3404 = vrot.lane.b32.xlu0 %v5270_v3, %s4373_s18 }
0x37d4   :  { %3474 = vrot.lane.b32.xlu0 %v5118_v38, %s4375_s0  ;;  %v5750_v38 = vld [vmem:[#allocation11_spill] sm:$0xff] }
0x381d   :  { %v3333_v43 = vpop.permute.xlu1 %3332 }
0x381e   :  { %v3338_v21 = vmul.f32 %v4355_v25, %v3333_v43 }
0x3820   :  { %3342 = vrot.lane.b32.xlu1 %v3338_v21, %s4377_s14 }
0x3821   :  { %v3273_v8 = vpop.permute.xlu1 %3272 }
0x3822   :  { %v3278_v47 = vmul.f32 %v4357_v11, %v3273_v8  ;;  %v3335_v58 = vpop.permute.xlu0 %3334 }
0x3823   :  { %v3339_v29 = vmul.f32 %v4359_v34, %v3335_v58 }
0x3824   :  { %3282 = vrot.lane.b32.xlu1 %v3278_v47, %s4377_s14 }
0x3825   :  { %3344 = vrot.lane.b32.xlu0 %v3339_v29, %s4377_s14 }
0x3826   :  { %v3275_v23 = vpop.permute.xlu0 %3274 }
0x3827   :  { %v3279_v27 = vmul.f32 %v4361_v49, %v3275_v23 }
0x3828   :  { %3478 = vrot.lane.b32.xlu1 %v5059_v51, %s4373_s18  ;;  %v5751_v51 = vld [vmem:[#allocation8_spill] sm:$0xff] }
0x3829   :  { %3284 = vrot.lane.b32.xlu0 %v3279_v27, %s4377_s14 }
0x382a   :  { %v5564_v3 = vpop.permute.xlu0 %3354 }
0x382c   :  { %3514 = vrot.lane.b32.xlu1 %v5324_v16, %s4375_s0 }
0x382d   :  { %3480 = vrot.lane.b32.xlu0 %v5061_v62, %s4373_s18  ;;  %v5752_v62 = vld [vmem:[#allocation18_spill] sm:$0xff] }
0x382e   :  { %v5568_v0 = vpop.permute.xlu0 %3368 }
0x3830   :  { %3520 = vrot.lane.b32.xlu1 %v5749_v2, %s4373_s18 }
0x3831   :  { %3516 = vrot.lane.b32.xlu0 %v5326_v60, %s4375_s0 }
0x3834   :  { %3408 = vrot.lane.b32.xlu1 %v5217_v19, %s4375_s0  ;;  %v5754_v19 = vld [vmem:[#allocation9_spill] sm:$0xff] }
0x3835   :  { %3522 = vrot.lane.b32.xlu0 %v5750_v38, %s4373_s18 }
0x3838   :  { %3484 = vrot.lane.b32.xlu1 %v5008_v59, %s4375_s0  ;;  %v5755_v59 = vld [vmem:[#allocation20_spill] sm:$0xff] }
0x3839   :  { %3410 = vrot.lane.b32.xlu0 %v5219_v33, %s4375_s0  ;;  %v5756_v33 = vld [vmem:[#allocation21_spill] sm:$0xff] }
0x383c   :  { %3526 = vrot.lane.b32.xlu1 %v5751_v51, %s4375_s0 }
0x383d   :  { %3486 = vrot.lane.b32.xlu0 %v5752_v62, %s4375_s0 }
0x3840   :  { %3416 = vrot.lane.b32.xlu1 %v5753_v35, %s4374_s1 }
0x3841   :  { %3528 = vrot.lane.b32.xlu0 %v5754_v19, %s4375_s0 }
0x3844   :  { %3492 = vrot.lane.b32.xlu1 %v5223_v15, %s4374_s1  ;;  %v5757_v15 = vld [vmem:[#allocation12_spill] sm:$0xff] }
0x3845   :  { %3418 = vrot.lane.b32.xlu0 %v5755_v59, %s4374_s1  ;;  %v5761_v59 = vld [vmem:[#allocation16_spill] sm:$0xff] }
0x3848   :  { %3534 = vrot.lane.b32.xlu1 %v5423_v22, %s4374_s1 }
0x3849   :  { %3494 = vrot.lane.b32.xlu0 %v5225_v46, %s4374_s1  ;;  %v5562_v46 = vpop.permute.xlu1 %3352 }
0x384c   :  { %3424 = vrot.lane.b32.xlu1 %v5065_v45, %s4373_s18  ;;  %v5758_v45 = vld [vmem:[#allocation13_spill] sm:$0xff] }
0x384d   :  { %3536 = vrot.lane.b32.xlu0 %v5425_v4, %s4374_s1 }
0x3850   :  { %3500 = vrot.lane.b32.xlu1 %v5274_v26, %s4373_s18  ;;  %v5566_v26 = vpop.permute.xlu1 %3366 }
0x3851   :  { %3426 = vrot.lane.b32.xlu0 %v5756_v33, %s4373_s18 }
0x3854   :  { %3430 = vrot.lane.b32.xlu1 %v5110_v54, %s4374_s1  ;;  %v5570_v54 = vpop.permute.xlu1 %3374 }
0x3855   :  { %3502 = vrot.lane.b32.xlu0 %v5276_v44, %s4373_s18  ;;  %v5572_v44 = vpop.permute.xlu0 %3376 }
0x3858   :  { %3506 = vrot.lane.b32.xlu1 %v5757_v15, %s4374_s1  ;;  %v5574_v6 = vpop.permute.xlu1 %3382 }
0x3859   :  { %3432 = vrot.lane.b32.xlu0 %v5112_v61, %s4374_s1  ;;  %v5576_v16 = vpop.permute.xlu0 %3384 }
0x385c   :  { %v5578_v61 = vpop.permute.xlu1 %3388 }
0x385d   :  { %3508 = vrot.lane.b32.xlu0 %v5758_v45, %s4374_s1  ;;  %v5580_v60 = vpop.permute.xlu0 %3390 }
0x3860   :  { %v3397_v30 = vpop.permute.xlu1 %3396 }
0x3861   :  { %v3399_v10 = vpop.permute.xlu0 %3398 }
0x3864   :  { %v3403_v22 = vpop.permute.xlu1 %3402 }
0x3865   :  { %v3405_v4 = vpop.permute.xlu0 %3404 }
0x3868   :  { %v3473_v25 = vpop.permute.xlu1 %3472 }
0x3869   :  { %v3475_v34 = vpop.permute.xlu0 %3474 }
0x3892   :  { %v3343_v11 = vpop.permute.xlu1 %3342 }
0x3893   :  { %v3348_v20 = vadd.f32 %v5454_v12, %v3343_v11  ;;  %v3457_v11 = vsel %vm306_vm2, %v3399_v10, %v3405_v4 }
0x3895   :  { %3360 = vrot.lane.b32.xlu1 %v3348_v20, %s4373_s18 }
0x3896   :  { %v3283_v39 = vpop.permute.xlu1 %3282 }
0x3897   :  { %v3288_v49 = vadd.f32 %v5459_v9, %v3283_v39  ;;  %v3345_v53 = vpop.permute.xlu0 %3344 }
0x3898   :  { %v3349_v56 = vadd.f32 %v5461_v28, %v3345_v53  ;;  %v5762_v53 = vld [vmem:[#allocation17_spill] sm:$0xff] }
0x3899   :  { %3542 = vrot.lane.b32.xlu1 %v3288_v49, %s4373_s18 }
0x389a   :  { %3362 = vrot.lane.b32.xlu0 %v3349_v56, %s4373_s18  ;;  %v3479_v24 = vpop.permute.xlu1 %3478  ;;  %v3459_v56 = vsel %vm3438_vm3, %v3457_v11, %v5762_v53  ;;  %v5768_v11 = vld [vmem:[#allocation5_spill] sm:$0xff] }
0x389b   :  { %v3285_v57 = vpop.permute.xlu0 %3284 }
0x389c   :  { %v3289_v1 = vadd.f32 %v5468_v13, %v3285_v57 }
0x389d   :  { %3548 = vrot.lane.b32.xlu1 %v5759_v52, %s4374_s1 }
0x389e   :  { %3544 = vrot.lane.b32.xlu0 %v3289_v1, %s4373_s18  ;;  %v3515_v42 = vpop.permute.xlu1 %3514 }
0x389f   :  { %v3481_v63 = vpop.permute.xlu0 %3480 }
0x38a0   :  { %v3555_v10 = vsel %vm306_vm2, %v3475_v34, %v3481_v63  ;;  %v5763_v34 = vld [vmem:[#allocation14_spill] sm:$0xff] }
0x38a2   :  { %3550 = vrot.lane.b32.xlu0 %v5760_v40, %s4374_s1  ;;  %v3521_v14 = vpop.permute.xlu1 %3520 }
0x38a3   :  { %v3568_v12 = vsel %vm306_vm2, %v3515_v42, %v3521_v14  ;;  %v3517_v31 = vpop.permute.xlu0 %3516 }
0x38a4   :  { %v3570_v32 = vsel %vm3438_vm3, %v3568_v12, %v5374_v50  ;;  %v3456_v50 = vsel %vm306_vm2, %v3397_v30, %v3403_v22 }
0x38a5   :  { %v3458_v33 = vsel %vm3438_vm3, %v3456_v50, %v5761_v59  ;;  %v5767_v59 = vld [vmem:[#allocation7_spill] sm:$0xff] }
0x38a6   :  { %v3409_v9 = vpop.permute.xlu1 %3408 }
0x38a7   :  { %v3523_v28 = vpop.permute.xlu0 %3522  ;;  %v3460_v45 = vsel %vm3441_vm4, %v3458_v33, %v3409_v9 }
0x38a8   :  { %v3569_v5 = vsel %vm306_vm2, %v3517_v31, %v3523_v28 }
0x38a9   :  { %v3571_v58 = vsel %vm3438_vm3, %v3569_v5, %v5376_v48  ;;  %v3554_v48 = vsel %vm306_vm2, %v3473_v25, %v3479_v24 }
0x38aa   :  { %v3485_v17 = vpop.permute.xlu1 %3484  ;;  %v3556_v22 = vsel %vm3438_vm3, %v3554_v48, %v5172_v41 }
0x38ab   :  { %v3411_v13 = vpop.permute.xlu0 %3410  ;;  %v3558_v49 = vsel %vm3441_vm4, %v3556_v22, %v3485_v17 }
0x38ac   :  { %v3461_v4 = vsel %vm3441_vm4, %v3459_v56, %v3411_v13  ;;  %v5764_v13 = vld [vmem:[#allocation15_spill] sm:$0xff] }
0x38ae   :  { %v3527_v43 = vpop.permute.xlu1 %3526 }
0x38af   :  { %v3572_v21 = vsel %vm3441_vm4, %v3570_v32, %v3527_v43  ;;  %v3487_v8 = vpop.permute.xlu0 %3486 }
0x38b2   :  { %v3417_v47 = vpop.permute.xlu1 %3416 }
0x38b3   :  { %v3529_v29 = vpop.permute.xlu0 %3528  ;;  %v3462_v20 = vsel %vm3444_vm5, %v3460_v45, %v3417_v47 }
0x38b4   :  { %v3573_v23 = vsel %vm3441_vm4, %v3571_v58, %v3529_v29  ;;  %v3464_v25 = vsel %vm3447_vm6, %v3462_v20, %v5166_v37  ;;  %v3557_v37 = vsel %vm3438_vm3, %v3555_v10, %v5174_v36  ;;  %v5765_v58 = vld [vmem:[#allocation6_spill] sm:$0xff] }
0x38b5   :  { %v3559_v40 = vsel %vm3441_vm4, %v3557_v37, %v3487_v8 }
0x38b6   :  { %v3493_v27 = vpop.permute.xlu1 %3492 }
0x38b7   :  { %v3419_v2 = vpop.permute.xlu0 %3418  ;;  %v3560_v24 = vsel %vm3444_vm5, %v3558_v49, %v3493_v27 }
0x38b8   :  { %v3463_v41 = vsel %vm3444_vm5, %v3461_v4, %v3419_v2  ;;  %v3562_v63 = vsel %vm3447_vm6, %v3560_v24, %v5763_v34 }
0x38b9   :  { %v3465_v12 = vsel %vm3447_vm6, %v3463_v41, %v5168_v55 }
0x38ba   :  { %v3535_v38 = vpop.permute.xlu1 %3534 }
0x38bb   :  { %v3574_v51 = vsel %vm3444_vm5, %v3572_v21, %v3535_v38  ;;  %v3495_v62 = vpop.permute.xlu0 %3494 }
0x38bc   :  { %v3561_v9 = vsel %vm3444_vm5, %v3559_v40, %v3495_v62 }
0x38bd   :  { %v3563_v55 = vsel %vm3447_vm6, %v3561_v9, %v5764_v13 }
0x38be   :  { %v3425_v35 = vpop.permute.xlu1 %3424 }
0x38bf   :  { %v3537_v19 = vpop.permute.xlu0 %3536  ;;  %v3466_v57 = vsel %vm3450_vm7, %v3464_v25, %v3425_v35 }
0x38c0   :  { %v5607_v15 = vsel %vm3444_vm5, %v3573_v23, %v3537_v19  ;;  %v5766_v19 = vld [vmem:[#allocation4_spill] sm:$0xff] }
0x38c2   :  { %v3501_v39 = vpop.permute.xlu1 %3500 }
0x38c3   :  { %v3427_v30 = vpop.permute.xlu0 %3426  ;;  %v3564_v14 = vsel %vm3450_vm7, %v3562_v63, %v3501_v39 }
0x38c4   :  { %v3467_v28 = vsel %vm3450_vm7, %v3465_v12, %v3427_v30 }
0x38c6   :  { %v3431_v1 = vpop.permute.xlu1 %3430 }
0x38c7   :  { %v3468_v52 = vsel %vm3453_vm8, %v3466_v57, %v3431_v1  ;;  %v3503_v42 = vpop.permute.xlu0 %3502 }
0x38c8   :  { %3583 = vst [vmem:[%s5708_s5 + $0x8] sm:$0xff] %v3468_v52  ;;  %v3565_v32 = vsel %vm3450_vm7, %v3563_v55, %v3503_v42 }
0x38ca   :  { %v3507_v31 = vpop.permute.xlu1 %3506 }
0x38cb   :  { %v3566_v5 = vsel %vm3453_vm8, %v3564_v14, %v3507_v31  ;;  %v3433_v17 = vpop.permute.xlu0 %3432 }
0x38cc   :  { %3584 = vst [vmem:[%s5708_s5 + $0x10] sm:$0xff] %v3566_v5  ;;  %v3469_v36 = vsel %vm3453_vm8, %v3467_v28, %v3433_v17 }
0x38cd   :  { %3587 = vst [vmem:[%s5708_s5 + $0x28] sm:$0xff] %v3469_v36 }
0x38cf   :  { %v3509_v43 = vpop.permute.xlu0 %3508 }
0x38d0   :  { %v3567_v21 = vsel %vm3453_vm8, %v3565_v32, %v3509_v43 }
0x38d1   :  { %3588 = vst [vmem:[%s5708_s5 + $0x30] sm:$0xff] %v3567_v21 }
0x3907   :  { %v3361_v8 = vpop.permute.xlu1 %3360 }
0x3908   :  { %v3436_v47 = vsel %vm306_vm2, %v5562_v46, %v3361_v8 }
0x3909   :  { %v3439_v29 = vsel %vm3438_vm3, %v3436_v47, %v5765_v58 }
0x390a   :  { %v3442_v23 = vsel %vm3441_vm4, %v3439_v29, %v5566_v26  ;;  %v3576_v26 = vsel %vm3447_vm6, %v3574_v51, %v5766_v19 }
0x390b   :  { %v3445_v27 = vsel %vm3444_vm5, %v3442_v23, %v5570_v54  ;;  %v3543_v2 = vpop.permute.xlu1 %3542 }
0x390c   :  { %v3448_v38 = vsel %vm3447_vm6, %v3445_v27, %v5368_v18  ;;  %v3363_v62 = vpop.permute.xlu0 %3362  ;;  %v3578_v18 = vsel %vm3450_vm7, %v3576_v26, %v3543_v2 }
0x390d   :  { %v3451_v50 = vsel %vm3450_vm7, %v3448_v38, %v5574_v6  ;;  %v3437_v46 = vsel %vm306_vm2, %v5564_v3, %v3363_v62 }
0x390e   :  { %v3454_v35 = vsel %vm3453_vm8, %v3451_v50, %v5578_v61  ;;  %v3440_v54 = vsel %vm3438_vm3, %v3437_v46, %v5767_v59 }
0x390f   :  { %3582 = vst [vmem:[%s5708_s5] sm:$0xff] %v3454_v35  ;;  %v3443_v6 = vsel %vm3441_vm4, %v3440_v54, %v5568_v0  ;;  %v3549_v33 = vpop.permute.xlu1 %3548 }
0x3910   :  { %v3446_v3 = vsel %vm3444_vm5, %v3443_v6, %v5572_v44  ;;  %v3580_v61 = vsel %vm3453_vm8, %v3578_v18, %v3549_v33  ;;  %v3545_v48 = vpop.permute.xlu0 %3544  ;;  %v3577_v44 = vsel %vm3447_vm6, %v5607_v15, %v5768_v11 }
0x3911   :  { %v3449_v51 = vsel %vm3447_vm6, %v3446_v3, %v5370_v7  ;;  %3585 = vst [vmem:[%s5708_s5 + $0x18] sm:$0xff] %v3580_v61  ;;  %v3579_v7 = vsel %vm3450_vm7, %v3577_v44, %v3545_v48 }
0x3912   :  { %v3452_v45 = vsel %vm3450_vm7, %v3449_v51, %v5576_v16 }
0x3913   :  { %v3455_v0 = vsel %vm3453_vm8, %v3452_v45, %v5580_v60 }
0x3914   :  { %3586 = vst [vmem:[%s5708_s5 + $0x20] sm:$0xff] %v3455_v0  ;;  %v3551_v20 = vpop.permute.xlu0 %3550 }
0x3915   :  { %v3581_v39 = vsel %vm3453_vm8, %v3579_v7, %v3551_v20 }
0x3916   :  { %3589 = vst [vmem:[%s5708_s5 + $0x38] sm:$0xff] %v3581_v39 }

</bundles_post_ra>
